<compile_context>
chip_gen: v6e
topology: v6e:2x2x1
jax: 0.10.0
libtpu: 0.0.40
codegen_flags: <defaults>
</compile_context>

<pallas_src>
import jax
import jax.numpy as jnp
from jax.experimental import pallas as pl
from jax.experimental.pallas import tpu as pltpu


# ----------------------------------------------------------------------------
# Perf knobs (per-generation guidance from the review):
#   v6e (128 MiB VMEM):        MAMBA_TL_TARGET=512, TAIL_TN_TARGET=512, VMEM_LIMIT_BYTES=100<<20
#   v7x ( 64 MiB VMEM):        MAMBA_TL_TARGET=256, TAIL_TN_TARGET=256, VMEM_LIMIT_BYTES=48<<20
#   v5e ( 16 MiB scoped dflt): MAMBA_TL_TARGET=128, TAIL_TN_TARGET=128, VMEM_LIMIT_BYTES=64<<20
# Defaults are the v7x-safe setting (also correct everywhere at small shapes).
MAMBA_TL_TARGET = 256
TAIL_TN_TARGET = 256
VMEM_LIMIT_BYTES = None      # None -> compiler default scoped limit


# ----------------------------------------------------------------------------
# elementwise helpers (kernel-side, f32)
# ----------------------------------------------------------------------------
def _sigmoid(x):
    # exact sigmoid (review flagged approx reciprocal as a parity risk)
    return 1.0 / (1.0 + jnp.exp(-x))


def _softplus(x):
    # numerically stable softplus, matches F.softplus(beta=1)
    return jnp.maximum(x, 0.0) + jnp.log(1.0 + jnp.exp(-jnp.abs(x)))


def _erf(x):
    # Abramowitz & Stegun 7.1.26 polynomial erf (max abs err ~1.5e-7); uses only
    # exp/mul/add/div so it lowers on every TPU generation.
    a1, a2, a3, a4, a5 = 0.254829592, -0.284496736, 1.421413741, -1.453152027, 1.061405429
    p = 0.3275911
    s = jnp.where(x < 0.0, -1.0, 1.0)
    ax = jnp.abs(x)
    t = 1.0 / (1.0 + p * ax)
    poly = ((((a5 * t + a4) * t + a3) * t + a2) * t + a1) * t
    return s * (1.0 - poly * jnp.exp(-ax * ax))


def _gelu_exact(x):
    # torch nn.GELU() default = exact erf gelu
    return 0.5 * x * (1.0 + _erf(x * 0.7071067811865476))


def _pick_tile(n, target, align=8):
    """Largest divisor of n that is <= target and a multiple of `align`,
    else n itself (full extent is always a legal block)."""
    if n <= target:
        return n
    for t in range(target - (target % align), align - 1, -align):
        if t > 0 and n % t == 0:
            return t
    # TODO(synk): no aligned divisor found -> fall back to the full extent;
    # pad L in the caller if this ever exceeds the VMEM budget.
    return n


# ----------------------------------------------------------------------------
# Pallas kernels
# ----------------------------------------------------------------------------
def mamba_block_kernel(x_ref, halo_ref, ln_g, ln_b, w12, convw, dtw, dtb,
                       outw, ls, o_ref):
    """One UnifiedMambaBlock forward for one (batch, L-tile) block.

    x_ref:    (1, TL, D) f32 activation tile.
    halo_ref: (1, 1, 2, D) f32 = x rows (lt*TL - 1) and (lt*TL + TL),
              zeroed by the wrapper at the sequence boundaries.
    Matmul weights (w12, dtw, outw) are bf16; everything else f32.
    """
    lt = pl.program_id(1)
    nlt = pl.num_programs(1)

    x = x_ref[0]                                        # (TL, D) f32
    residual = x
    TL = x.shape[0]
    di = convw.shape[1]

    # ---- LayerNorm(D) over [x ; halo] jointly (stats are per-row) ----
    xa = jnp.concatenate([x, halo_ref[0, 0]], axis=0)   # (TL+2, D)
    mu = jnp.mean(xa, axis=-1, keepdims=True)
    xc = xa - mu
    var = jnp.mean(xc * xc, axis=-1, keepdims=True)
    xn = xc * jax.lax.rsqrt(var + 1e-5) * ln_g[...] + ln_b[...]

    # ---- fused in_proj: ONE (TL+2, D) @ (D, 2*di) bf16 matmul ----
    # (halo rows folded in -> no second full streaming of the weight)
    x12 = jnp.dot(xn.astype(jnp.bfloat16), w12[...],
                  preferred_element_type=jnp.float32)   # (TL+2, 2*di) f32
    x1 = x12[:TL, :di]
    x2 = x12[:TL, di:]

    # halo rows after in_proj, zeroed at sequence ends (conv zero padding)
    not_first = (lt > 0).astype(jnp.float32)
    not_last = (lt < nlt - 1).astype(jnp.float32)
    prev_row = x12[TL:TL + 1, :di] * not_first          # (1, di)
    next_row = x12[TL + 1:TL + 2, :di] * not_last       # (1, di)

    # ---- depthwise conv1d (k=3, pad=1, groups=di) via 1-row-shifted views ----
    x_prev = jnp.concatenate([prev_row, x1[:TL - 1, :]], axis=0)   # (TL, di)
    x_next = jnp.concatenate([x1[1:, :], next_row], axis=0)        # (TL, di)
    cw = convw[...]                                     # (3, di) f32
    conv = x_prev * cw[0:1, :] + x1 * cw[1:2, :] + x_next * cw[2:3, :]

    # ---- SiLU ----
    x1_ssm = conv * _sigmoid(conv)

    # ---- dt path ----
    dt = jnp.dot(x1_ssm.astype(jnp.bfloat16), dtw[...],
                 preferred_element_type=jnp.float32) + dtb[...]
    dt = _softplus(dt)
    x1_processed = x1_ssm * _sigmoid(dt)

    # ---- gate + out projection + layer scale + residual ----
    x_gated = x1_processed * _sigmoid(x2)
    out = jnp.dot(x_gated.astype(jnp.bfloat16), outw[...],
                  preferred_element_type=jnp.float32)
    o_ref[0] = out * ls[...] + residual


def layernorm_kernel(x_ref, g_ref, b_ref, o_ref):
    x = x_ref[...]                                      # (TN, D)
    mu = jnp.mean(x, axis=-1, keepdims=True)
    xc = x - mu
    var = jnp.mean(xc * xc, axis=-1, keepdims=True)
    o_ref[...] = xc * jax.lax.rsqrt(var + 1e-5) * g_ref[...] + b_ref[...]


def tail_kernel(coarse_ref, fine_ref, wc, wf, cbias, w1, b1, w2, b2, o_ref):
    """Fused epilogue for one row tile.

      combined = coarse @ Wc' + fine @ Wf' + b'   (compression + combination
                                                   folded into Wc'/Wf'/b')
      xhat     = row-normalized combined          (head LN gamma/beta folded
                                                   into w1/b1)
      h        = GELU(xhat @ W1_all + b1_all)     (all heads in ONE matmul)
      out[:, c*K:(c+1)*K] = h[:, c*H2:(c+1)*H2] @ w2[c] + b2[c]

    Output is stored lane-dense as (TN, C*K)."""
    C, H2, K = w2.shape

    coarse = coarse_ref[...].astype(jnp.bfloat16)       # (TN, H)
    fine = fine_ref[...].astype(jnp.bfloat16)

    combined = (jnp.dot(coarse, wc[...], preferred_element_type=jnp.float32)
                + jnp.dot(fine, wf[...], preferred_element_type=jnp.float32)
                + cbias[...])                           # (TN, H) f32

    # LN stats shared across heads; per-head gamma/beta already folded away.
    mu = jnp.mean(combined, axis=-1, keepdims=True)
    xc = combined - mu
    var = jnp.mean(xc * xc, axis=-1, keepdims=True)
    xhat = xc * jax.lax.rsqrt(var + 1e-5)

    h = jnp.dot(xhat.astype(jnp.bfloat16), w1[...],
                preferred_element_type=jnp.float32) + b1[...]   # (TN, C*H2)
    h = _gelu_exact(h)

    for c in range(C):                                  # static unroll (C=8)
        hc = h[:, c * H2:(c + 1) * H2]
        logits_c = jnp.dot(hc.astype(jnp.bfloat16), w2[c],
                           preferred_element_type=jnp.float32) + b2[c]
        o_ref[:, c * K:(c + 1) * K] = logits_c          # direct lane-dense store


# ----------------------------------------------------------------------------
# Pallas wrappers
# ----------------------------------------------------------------------------
def mamba_block(x, p, tl_target=MAMBA_TL_TARGET):
    """x: (B, L, D) f32 -> (B, L, D) f32. p: prepped kernel-layout params."""
    B, L, D = x.shape
    di = p["conv_w"].shape[1]
    TL = _pick_tile(L, tl_target)
    nt = L // TL

    # halo rows: halo[b, lt, 0] = x[b, lt*TL - 1], halo[b, lt, 1] = x[b, (lt+1)*TL]
    # (boundary rows are additionally masked to zero inside the kernel).
    # TODO(synk): could be fetched via pl.Element-indexed BlockSpecs on x
    # instead of materializing this small tensor.
    zero = jnp.zeros((B, 1, D), x.dtype)
    prev = jnp.concatenate([zero, x[:, TL - 1:L - 1:TL, :]], axis=1)
    nxt = jnp.concatenate([x[:, TL::TL, :], zero], axis=1)
    halo = jnp.stack([prev, nxt], axis=2)               # (B, nt, 2, D)

    def wspec(shape):
        # TODO(synk): pipeline_mode=pl.Buffered(1) on these constant weight
        # blocks would halve their VMEM footprint (they never change across
        # the grid); left at the default double-buffering to stay conservative.
        return pl.BlockSpec(shape, lambda b, lt: (0,) * len(shape))

    return pl.pallas_call(
        mamba_block_kernel,
        out_shape=jax.ShapeDtypeStruct((B, L, D), jnp.float32),
        grid=(B, nt),
        in_specs=[
            pl.BlockSpec((1, TL, D), lambda b, lt: (b, lt, 0)),
            pl.BlockSpec((1, 1, 2, D), lambda b, lt: (b, lt, 0, 0)),
            wspec((1, D)), wspec((1, D)),
            wspec((D, 2 * di)),
            wspec((3, di)),
            wspec((di, di)), wspec((1, di)),
            wspec((di, D)),
            wspec((1, D)),
        ],
        out_specs=pl.BlockSpec((1, TL, D), lambda b, lt: (b, lt, 0)),
        compiler_params=pltpu.CompilerParams(
            dimension_semantics=("parallel", "parallel"),
            vmem_limit_bytes=VMEM_LIMIT_BYTES),
    )(x, halo, p["ln_g"], p["ln_b"], p["w12"], p["conv_w"],
      p["dt_w"], p["dt_b"], p["out_w"], p["layer_scale"])


def layernorm_op(x2d, g, b):
    """g, b already shaped (1, D)."""
    N, D = x2d.shape
    TN = _pick_tile(N, 512)
    return pl.pallas_call(
        layernorm_kernel,
        out_shape=jax.ShapeDtypeStruct((N, D), jnp.float32),
        grid=(N // TN,),
        in_specs=[pl.BlockSpec((TN, D), lambda i: (i, 0)),
                  pl.BlockSpec((1, D), lambda i: (0, 0)),
                  pl.BlockSpec((1, D), lambda i: (0, 0))],
        out_specs=pl.BlockSpec((TN, D), lambda i: (i, 0)),
        compiler_params=pltpu.CompilerParams(
            dimension_semantics=("parallel",),
            vmem_limit_bytes=VMEM_LIMIT_BYTES),
    )(x2d, g, b)


def tail_op(coarse2d, fine2d, t):
    """Fused epilogue. coarse2d/fine2d: (N, H) f32 -> logits (N, C*K) f32."""
    N, H = coarse2d.shape
    C, H2, K = t["w2"].shape
    TN = _pick_tile(N, TAIL_TN_TARGET)

    def wspec(shape):
        # TODO(synk): same pl.Buffered(1) note as in mamba_block.
        return pl.BlockSpec(shape, lambda i: (0,) * len(shape))

    return pl.pallas_call(
        tail_kernel,
        out_shape=jax.ShapeDtypeStruct((N, C * K), jnp.float32),
        grid=(N // TN,),
        in_specs=[
            pl.BlockSpec((TN, H), lambda i: (i, 0)),
            pl.BlockSpec((TN, H), lambda i: (i, 0)),
            wspec((H, H)), wspec((H, H)), wspec((1, H)),
            wspec((H, C * H2)), wspec((1, C * H2)),
            wspec((C, H2, K)), wspec((C, 1, K)),
        ],
        out_specs=pl.BlockSpec((TN, C * K), lambda i: (i, 0)),
        compiler_params=pltpu.CompilerParams(
            dimension_semantics=("parallel",),
            vmem_limit_bytes=VMEM_LIMIT_BYTES),
    )(coarse2d, fine2d, t["wc"], t["wf"], t["cbias"],
      t["w1"], t["b1"], t["w2"], t["b2"])


# ----------------------------------------------------------------------------
# plain-JAX glue
# ----------------------------------------------------------------------------
def interpolate_linear(x, t_out):
    """F.interpolate(x.transpose(1,2), size=t_out, mode='linear',
    align_corners=False).transpose(1,2) with x: (B, L_in, D)."""
    B, l_in, D = x.shape
    if l_in == t_out:
        return x
    scale = l_in / t_out
    out_idx = jnp.arange(t_out, dtype=jnp.float32)
    real = jnp.clip((out_idx + 0.5) * scale - 0.5, 0.0, l_in - 1)
    i0 = jnp.floor(real).astype(jnp.int32)
    i1 = jnp.minimum(i0 + 1, l_in - 1)
    w = (real - i0.astype(jnp.float32))[None, :, None]
    return x[:, i0, :] * (1.0 - w) + x[:, i1, :] * w


def forward(kp, text_tokens, target_tokens):
    B, L = text_tokens.shape
    x = kp["embedding"][text_tokens] + kp["pos_encoding"][:, :L, :]
    # dropout is identity in eval mode
    for blk in kp["enc_layers"]:
        x = mamba_block(x, blk)
    D = x.shape[-1]
    x = layernorm_op(x.reshape(B * L, D),
                     kp["enc_norm_g"], kp["enc_norm_b"]).reshape(B, L, D)

    # TODO(synk): the duration_regulator / `.item()` dynamic target-length path
    # is data-dependent on a scalar and not traceable; only the
    # target_tokens-provided (static-length) path is implemented.
    T = target_tokens.shape[2]
    tfe = interpolate_linear(x, T)

    coarse = tfe
    for blk in kp["coarse_layers"]:
        coarse = mamba_block(coarse, blk)

    fine = tfe + coarse
    for blk in kp["fine_layers"]:
        fine = mamba_block(fine, blk)

    H = coarse.shape[-1]
    logits2d = tail_op(coarse.reshape(B * T, H), fine.reshape(B * T, H),
                       kp["tail"])                       # (B*T, C*K)
    C, _, K = kp["tail"]["w2"].shape
    logits = logits2d.reshape(B, T, C, K).transpose(0, 2, 1, 3)  # (B, C, T, K)
    return logits


# ----------------------------------------------------------------------------
# parameter init (torch layouts) + one-time prep into kernel layouts
# ----------------------------------------------------------------------------
def _normal(key, shape, scale=0.02):
    return scale * jax.random.normal(key, shape, jnp.float32)


def init_mamba(key, d_model, d_inner):
    ks = jax.random.split(key, 4)
    return dict(
        in_proj_w=_normal(ks[0], (2 * d_inner, d_model)),
        conv_w=_normal(ks[1], (d_inner, 1, 3)),
        # note: x_proj exists in the torch module but is never used in forward
        dt_w=_normal(ks[2], (d_inner, d_inner)),
        dt_b=jnp.zeros((d_inner,), jnp.float32),
        out_w=_normal(ks[3], (d_model, d_inner)),
        layer_scale=0.1 * jnp.ones((d_model,), jnp.float32),
        ln_g=jnp.ones((d_model,), jnp.float32),
        ln_b=jnp.zeros((d_model,), jnp.float32),
    )


def init_params(key, *, vocab, hidden_dim, num_layers, expand,
                num_codebooks, codebook_size):
    D = hidden_dim
    di = int(D * expand)
    H2 = D // 2
    keys = iter(jax.random.split(key, 32))
    nk = lambda: next(keys)
    return dict(
        embedding=_normal(nk(), (vocab, D)),
        pos_encoding=_normal(nk(), (1, 2048, D)),
        enc_layers=[init_mamba(nk(), D, di) for _ in range(num_layers)],
        enc_norm_g=jnp.ones((D,), jnp.float32),
        enc_norm_b=jnp.zeros((D,), jnp.float32),
        # duration regulator params (unused when target_tokens is provided)
        dur_w1=_normal(nk(), (H2, D)), dur_b1=jnp.zeros((H2,), jnp.float32),
        dur_w2=_normal(nk(), (1, H2)), dur_b2=jnp.zeros((1,), jnp.float32),
        coarse_layers=[init_mamba(nk(), D, di) for _ in range(2)],
        fine_layers=[init_mamba(nk(), D, di) for _ in range(2)],
        coarse_comp_w=_normal(nk(), (H2, D)),
        coarse_comp_b=jnp.zeros((H2,), jnp.float32),
        fine_comp_w=_normal(nk(), (H2, D)),
        fine_comp_b=jnp.zeros((H2,), jnp.float32),
        comb_w=_normal(nk(), (D, D)),
        comb_b=jnp.zeros((D,), jnp.float32),
        heads=dict(
            ln_g=jnp.ones((num_codebooks, D), jnp.float32),
            ln_b=jnp.zeros((num_codebooks, D), jnp.float32),
            w1=_normal(nk(), (num_codebooks, H2, D)),
            b1=jnp.zeros((num_codebooks, H2), jnp.float32),
            w2=_normal(nk(), (num_codebooks, codebook_size, H2)),
            b2=jnp.zeros((num_codebooks, codebook_size), jnp.float32),
        ),
    )


def prep_mamba(p):
    """Torch-layout mamba params -> kernel layout (transposed once, bf16 weights)."""
    di = p["dt_w"].shape[0]
    D = p["out_w"].shape[0]
    return dict(
        ln_g=p["ln_g"].reshape(1, D),
        ln_b=p["ln_b"].reshape(1, D),
        w12=p["in_proj_w"].T.astype(jnp.bfloat16),       # (D, 2*di), x1|x2 columns
        conv_w=p["conv_w"][:, 0, :].T,                   # (3, di) f32
        dt_w=p["dt_w"].T.astype(jnp.bfloat16),           # (di, di)
        dt_b=p["dt_b"].reshape(1, di),
        out_w=p["out_w"].T.astype(jnp.bfloat16),         # (di, D)
        layer_scale=p["layer_scale"].reshape(1, D),
    )


def prepare_params(params):
    D = params["enc_norm_g"].shape[0]
    heads = params["heads"]
    C, H2, H = heads["w1"].shape            # torch w1: (C, H2, H)
    K = heads["w2"].shape[1]                # torch w2: (C, K, H2)

    # --- fuse coarse/fine compression into the combination matmul ---
    cw = params["coarse_comp_w"].T          # (H, H2)
    fw = params["fine_comp_w"].T            # (H, H2)
    combw = params["comb_w"].T              # (H, H) = [in, out]; rows 0:H2 -> coarse part
    wc = cw @ combw[:H2, :]                 # (H, H)
    wf = fw @ combw[H2:, :]                 # (H, H)
    cbias = (params["coarse_comp_b"] @ combw[:H2, :]
             + params["fine_comp_b"] @ combw[H2:, :]
             + params["comb_b"])            # (H,)

    # --- fold each head's LN gamma/beta into its first Linear; batch heads ---
    w1k = jnp.transpose(heads["w1"], (0, 2, 1))             # (C, H, H2)
    w1s = heads["ln_g"][:, :, None] * w1k                    # gamma into rows
    w1_all = jnp.transpose(w1s, (1, 0, 2)).reshape(H, C * H2)
    b1_all = (heads["b1"]
              + jnp.einsum("ch,chk->ck", heads["ln_b"], w1k)).reshape(1, C * H2)

    tail = dict(
        wc=wc.astype(jnp.bfloat16),
        wf=wf.astype(jnp.bfloat16),
        cbias=cbias.reshape(1, H),
        w1=w1_all.astype(jnp.bfloat16),                      # (H, C*H2)
        b1=b1_all,                                           # (1, C*H2)
        w2=jnp.transpose(heads["w2"], (0, 2, 1)).astype(jnp.bfloat16),  # (C, H2, K)
        b2=heads["b2"].reshape(C, 1, K),
    )
    return dict(
        embedding=params["embedding"],
        pos_encoding=params["pos_encoding"],
        enc_layers=[prep_mamba(p) for p in params["enc_layers"]],
        enc_norm_g=params["enc_norm_g"].reshape(1, D),
        enc_norm_b=params["enc_norm_b"].reshape(1, D),
        coarse_layers=[prep_mamba(p) for p in params["coarse_layers"]],
        fine_layers=[prep_mamba(p) for p in params["fine_layers"]],
        tail=tail,
    )


# ----------------------------------------------------------------------------
if __name__ == "__main__":
    # small config consistent with the module (scaled-down E768H768Config);
    # D and K kept multiples of 128 so slices/stores stay lane-friendly.
    B, L_text = 2, 16
    hidden_dim = 128
    num_layers = 4
    expand = 1.5
    num_codebooks = 8
    codebook_size = 128
    vocab = 1000
    T = 24                         # target length (from target_tokens.shape[2])

    key = jax.random.PRNGKey(0)
    kp_key, kt, ktt = jax.random.split(key, 3)
    params = init_params(kp_key, vocab=vocab, hidden_dim=hidden_dim,
                         num_layers=num_layers, expand=expand,
                         num_codebooks=num_codebooks,
                         codebook_size=codebook_size)
    kparams = prepare_params(params)

    text_tokens = jax.random.randint(kt, (B, L_text), 0, vocab, dtype=jnp.int32)
    target_tokens = jax.random.randint(ktt, (B, num_codebooks, T), 0,
                                       codebook_size, dtype=jnp.int32)

    fwd = jax.jit(forward)
    logits = fwd(kparams, text_tokens, target_tokens)
    jax.block_until_ready(logits)
    assert logits.shape == (B, num_codebooks, T, codebook_size), logits.shape
    assert logits.dtype == jnp.float32
    print("KERNEL_OK")
</pallas_src>

<mosaic_0001>
module attributes {stable_mosaic.version = 11 : i64} {
  func.func @layernorm_kernel(%arg0: i32, %arg1: memref<32x128xf32, #tpu.memory_space<vmem>>, %arg2: memref<1x128xf32, #tpu.memory_space<vmem>>, %arg3: memref<1x128xf32, #tpu.memory_space<vmem>>, %arg4: memref<32x128xf32, #tpu.memory_space<vmem>>) attributes {dimension_semantics = [#tpu.dimension_semantics<parallel>], iteration_bounds = array<i64: 1>, scalar_prefetch = 0 : i64, scratch_operands = 0 : i64, tpu.core_type = #tpu.core_type<tc>, window_params = [{transform_indices = @transform_0, window_bounds = array<i64: 32, 128>}, {pipeline_mode = #tpu.pipeline_mode<synchronous>, transform_indices = @transform_1, window_bounds = array<i64: 1, 128>}, {pipeline_mode = #tpu.pipeline_mode<synchronous>, transform_indices = @transform_2, window_bounds = array<i64: 1, 128>}, {transform_indices = @transform_3, window_bounds = array<i64: 32, 128>}]} {
    %c0 = arith.constant 0 : index
    %c0_0 = arith.constant 0 : index
    %0 = vector.load %arg1[%c0, %c0_0] : memref<32x128xf32, #tpu.memory_space<vmem>>, vector<32x128xf32>
    %cst = arith.constant dense<0.000000e+00> : vector<32xf32>
    %1 = vector.multi_reduction <add>, %0, %cst [1] : vector<32x128xf32> to vector<32xf32>
    %2 = vector.shape_cast %1 : vector<32xf32> to vector<32x1xf32>
    %cst_1 = arith.constant 1.280000e+02 : f32
    %3 = vector.broadcast %cst_1 : f32 to vector<32x1xf32>
    %4 = arith.divf %2, %3 : vector<32x1xf32>
    %5 = vector.broadcast %4 : vector<32x1xf32> to vector<32x128xf32>
    %6 = arith.subf %0, %5 : vector<32x128xf32>
    %7 = arith.mulf %6, %6 : vector<32x128xf32>
    %cst_2 = arith.constant dense<0.000000e+00> : vector<32xf32>
    %8 = vector.multi_reduction <add>, %7, %cst_2 [1] : vector<32x128xf32> to vector<32xf32>
    %9 = vector.shape_cast %8 : vector<32xf32> to vector<32x1xf32>
    %cst_3 = arith.constant 1.280000e+02 : f32
    %10 = vector.broadcast %cst_3 : f32 to vector<32x1xf32>
    %11 = arith.divf %9, %10 : vector<32x1xf32>
    %cst_4 = arith.constant 9.99999974E-6 : f32
    %12 = vector.broadcast %cst_4 : f32 to vector<32x1xf32>
    %13 = arith.addf %11, %12 : vector<32x1xf32>
    %14 = math.rsqrt %13 : vector<32x1xf32>
    %15 = vector.broadcast %14 : vector<32x1xf32> to vector<32x128xf32>
    %16 = arith.mulf %6, %15 : vector<32x128xf32>
    %c0_5 = arith.constant 0 : index
    %c0_6 = arith.constant 0 : index
    %17 = vector.load %arg2[%c0_5, %c0_6] : memref<1x128xf32, #tpu.memory_space<vmem>>, vector<1x128xf32>
    %18 = vector.broadcast %17 : vector<1x128xf32> to vector<32x128xf32>
    %19 = arith.mulf %16, %18 : vector<32x128xf32>
    %c0_7 = arith.constant 0 : index
    %c0_8 = arith.constant 0 : index
    %20 = vector.load %arg3[%c0_7, %c0_8] : memref<1x128xf32, #tpu.memory_space<vmem>>, vector<1x128xf32>
    %21 = vector.broadcast %20 : vector<1x128xf32> to vector<32x128xf32>
    %22 = arith.addf %19, %21 : vector<32x128xf32>
    %c0_9 = arith.constant 0 : index
    %c0_10 = arith.constant 0 : index
    %23 = vector.load %arg4[%c0_9, %c0_10] : memref<32x128xf32, #tpu.memory_space<vmem>>, vector<32x128xf32>
    tpu.vector_store %arg4[%c0_9, %c0_10], %22 {strides = array<i32>} : memref<32x128xf32, #tpu.memory_space<vmem>>, vector<32x128xf32>,
    return
  }
  func.func @transform_0(%arg0: i32) -> (i32, i32) {
    %c0_i32 = arith.constant 0 : i32
    %c0_i32_0 = arith.constant 0 : i32
    return %arg0, %c0_i32 : i32, i32
  }
  func.func @transform_1(%arg0: i32) -> (i32, i32) {
    %c0_i32 = arith.constant 0 : i32
    %c0_i32_0 = arith.constant 0 : i32
    %c0_i32_1 = arith.constant 0 : i32
    return %c0_i32, %c0_i32_0 : i32, i32
  }
  func.func @transform_2(%arg0: i32) -> (i32, i32) {
    %c0_i32 = arith.constant 0 : i32
    %c0_i32_0 = arith.constant 0 : i32
    %c0_i32_1 = arith.constant 0 : i32
    return %c0_i32, %c0_i32_0 : i32, i32
  }
  func.func @transform_3(%arg0: i32) -> (i32, i32) {
    %c0_i32 = arith.constant 0 : i32
    %c0_i32_0 = arith.constant 0 : i32
    return %arg0, %c0_i32 : i32, i32
  }
}

module attributes {stable_mosaic.version = 11 : i64} {
  func.func @mamba_block_kernel(%arg0: i32, %arg1: i32, %arg2: memref<1x16x128xf32, #tpu.memory_space<vmem>>, %arg3: memref<1x1x2x128xf32, #tpu.memory_space<vmem>>, %arg4: memref<1x128xf32, #tpu.memory_space<vmem>>, %arg5: memref<1x128xf32, #tpu.memory_space<vmem>>, %arg6: memref<128x384xbf16, #tpu.memory_space<vmem>>, %arg7: memref<3x192xf32, #tpu.memory_space<vmem>>, %arg8: memref<192x192xbf16, #tpu.memory_space<vmem>>, %arg9: memref<1x192xf32, #tpu.memory_space<vmem>>, %arg10: memref<192x128xbf16, #tpu.memory_space<vmem>>, %arg11: memref<1x128xf32, #tpu.memory_space<vmem>>, %arg12: memref<1x16x128xf32, #tpu.memory_space<vmem>>) attributes {dimension_semantics = [#tpu.dimension_semantics<parallel>, #tpu.dimension_semantics<parallel>], iteration_bounds = array<i64: 2, 1>, scalar_prefetch = 0 : i64, scratch_operands = 0 : i64, tpu.core_type = #tpu.core_type<tc>, window_params = [{transform_indices = @transform_0, window_bounds = array<i64: 1, 16, 128>}, {transform_indices = @transform_1, window_bounds = array<i64: 1, 1, 2, 128>}, {pipeline_mode = #tpu.pipeline_mode<synchronous>, transform_indices = @transform_2, window_bounds = array<i64: 1, 128>}, {pipeline_mode = #tpu.pipeline_mode<synchronous>, transform_indices = @transform_3, window_bounds = array<i64: 1, 128>}, {pipeline_mode = #tpu.pipeline_mode<synchronous>, transform_indices = @transform_4, window_bounds = array<i64: 128, 384>}, {pipeline_mode = #tpu.pipeline_mode<synchronous>, transform_indices = @transform_5, window_bounds = array<i64: 3, 192>}, {pipeline_mode = #tpu.pipeline_mode<synchronous>, transform_indices = @transform_6, window_bounds = array<i64: 192, 192>}, {pipeline_mode = #tpu.pipeline_mode<synchronous>, transform_indices = @transform_7, window_bounds = array<i64: 1, 192>}, {pipeline_mode = #tpu.pipeline_mode<synchronous>, transform_indices = @transform_8, window_bounds = array<i64: 192, 128>}, {pipeline_mode = #tpu.pipeline_mode<synchronous>, transform_indices = @transform_9, window_bounds = array<i64: 1, 128>}, {transform_indices = @transform_10, window_bounds = array<i64: 1, 16, 128>}]} {
    %c0 = arith.constant 0 : index
    %c0_0 = arith.constant 0 : index
    %c0_1 = arith.constant 0 : index
    %0 = vector.load %arg2[%c0, %c0_0, %c0_1] : memref<1x16x128xf32, #tpu.memory_space<vmem>>, vector<1x16x128xf32>
    %1 = vector.shape_cast %0 : vector<1x16x128xf32> to vector<16x128xf32>
    %c0_2 = arith.constant 0 : index
    %c0_3 = arith.constant 0 : index
    %c0_4 = arith.constant 0 : index
    %c0_5 = arith.constant 0 : index
    %2 = vector.load %arg3[%c0_2, %c0_3, %c0_4, %c0_5] : memref<1x1x2x128xf32, #tpu.memory_space<vmem>>, vector<1x1x2x128xf32>
    %3 = vector.shape_cast %2 : vector<1x1x2x128xf32> to vector<2x128xf32>
    %4 = tpu.concatenate %1, %3 in 0 : vector<16x128xf32>, vector<2x128xf32> -> vector<18x128xf32>
    %cst = arith.constant dense<0.000000e+00> : vector<18xf32>
    %5 = vector.multi_reduction <add>, %4, %cst [1] : vector<18x128xf32> to vector<18xf32>
    %6 = vector.shape_cast %5 : vector<18xf32> to vector<18x1xf32>
    %cst_6 = arith.constant 1.280000e+02 : f32
    %7 = vector.broadcast %cst_6 : f32 to vector<18x1xf32>
    %8 = arith.divf %6, %7 : vector<18x1xf32>
    %9 = vector.broadcast %8 : vector<18x1xf32> to vector<18x128xf32>
    %10 = arith.subf %4, %9 : vector<18x128xf32>
    %11 = arith.mulf %10, %10 : vector<18x128xf32>
    %cst_7 = arith.constant dense<0.000000e+00> : vector<18xf32>
    %12 = vector.multi_reduction <add>, %11, %cst_7 [1] : vector<18x128xf32> to vector<18xf32>
    %13 = vector.shape_cast %12 : vector<18xf32> to vector<18x1xf32>
    %cst_8 = arith.constant 1.280000e+02 : f32
    %14 = vector.broadcast %cst_8 : f32 to vector<18x1xf32>
    %15 = arith.divf %13, %14 : vector<18x1xf32>
    %cst_9 = arith.constant 9.99999974E-6 : f32
    %16 = vector.broadcast %cst_9 : f32 to vector<18x1xf32>
    %17 = arith.addf %15, %16 : vector<18x1xf32>
    %18 = math.rsqrt %17 : vector<18x1xf32>
    %19 = vector.broadcast %18 : vector<18x1xf32> to vector<18x128xf32>
    %20 = arith.mulf %10, %19 : vector<18x128xf32>
    %c0_10 = arith.constant 0 : index
    %c0_11 = arith.constant 0 : index
    %21 = vector.load %arg4[%c0_10, %c0_11] : memref<1x128xf32, #tpu.memory_space<vmem>>, vector<1x128xf32>
    %22 = vector.broadcast %21 : vector<1x128xf32> to vector<18x128xf32>
    %23 = arith.mulf %20, %22 : vector<18x128xf32>
    %c0_12 = arith.constant 0 : index
    %c0_13 = arith.constant 0 : index
    %24 = vector.load %arg5[%c0_12, %c0_13] : memref<1x128xf32, #tpu.memory_space<vmem>>, vector<1x128xf32>
    %25 = vector.broadcast %24 : vector<1x128xf32> to vector<18x128xf32>
    %26 = arith.addf %23, %25 : vector<18x128xf32>
    %27 = arith.truncf %26 : vector<18x128xf32> to vector<18x128xbf16>
    %c0_14 = arith.constant 0 : index
    %c0_15 = arith.constant 0 : index
    %28 = vector.load %arg6[%c0_14, %c0_15] : memref<128x384xbf16, #tpu.memory_space<vmem>>, vector<128x384xbf16>
    %cst_16 = arith.constant dense<0.000000e+00> : vector<18x384xf32>
    %29 = tpu.matmul %27, %28, %cst_16 {dimension_numbers = #tpu.dot_dimension_numbers<[1], [0], [0], [1], [0, 0, 1, 1], [], []>} : vector<18x128xbf16>, vector<128x384xbf16>, vector<18x384xf32> -> vector<18x384xf32>
    %30 = vector.extract_strided_slice %29 {offsets = [0, 0], sizes = [16, 192], strides = [1, 1]} : vector<18x384xf32> to vector<16x192xf32>
    %31 = vector.extract_strided_slice %29 {offsets = [0, 192], sizes = [16, 192], strides = [1, 1]} : vector<18x384xf32> to vector<16x192xf32>
    %c0_i32 = arith.constant 0 : i32
    %32 = arith.cmpi sgt, %arg1, %c0_i32 : i32
    %33 = arith.extui %32 : i1 to i32
    %34 = arith.sitofp %33 : i32 to f32
    %c0_i32_17 = arith.constant 0 : i32
    %35 = arith.cmpi slt, %arg1, %c0_i32_17 : i32
    %36 = arith.extui %35 : i1 to i32
    %37 = arith.sitofp %36 : i32 to f32
    %38 = vector.extract_strided_slice %29 {offsets = [16, 0], sizes = [1, 192], strides = [1, 1]} : vector<18x384xf32> to vector<1x192xf32>
    %39 = vector.broadcast %34 : f32 to vector<1x192xf32>
    %40 = arith.mulf %38, %39 : vector<1x192xf32>
    %41 = vector.extract_strided_slice %29 {offsets = [17, 0], sizes = [1, 192], strides = [1, 1]} : vector<18x384xf32> to vector<1x192xf32>
    %42 = vector.broadcast %37 : f32 to vector<1x192xf32>
    %43 = arith.mulf %41, %42 : vector<1x192xf32>
    %44 = vector.extract_strided_slice %30 {offsets = [0, 0], sizes = [15, 192], strides = [1, 1]} : vector<16x192xf32> to vector<15x192xf32>
    %45 = tpu.concatenate %40, %44 in 0 : vector<1x192xf32>, vector<15x192xf32> -> vector<16x192xf32>
    %46 = vector.extract_strided_slice %30 {offsets = [1, 0], sizes = [15, 192], strides = [1, 1]} : vector<16x192xf32> to vector<15x192xf32>
    %47 = tpu.concatenate %46, %43 in 0 : vector<15x192xf32>, vector<1x192xf32> -> vector<16x192xf32>
    %c0_18 = arith.constant 0 : index
    %c0_19 = arith.constant 0 : index
    %48 = vector.load %arg7[%c0_18, %c0_19] : memref<3x192xf32, #tpu.memory_space<vmem>>, vector<3x192xf32>
    %49 = vector.extract_strided_slice %48 {offsets = [0, 0], sizes = [1, 192], strides = [1, 1]} : vector<3x192xf32> to vector<1x192xf32>
    %50 = vector.broadcast %49 : vector<1x192xf32> to vector<16x192xf32>
    %51 = arith.mulf %45, %50 : vector<16x192xf32>
    %52 = vector.extract_strided_slice %48 {offsets = [1, 0], sizes = [1, 192], strides = [1, 1]} : vector<3x192xf32> to vector<1x192xf32>
    %53 = vector.broadcast %52 : vector<1x192xf32> to vector<16x192xf32>
    %54 = arith.mulf %30, %53 : vector<16x192xf32>
    %55 = arith.addf %51, %54 : vector<16x192xf32>
    %56 = vector.extract_strided_slice %48 {offsets = [2, 0], sizes = [1, 192], strides = [1, 1]} : vector<3x192xf32> to vector<1x192xf32>
    %57 = vector.broadcast %56 : vector<1x192xf32> to vector<16x192xf32>
    %58 = arith.mulf %47, %57 : vector<16x192xf32>
    %59 = arith.addf %55, %58 : vector<16x192xf32>
    %cst_20 = arith.constant 0.000000e+00 : f32
    %60 = vector.broadcast %cst_20 : f32 to vector<16x192xf32>
    %61 = arith.subf %60, %59 : vector<16x192xf32>
    %62 = math.exp %61 : vector<16x192xf32>
    %cst_21 = arith.constant 1.000000e+00 : f32
    %63 = vector.broadcast %cst_21 : f32 to vector<16x192xf32>
    %64 = arith.addf %63, %62 : vector<16x192xf32>
    %cst_22 = arith.constant 1.000000e+00 : f32
    %65 = vector.broadcast %cst_22 : f32 to vector<16x192xf32>
    %66 = arith.divf %65, %64 : vector<16x192xf32>
    %67 = arith.mulf %59, %66 : vector<16x192xf32>
    %68 = arith.truncf %67 : vector<16x192xf32> to vector<16x192xbf16>
    %c0_23 = arith.constant 0 : index
    %c0_24 = arith.constant 0 : index
    %69 = vector.load %arg8[%c0_23, %c0_24] : memref<192x192xbf16, #tpu.memory_space<vmem>>, vector<192x192xbf16>
    %cst_25 = arith.constant dense<0.000000e+00> : vector<16x192xf32>
    %70 = tpu.matmul %68, %69, %cst_25 {dimension_numbers = #tpu.dot_dimension_numbers<[1], [0], [0], [1], [0, 0, 1, 1], [], []>} : vector<16x192xbf16>, vector<192x192xbf16>, vector<16x192xf32> -> vector<16x192xf32>
    %c0_26 = arith.constant 0 : index
    %c0_27 = arith.constant 0 : index
    %71 = vector.load %arg9[%c0_26, %c0_27] : memref<1x192xf32, #tpu.memory_space<vmem>>, vector<1x192xf32>
    %72 = vector.broadcast %71 : vector<1x192xf32> to vector<16x192xf32>
    %73 = arith.addf %70, %72 : vector<16x192xf32>
    %cst_28 = arith.constant 0.000000e+00 : f32
    %74 = vector.broadcast %cst_28 : f32 to vector<16x192xf32>
    %75 = arith.maximumf %73, %74 : vector<16x192xf32>
    %76 = math.absf %73 : vector<16x192xf32>
    %cst_29 = arith.constant 0.000000e+00 : f32
    %77 = vector.broadcast %cst_29 : f32 to vector<16x192xf32>
    %78 = arith.subf %77, %76 : vector<16x192xf32>
    %79 = math.exp %78 : vector<16x192xf32>
    %cst_30 = arith.constant 1.000000e+00 : f32
    %80 = vector.broadcast %cst_30 : f32 to vector<16x192xf32>
    %81 = arith.addf %80, %79 : vector<16x192xf32>
    %82 = math.log %81 : vector<16x192xf32>
    %83 = arith.addf %75, %82 : vector<16x192xf32>
    %cst_31 = arith.constant 0.000000e+00 : f32
    %84 = vector.broadcast %cst_31 : f32 to vector<16x192xf32>
    %85 = arith.subf %84, %83 : vector<16x192xf32>
    %86 = math.exp %85 : vector<16x192xf32>
    %cst_32 = arith.constant 1.000000e+00 : f32
    %87 = vector.broadcast %cst_32 : f32 to vector<16x192xf32>
    %88 = arith.addf %87, %86 : vector<16x192xf32>
    %cst_33 = arith.constant 1.000000e+00 : f32
    %89 = vector.broadcast %cst_33 : f32 to vector<16x192xf32>
    %90 = arith.divf %89, %88 : vector<16x192xf32>
    %91 = arith.mulf %67, %90 : vector<16x192xf32>
    %cst_34 = arith.constant 0.000000e+00 : f32
    %92 = vector.broadcast %cst_34 : f32 to vector<16x192xf32>
    %93 = arith.subf %92, %31 : vector<16x192xf32>
    %94 = math.exp %93 : vector<16x192xf32>
    %cst_35 = arith.constant 1.000000e+00 : f32
    %95 = vector.broadcast %cst_35 : f32 to vector<16x192xf32>
    %96 = arith.addf %95, %94 : vector<16x192xf32>
    %cst_36 = arith.constant 1.000000e+00 : f32
    %97 = vector.broadcast %cst_36 : f32 to vector<16x192xf32>
    %98 = arith.divf %97, %96 : vector<16x192xf32>
    %99 = arith.mulf %91, %98 : vector<16x192xf32>
    %100 = arith.truncf %99 : vector<16x192xf32> to vector<16x192xbf16>
    %c0_37 = arith.constant 0 : index
    %c0_38 = arith.constant 0 : index
    %101 = vector.load %arg10[%c0_37, %c0_38] : memref<192x128xbf16, #tpu.memory_space<vmem>>, vector<192x128xbf16>
    %cst_39 = arith.constant dense<0.000000e+00> : vector<16x128xf32>
    %102 = tpu.matmul %100, %101, %cst_39 {dimension_numbers = #tpu.dot_dimension_numbers<[1], [0], [0], [1], [0, 0, 1, 1], [], []>} : vector<16x192xbf16>, vector<192x128xbf16>, vector<16x128xf32> -> vector<16x128xf32>
    %c0_40 = arith.constant 0 : index
    %c0_41 = arith.constant 0 : index
    %103 = vector.load %arg11[%c0_40, %c0_41] : memref<1x128xf32, #tpu.memory_space<vmem>>, vector<1x128xf32>
    %104 = vector.broadcast %103 : vector<1x128xf32> to vector<16x128xf32>
    %105 = arith.mulf %102, %104 : vector<16x128xf32>
    %106 = arith.addf %105, %1 : vector<16x128xf32>
    %c0_42 = arith.constant 0 : index
    %c0_43 = arith.constant 0 : index
    %c0_44 = arith.constant 0 : index
    %107 = vector.load %arg12[%c0_42, %c0_43, %c0_44] : memref<1x16x128xf32, #tpu.memory_space<vmem>>, vector<1x16x128xf32>
    %108 = vector.shape_cast %107 : vector<1x16x128xf32> to vector<16x128xf32>
    %109 = vector.shape_cast %106 : vector<16x128xf32> to vector<1x16x128xf32>
    tpu.vector_store %arg12[%c0_42, %c0_43, %c0_44], %109 {strides = array<i32>} : memref<1x16x128xf32, #tpu.memory_space<vmem>>, vector<1x16x128xf32>,
    return
  }
  func.func @transform_0(%arg0: i32, %arg1: i32) -> (i32, i32, i32) {
    %c0_i32 = arith.constant 0 : i32
    %c0_i32_0 = arith.constant 0 : i32
    return %arg0, %arg1, %c0_i32 : i32, i32, i32
  }
  func.func @transform_1(%arg0: i32, %arg1: i32) -> (i32, i32, i32, i32) {
    %c0_i32 = arith.constant 0 : i32
    %c0_i32_0 = arith.constant 0 : i32
    %c0_i32_1 = arith.constant 0 : i32
    return %arg0, %arg1, %c0_i32, %c0_i32_0 : i32, i32, i32, i32
  }
  func.func @transform_2(%arg0: i32, %arg1: i32) -> (i32, i32) {
    %c0_i32 = arith.constant 0 : i32
    %c0_i32_0 = arith.constant 0 : i32
    %c0_i32_1 = arith.constant 0 : i32
    return %c0_i32, %c0_i32_0 : i32, i32
  }
  func.func @transform_3(%arg0: i32, %arg1: i32) -> (i32, i32) {
    %c0_i32 = arith.constant 0 : i32
    %c0_i32_0 = arith.constant 0 : i32
    %c0_i32_1 = arith.constant 0 : i32
    return %c0_i32, %c0_i32_0 : i32, i32
  }
  func.func @transform_4(%arg0: i32, %arg1: i32) -> (i32, i32) {
    %c0_i32 = arith.constant 0 : i32
    %c0_i32_0 = arith.constant 0 : i32
    %c0_i32_1 = arith.constant 0 : i32
    return %c0_i32, %c0_i32_0 : i32, i32
  }
  func.func @transform_5(%arg0: i32, %arg1: i32) -> (i32, i32) {
    %c0_i32 = arith.constant 0 : i32
    %c0_i32_0 = arith.constant 0 : i32
    %c0_i32_1 = arith.constant 0 : i32
    return %c0_i32, %c0_i32_0 : i32, i32
  }
  func.func @transform_6(%arg0: i32, %arg1: i32) -> (i32, i32) {
    %c0_i32 = arith.constant 0 : i32
    %c0_i32_0 = arith.constant 0 : i32
    %c0_i32_1 = arith.constant 0 : i32
    return %c0_i32, %c0_i32_0 : i32, i32
  }
  func.func @transform_7(%arg0: i32, %arg1: i32) -> (i32, i32) {
    %c0_i32 = arith.constant 0 : i32
    %c0_i32_0 = arith.constant 0 : i32
    %c0_i32_1 = arith.constant 0 : i32
    return %c0_i32, %c0_i32_0 : i32, i32
  }
  func.func @transform_8(%arg0: i32, %arg1: i32) -> (i32, i32) {
    %c0_i32 = arith.constant 0 : i32
    %c0_i32_0 = arith.constant 0 : i32
    %c0_i32_1 = arith.constant 0 : i32
    return %c0_i32, %c0_i32_0 : i32, i32
  }
  func.func @transform_9(%arg0: i32, %arg1: i32) -> (i32, i32) {
    %c0_i32 = arith.constant 0 : i32
    %c0_i32_0 = arith.constant 0 : i32
    %c0_i32_1 = arith.constant 0 : i32
    return %c0_i32, %c0_i32_0 : i32, i32
  }
  func.func @transform_10(%arg0: i32, %arg1: i32) -> (i32, i32, i32) {
    %c0_i32 = arith.constant 0 : i32
    %c0_i32_0 = arith.constant 0 : i32
    return %arg0, %arg1, %c0_i32 : i32, i32, i32
  }
}

module attributes {stable_mosaic.version = 11 : i64} {
  func.func @mamba_block_kernel(%arg0: i32, %arg1: i32, %arg2: memref<1x16x128xf32, #tpu.memory_space<vmem>>, %arg3: memref<1x1x2x128xf32, #tpu.memory_space<vmem>>, %arg4: memref<1x128xf32, #tpu.memory_space<vmem>>, %arg5: memref<1x128xf32, #tpu.memory_space<vmem>>, %arg6: memref<128x384xbf16, #tpu.memory_space<vmem>>, %arg7: memref<3x192xf32, #tpu.memory_space<vmem>>, %arg8: memref<192x192xbf16, #tpu.memory_space<vmem>>, %arg9: memref<1x192xf32, #tpu.memory_space<vmem>>, %arg10: memref<192x128xbf16, #tpu.memory_space<vmem>>, %arg11: memref<1x128xf32, #tpu.memory_space<vmem>>, %arg12: memref<1x16x128xf32, #tpu.memory_space<vmem>>) attributes {dimension_semantics = [#tpu.dimension_semantics<parallel>, #tpu.dimension_semantics<parallel>], iteration_bounds = array<i64: 2, 1>, scalar_prefetch = 0 : i64, scratch_operands = 0 : i64, tpu.core_type = #tpu.core_type<tc>, window_params = [{transform_indices = @transform_0, window_bounds = array<i64: 1, 16, 128>}, {transform_indices = @transform_1, window_bounds = array<i64: 1, 1, 2, 128>}, {pipeline_mode = #tpu.pipeline_mode<synchronous>, transform_indices = @transform_2, window_bounds = array<i64: 1, 128>}, {pipeline_mode = #tpu.pipeline_mode<synchronous>, transform_indices = @transform_3, window_bounds = array<i64: 1, 128>}, {pipeline_mode = #tpu.pipeline_mode<synchronous>, transform_indices = @transform_4, window_bounds = array<i64: 128, 384>}, {pipeline_mode = #tpu.pipeline_mode<synchronous>, transform_indices = @transform_5, window_bounds = array<i64: 3, 192>}, {pipeline_mode = #tpu.pipeline_mode<synchronous>, transform_indices = @transform_6, window_bounds = array<i64: 192, 192>}, {pipeline_mode = #tpu.pipeline_mode<synchronous>, transform_indices = @transform_7, window_bounds = array<i64: 1, 192>}, {pipeline_mode = #tpu.pipeline_mode<synchronous>, transform_indices = @transform_8, window_bounds = array<i64: 192, 128>}, {pipeline_mode = #tpu.pipeline_mode<synchronous>, transform_indices = @transform_9, window_bounds = array<i64: 1, 128>}, {transform_indices = @transform_10, window_bounds = array<i64: 1, 16, 128>}]} {
    %c0 = arith.constant 0 : index
    %c0_0 = arith.constant 0 : index
    %c0_1 = arith.constant 0 : index
    %0 = vector.load %arg2[%c0, %c0_0, %c0_1] : memref<1x16x128xf32, #tpu.memory_space<vmem>>, vector<1x16x128xf32>
    %1 = vector.shape_cast %0 : vector<1x16x128xf32> to vector<16x128xf32>
    %c0_2 = arith.constant 0 : index
    %c0_3 = arith.constant 0 : index
    %c0_4 = arith.constant 0 : index
    %c0_5 = arith.constant 0 : index
    %2 = vector.load %arg3[%c0_2, %c0_3, %c0_4, %c0_5] : memref<1x1x2x128xf32, #tpu.memory_space<vmem>>, vector<1x1x2x128xf32>
    %3 = vector.shape_cast %2 : vector<1x1x2x128xf32> to vector<2x128xf32>
    %4 = tpu.concatenate %1, %3 in 0 : vector<16x128xf32>, vector<2x128xf32> -> vector<18x128xf32>
    %cst = arith.constant dense<0.000000e+00> : vector<18xf32>
    %5 = vector.multi_reduction <add>, %4, %cst [1] : vector<18x128xf32> to vector<18xf32>
    %6 = vector.shape_cast %5 : vector<18xf32> to vector<18x1xf32>
    %cst_6 = arith.constant 1.280000e+02 : f32
    %7 = vector.broadcast %cst_6 : f32 to vector<18x1xf32>
    %8 = arith.divf %6, %7 : vector<18x1xf32>
    %9 = vector.broadcast %8 : vector<18x1xf32> to vector<18x128xf32>
    %10 = arith.subf %4, %9 : vector<18x128xf32>
    %11 = arith.mulf %10, %10 : vector<18x128xf32>
    %cst_7 = arith.constant dense<0.000000e+00> : vector<18xf32>
    %12 = vector.multi_reduction <add>, %11, %cst_7 [1] : vector<18x128xf32> to vector<18xf32>
    %13 = vector.shape_cast %12 : vector<18xf32> to vector<18x1xf32>
    %cst_8 = arith.constant 1.280000e+02 : f32
    %14 = vector.broadcast %cst_8 : f32 to vector<18x1xf32>
    %15 = arith.divf %13, %14 : vector<18x1xf32>
    %cst_9 = arith.constant 9.99999974E-6 : f32
    %16 = vector.broadcast %cst_9 : f32 to vector<18x1xf32>
    %17 = arith.addf %15, %16 : vector<18x1xf32>
    %18 = math.rsqrt %17 : vector<18x1xf32>
    %19 = vector.broadcast %18 : vector<18x1xf32> to vector<18x128xf32>
    %20 = arith.mulf %10, %19 : vector<18x128xf32>
    %c0_10 = arith.constant 0 : index
    %c0_11 = arith.constant 0 : index
    %21 = vector.load %arg4[%c0_10, %c0_11] : memref<1x128xf32, #tpu.memory_space<vmem>>, vector<1x128xf32>
    %22 = vector.broadcast %21 : vector<1x128xf32> to vector<18x128xf32>
    %23 = arith.mulf %20, %22 : vector<18x128xf32>
    %c0_12 = arith.constant 0 : index
    %c0_13 = arith.constant 0 : index
    %24 = vector.load %arg5[%c0_12, %c0_13] : memref<1x128xf32, #tpu.memory_space<vmem>>, vector<1x128xf32>
    %25 = vector.broadcast %24 : vector<1x128xf32> to vector<18x128xf32>
    %26 = arith.addf %23, %25 : vector<18x128xf32>
    %27 = arith.truncf %26 : vector<18x128xf32> to vector<18x128xbf16>
    %c0_14 = arith.constant 0 : index
    %c0_15 = arith.constant 0 : index
    %28 = vector.load %arg6[%c0_14, %c0_15] : memref<128x384xbf16, #tpu.memory_space<vmem>>, vector<128x384xbf16>
    %cst_16 = arith.constant dense<0.000000e+00> : vector<18x384xf32>
    %29 = tpu.matmul %27, %28, %cst_16 {dimension_numbers = #tpu.dot_dimension_numbers<[1], [0], [0], [1], [0, 0, 1, 1], [], []>} : vector<18x128xbf16>, vector<128x384xbf16>, vector<18x384xf32> -> vector<18x384xf32>
    %30 = vector.extract_strided_slice %29 {offsets = [0, 0], sizes = [16, 192], strides = [1, 1]} : vector<18x384xf32> to vector<16x192xf32>
    %31 = vector.extract_strided_slice %29 {offsets = [0, 192], sizes = [16, 192], strides = [1, 1]} : vector<18x384xf32> to vector<16x192xf32>
    %c0_i32 = arith.constant 0 : i32
    %32 = arith.cmpi sgt, %arg1, %c0_i32 : i32
    %33 = arith.extui %32 : i1 to i32
    %34 = arith.sitofp %33 : i32 to f32
    %c0_i32_17 = arith.constant 0 : i32
    %35 = arith.cmpi slt, %arg1, %c0_i32_17 : i32
    %36 = arith.extui %35 : i1 to i32
    %37 = arith.sitofp %36 : i32 to f32
    %38 = vector.extract_strided_slice %29 {offsets = [16, 0], sizes = [1, 192], strides = [1, 1]} : vector<18x384xf32> to vector<1x192xf32>
    %39 = vector.broadcast %34 : f32 to vector<1x192xf32>
    %40 = arith.mulf %38, %39 : vector<1x192xf32>
    %41 = vector.extract_strided_slice %29 {offsets = [17, 0], sizes = [1, 192], strides = [1, 1]} : vector<18x384xf32> to vector<1x192xf32>
    %42 = vector.broadcast %37 : f32 to vector<1x192xf32>
    %43 = arith.mulf %41, %42 : vector<1x192xf32>
    %44 = vector.extract_strided_slice %30 {offsets = [0, 0], sizes = [15, 192], strides = [1, 1]} : vector<16x192xf32> to vector<15x192xf32>
    %45 = tpu.concatenate %40, %44 in 0 : vector<1x192xf32>, vector<15x192xf32> -> vector<16x192xf32>
    %46 = vector.extract_strided_slice %30 {offsets = [1, 0], sizes = [15, 192], strides = [1, 1]} : vector<16x192xf32> to vector<15x192xf32>
    %47 = tpu.concatenate %46, %43 in 0 : vector<15x192xf32>, vector<1x192xf32> -> vector<16x192xf32>
    %c0_18 = arith.constant 0 : index
    %c0_19 = arith.constant 0 : index
    %48 = vector.load %arg7[%c0_18, %c0_19] : memref<3x192xf32, #tpu.memory_space<vmem>>, vector<3x192xf32>
    %49 = vector.extract_strided_slice %48 {offsets = [0, 0], sizes = [1, 192], strides = [1, 1]} : vector<3x192xf32> to vector<1x192xf32>
    %50 = vector.broadcast %49 : vector<1x192xf32> to vector<16x192xf32>
    %51 = arith.mulf %45, %50 : vector<16x192xf32>
    %52 = vector.extract_strided_slice %48 {offsets = [1, 0], sizes = [1, 192], strides = [1, 1]} : vector<3x192xf32> to vector<1x192xf32>
    %53 = vector.broadcast %52 : vector<1x192xf32> to vector<16x192xf32>
    %54 = arith.mulf %30, %53 : vector<16x192xf32>
    %55 = arith.addf %51, %54 : vector<16x192xf32>
    %56 = vector.extract_strided_slice %48 {offsets = [2, 0], sizes = [1, 192], strides = [1, 1]} : vector<3x192xf32> to vector<1x192xf32>
    %57 = vector.broadcast %56 : vector<1x192xf32> to vector<16x192xf32>
    %58 = arith.mulf %47, %57 : vector<16x192xf32>
    %59 = arith.addf %55, %58 : vector<16x192xf32>
    %cst_20 = arith.constant 0.000000e+00 : f32
    %60 = vector.broadcast %cst_20 : f32 to vector<16x192xf32>
    %61 = arith.subf %60, %59 : vector<16x192xf32>
    %62 = math.exp %61 : vector<16x192xf32>
    %cst_21 = arith.constant 1.000000e+00 : f32
    %63 = vector.broadcast %cst_21 : f32 to vector<16x192xf32>
    %64 = arith.addf %63, %62 : vector<16x192xf32>
    %cst_22 = arith.constant 1.000000e+00 : f32
    %65 = vector.broadcast %cst_22 : f32 to vector<16x192xf32>
    %66 = arith.divf %65, %64 : vector<16x192xf32>
    %67 = arith.mulf %59, %66 : vector<16x192xf32>
    %68 = arith.truncf %67 : vector<16x192xf32> to vector<16x192xbf16>
    %c0_23 = arith.constant 0 : index
    %c0_24 = arith.constant 0 : index
    %69 = vector.load %arg8[%c0_23, %c0_24] : memref<192x192xbf16, #tpu.memory_space<vmem>>, vector<192x192xbf16>
    %cst_25 = arith.constant dense<0.000000e+00> : vector<16x192xf32>
    %70 = tpu.matmul %68, %69, %cst_25 {dimension_numbers = #tpu.dot_dimension_numbers<[1], [0], [0], [1], [0, 0, 1, 1], [], []>} : vector<16x192xbf16>, vector<192x192xbf16>, vector<16x192xf32> -> vector<16x192xf32>
    %c0_26 = arith.constant 0 : index
    %c0_27 = arith.constant 0 : index
    %71 = vector.load %arg9[%c0_26, %c0_27] : memref<1x192xf32, #tpu.memory_space<vmem>>, vector<1x192xf32>
    %72 = vector.broadcast %71 : vector<1x192xf32> to vector<16x192xf32>
    %73 = arith.addf %70, %72 : vector<16x192xf32>
    %cst_28 = arith.constant 0.000000e+00 : f32
    %74 = vector.broadcast %cst_28 : f32 to vector<16x192xf32>
    %75 = arith.maximumf %73, %74 : vector<16x192xf32>
    %76 = math.absf %73 : vector<16x192xf32>
    %cst_29 = arith.constant 0.000000e+00 : f32
    %77 = vector.broadcast %cst_29 : f32 to vector<16x192xf32>
    %78 = arith.subf %77, %76 : vector<16x192xf32>
    %79 = math.exp %78 : vector<16x192xf32>
    %cst_30 = arith.constant 1.000000e+00 : f32
    %80 = vector.broadcast %cst_30 : f32 to vector<16x192xf32>
    %81 = arith.addf %80, %79 : vector<16x192xf32>
    %82 = math.log %81 : vector<16x192xf32>
    %83 = arith.addf %75, %82 : vector<16x192xf32>
    %cst_31 = arith.constant 0.000000e+00 : f32
    %84 = vector.broadcast %cst_31 : f32 to vector<16x192xf32>
    %85 = arith.subf %84, %83 : vector<16x192xf32>
    %86 = math.exp %85 : vector<16x192xf32>
    %cst_32 = arith.constant 1.000000e+00 : f32
    %87 = vector.broadcast %cst_32 : f32 to vector<16x192xf32>
    %88 = arith.addf %87, %86 : vector<16x192xf32>
    %cst_33 = arith.constant 1.000000e+00 : f32
    %89 = vector.broadcast %cst_33 : f32 to vector<16x192xf32>
    %90 = arith.divf %89, %88 : vector<16x192xf32>
    %91 = arith.mulf %67, %90 : vector<16x192xf32>
    %cst_34 = arith.constant 0.000000e+00 : f32
    %92 = vector.broadcast %cst_34 : f32 to vector<16x192xf32>
    %93 = arith.subf %92, %31 : vector<16x192xf32>
    %94 = math.exp %93 : vector<16x192xf32>
    %cst_35 = arith.constant 1.000000e+00 : f32
    %95 = vector.broadcast %cst_35 : f32 to vector<16x192xf32>
    %96 = arith.addf %95, %94 : vector<16x192xf32>
    %cst_36 = arith.constant 1.000000e+00 : f32
    %97 = vector.broadcast %cst_36 : f32 to vector<16x192xf32>
    %98 = arith.divf %97, %96 : vector<16x192xf32>
    %99 = arith.mulf %91, %98 : vector<16x192xf32>
    %100 = arith.truncf %99 : vector<16x192xf32> to vector<16x192xbf16>
    %c0_37 = arith.constant 0 : index
    %c0_38 = arith.constant 0 : index
    %101 = vector.load %arg10[%c0_37, %c0_38] : memref<192x128xbf16, #tpu.memory_space<vmem>>, vector<192x128xbf16>
    %cst_39 = arith.constant dense<0.000000e+00> : vector<16x128xf32>
    %102 = tpu.matmul %100, %101, %cst_39 {dimension_numbers = #tpu.dot_dimension_numbers<[1], [0], [0], [1], [0, 0, 1, 1], [], []>} : vector<16x192xbf16>, vector<192x128xbf16>, vector<16x128xf32> -> vector<16x128xf32>
    %c0_40 = arith.constant 0 : index
    %c0_41 = arith.constant 0 : index
    %103 = vector.load %arg11[%c0_40, %c0_41] : memref<1x128xf32, #tpu.memory_space<vmem>>, vector<1x128xf32>
    %104 = vector.broadcast %103 : vector<1x128xf32> to vector<16x128xf32>
    %105 = arith.mulf %102, %104 : vector<16x128xf32>
    %106 = arith.addf %105, %1 : vector<16x128xf32>
    %c0_42 = arith.constant 0 : index
    %c0_43 = arith.constant 0 : index
    %c0_44 = arith.constant 0 : index
    %107 = vector.load %arg12[%c0_42, %c0_43, %c0_44] : memref<1x16x128xf32, #tpu.memory_space<vmem>>, vector<1x16x128xf32>
    %108 = vector.shape_cast %107 : vector<1x16x128xf32> to vector<16x128xf32>
    %109 = vector.shape_cast %106 : vector<16x128xf32> to vector<1x16x128xf32>
    tpu.vector_store %arg12[%c0_42, %c0_43, %c0_44], %109 {strides = array<i32>} : memref<1x16x128xf32, #tpu.memory_space<vmem>>, vector<1x16x128xf32>,
    return
  }
  func.func @transform_0(%arg0: i32, %arg1: i32) -> (i32, i32, i32) {
    %c0_i32 = arith.constant 0 : i32
    %c0_i32_0 = arith.constant 0 : i32
    return %arg0, %arg1, %c0_i32 : i32, i32, i32
  }
  func.func @transform_1(%arg0: i32, %arg1: i32) -> (i32, i32, i32, i32) {
    %c0_i32 = arith.constant 0 : i32
    %c0_i32_0 = arith.constant 0 : i32
    %c0_i32_1 = arith.constant 0 : i32
    return %arg0, %arg1, %c0_i32, %c0_i32_0 : i32, i32, i32, i32
  }
  func.func @transform_2(%arg0: i32, %arg1: i32) -> (i32, i32) {
    %c0_i32 = arith.constant 0 : i32
    %c0_i32_0 = arith.constant 0 : i32
    %c0_i32_1 = arith.constant 0 : i32
    return %c0_i32, %c0_i32_0 : i32, i32
  }
  func.func @transform_3(%arg0: i32, %arg1: i32) -> (i32, i32) {
    %c0_i32 = arith.constant 0 : i32
    %c0_i32_0 = arith.constant 0 : i32
    %c0_i32_1 = arith.constant 0 : i32
    return %c0_i32, %c0_i32_0 : i32, i32
  }
  func.func @transform_4(%arg0: i32, %arg1: i32) -> (i32, i32) {
    %c0_i32 = arith.constant 0 : i32
    %c0_i32_0 = arith.constant 0 : i32
    %c0_i32_1 = arith.constant 0 : i32
    return %c0_i32, %c0_i32_0 : i32, i32
  }
  func.func @transform_5(%arg0: i32, %arg1: i32) -> (i32, i32) {
    %c0_i32 = arith.constant 0 : i32
    %c0_i32_0 = arith.constant 0 : i32
    %c0_i32_1 = arith.constant 0 : i32
    return %c0_i32, %c0_i32_0 : i32, i32
  }
  func.func @transform_6(%arg0: i32, %arg1: i32) -> (i32, i32) {
    %c0_i32 = arith.constant 0 : i32
    %c0_i32_0 = arith.constant 0 : i32
    %c0_i32_1 = arith.constant 0 : i32
    return %c0_i32, %c0_i32_0 : i32, i32
  }
  func.func @transform_7(%arg0: i32, %arg1: i32) -> (i32, i32) {
    %c0_i32 = arith.constant 0 : i32
    %c0_i32_0 = arith.constant 0 : i32
    %c0_i32_1 = arith.constant 0 : i32
    return %c0_i32, %c0_i32_0 : i32, i32
  }
  func.func @transform_8(%arg0: i32, %arg1: i32) -> (i32, i32) {
    %c0_i32 = arith.constant 0 : i32
    %c0_i32_0 = arith.constant 0 : i32
    %c0_i32_1 = arith.constant 0 : i32
    return %c0_i32, %c0_i32_0 : i32, i32
  }
  func.func @transform_9(%arg0: i32, %arg1: i32) -> (i32, i32) {
    %c0_i32 = arith.constant 0 : i32
    %c0_i32_0 = arith.constant 0 : i32
    %c0_i32_1 = arith.constant 0 : i32
    return %c0_i32, %c0_i32_0 : i32, i32
  }
  func.func @transform_10(%arg0: i32, %arg1: i32) -> (i32, i32, i32) {
    %c0_i32 = arith.constant 0 : i32
    %c0_i32_0 = arith.constant 0 : i32
    return %arg0, %arg1, %c0_i32 : i32, i32, i32
  }
}

module attributes {stable_mosaic.version = 11 : i64} {
  func.func @mamba_block_kernel(%arg0: i32, %arg1: i32, %arg2: memref<1x24x128xf32, #tpu.memory_space<vmem>>, %arg3: memref<1x1x2x128xf32, #tpu.memory_space<vmem>>, %arg4: memref<1x128xf32, #tpu.memory_space<vmem>>, %arg5: memref<1x128xf32, #tpu.memory_space<vmem>>, %arg6: memref<128x384xbf16, #tpu.memory_space<vmem>>, %arg7: memref<3x192xf32, #tpu.memory_space<vmem>>, %arg8: memref<192x192xbf16, #tpu.memory_space<vmem>>, %arg9: memref<1x192xf32, #tpu.memory_space<vmem>>, %arg10: memref<192x128xbf16, #tpu.memory_space<vmem>>, %arg11: memref<1x128xf32, #tpu.memory_space<vmem>>, %arg12: memref<1x24x128xf32, #tpu.memory_space<vmem>>) attributes {dimension_semantics = [#tpu.dimension_semantics<parallel>, #tpu.dimension_semantics<parallel>], iteration_bounds = array<i64: 2, 1>, scalar_prefetch = 0 : i64, scratch_operands = 0 : i64, tpu.core_type = #tpu.core_type<tc>, window_params = [{transform_indices = @transform_0, window_bounds = array<i64: 1, 24, 128>}, {transform_indices = @transform_1, window_bounds = array<i64: 1, 1, 2, 128>}, {pipeline_mode = #tpu.pipeline_mode<synchronous>, transform_indices = @transform_2, window_bounds = array<i64: 1, 128>}, {pipeline_mode = #tpu.pipeline_mode<synchronous>, transform_indices = @transform_3, window_bounds = array<i64: 1, 128>}, {pipeline_mode = #tpu.pipeline_mode<synchronous>, transform_indices = @transform_4, window_bounds = array<i64: 128, 384>}, {pipeline_mode = #tpu.pipeline_mode<synchronous>, transform_indices = @transform_5, window_bounds = array<i64: 3, 192>}, {pipeline_mode = #tpu.pipeline_mode<synchronous>, transform_indices = @transform_6, window_bounds = array<i64: 192, 192>}, {pipeline_mode = #tpu.pipeline_mode<synchronous>, transform_indices = @transform_7, window_bounds = array<i64: 1, 192>}, {pipeline_mode = #tpu.pipeline_mode<synchronous>, transform_indices = @transform_8, window_bounds = array<i64: 192, 128>}, {pipeline_mode = #tpu.pipeline_mode<synchronous>, transform_indices = @transform_9, window_bounds = array<i64: 1, 128>}, {transform_indices = @transform_10, window_bounds = array<i64: 1, 24, 128>}]} {
    %c0 = arith.constant 0 : index
    %c0_0 = arith.constant 0 : index
    %c0_1 = arith.constant 0 : index
    %0 = vector.load %arg2[%c0, %c0_0, %c0_1] : memref<1x24x128xf32, #tpu.memory_space<vmem>>, vector<1x24x128xf32>
    %1 = vector.shape_cast %0 : vector<1x24x128xf32> to vector<24x128xf32>
    %c0_2 = arith.constant 0 : index
    %c0_3 = arith.constant 0 : index
    %c0_4 = arith.constant 0 : index
    %c0_5 = arith.constant 0 : index
    %2 = vector.load %arg3[%c0_2, %c0_3, %c0_4, %c0_5] : memref<1x1x2x128xf32, #tpu.memory_space<vmem>>, vector<1x1x2x128xf32>
    %3 = vector.shape_cast %2 : vector<1x1x2x128xf32> to vector<2x128xf32>
    %4 = tpu.concatenate %1, %3 in 0 : vector<24x128xf32>, vector<2x128xf32> -> vector<26x128xf32>
    %cst = arith.constant dense<0.000000e+00> : vector<26xf32>
    %5 = vector.multi_reduction <add>, %4, %cst [1] : vector<26x128xf32> to vector<26xf32>
    %6 = vector.shape_cast %5 : vector<26xf32> to vector<26x1xf32>
    %cst_6 = arith.constant 1.280000e+02 : f32
    %7 = vector.broadcast %cst_6 : f32 to vector<26x1xf32>
    %8 = arith.divf %6, %7 : vector<26x1xf32>
    %9 = vector.broadcast %8 : vector<26x1xf32> to vector<26x128xf32>
    %10 = arith.subf %4, %9 : vector<26x128xf32>
    %11 = arith.mulf %10, %10 : vector<26x128xf32>
    %cst_7 = arith.constant dense<0.000000e+00> : vector<26xf32>
    %12 = vector.multi_reduction <add>, %11, %cst_7 [1] : vector<26x128xf32> to vector<26xf32>
    %13 = vector.shape_cast %12 : vector<26xf32> to vector<26x1xf32>
    %cst_8 = arith.constant 1.280000e+02 : f32
    %14 = vector.broadcast %cst_8 : f32 to vector<26x1xf32>
    %15 = arith.divf %13, %14 : vector<26x1xf32>
    %cst_9 = arith.constant 9.99999974E-6 : f32
    %16 = vector.broadcast %cst_9 : f32 to vector<26x1xf32>
    %17 = arith.addf %15, %16 : vector<26x1xf32>
    %18 = math.rsqrt %17 : vector<26x1xf32>
    %19 = vector.broadcast %18 : vector<26x1xf32> to vector<26x128xf32>
    %20 = arith.mulf %10, %19 : vector<26x128xf32>
    %c0_10 = arith.constant 0 : index
    %c0_11 = arith.constant 0 : index
    %21 = vector.load %arg4[%c0_10, %c0_11] : memref<1x128xf32, #tpu.memory_space<vmem>>, vector<1x128xf32>
    %22 = vector.broadcast %21 : vector<1x128xf32> to vector<26x128xf32>
    %23 = arith.mulf %20, %22 : vector<26x128xf32>
    %c0_12 = arith.constant 0 : index
    %c0_13 = arith.constant 0 : index
    %24 = vector.load %arg5[%c0_12, %c0_13] : memref<1x128xf32, #tpu.memory_space<vmem>>, vector<1x128xf32>
    %25 = vector.broadcast %24 : vector<1x128xf32> to vector<26x128xf32>
    %26 = arith.addf %23, %25 : vector<26x128xf32>
    %27 = arith.truncf %26 : vector<26x128xf32> to vector<26x128xbf16>
    %c0_14 = arith.constant 0 : index
    %c0_15 = arith.constant 0 : index
    %28 = vector.load %arg6[%c0_14, %c0_15] : memref<128x384xbf16, #tpu.memory_space<vmem>>, vector<128x384xbf16>
    %cst_16 = arith.constant dense<0.000000e+00> : vector<26x384xf32>
    %29 = tpu.matmul %27, %28, %cst_16 {dimension_numbers = #tpu.dot_dimension_numbers<[1], [0], [0], [1], [0, 0, 1, 1], [], []>} : vector<26x128xbf16>, vector<128x384xbf16>, vector<26x384xf32> -> vector<26x384xf32>
    %30 = vector.extract_strided_slice %29 {offsets = [0, 0], sizes = [24, 192], strides = [1, 1]} : vector<26x384xf32> to vector<24x192xf32>
    %31 = vector.extract_strided_slice %29 {offsets = [0, 192], sizes = [24, 192], strides = [1, 1]} : vector<26x384xf32> to vector<24x192xf32>
    %c0_i32 = arith.constant 0 : i32
    %32 = arith.cmpi sgt, %arg1, %c0_i32 : i32
    %33 = arith.extui %32 : i1 to i32
    %34 = arith.sitofp %33 : i32 to f32
    %c0_i32_17 = arith.constant 0 : i32
    %35 = arith.cmpi slt, %arg1, %c0_i32_17 : i32
    %36 = arith.extui %35 : i1 to i32
    %37 = arith.sitofp %36 : i32 to f32
    %38 = vector.extract_strided_slice %29 {offsets = [24, 0], sizes = [1, 192], strides = [1, 1]} : vector<26x384xf32> to vector<1x192xf32>
    %39 = vector.broadcast %34 : f32 to vector<1x192xf32>
    %40 = arith.mulf %38, %39 : vector<1x192xf32>
    %41 = vector.extract_strided_slice %29 {offsets = [25, 0], sizes = [1, 192], strides = [1, 1]} : vector<26x384xf32> to vector<1x192xf32>
    %42 = vector.broadcast %37 : f32 to vector<1x192xf32>
    %43 = arith.mulf %41, %42 : vector<1x192xf32>
    %44 = vector.extract_strided_slice %30 {offsets = [0, 0], sizes = [23, 192], strides = [1, 1]} : vector<24x192xf32> to vector<23x192xf32>
    %45 = tpu.concatenate %40, %44 in 0 : vector<1x192xf32>, vector<23x192xf32> -> vector<24x192xf32>
    %46 = vector.extract_strided_slice %30 {offsets = [1, 0], sizes = [23, 192], strides = [1, 1]} : vector<24x192xf32> to vector<23x192xf32>
    %47 = tpu.concatenate %46, %43 in 0 : vector<23x192xf32>, vector<1x192xf32> -> vector<24x192xf32>
    %c0_18 = arith.constant 0 : index
    %c0_19 = arith.constant 0 : index
    %48 = vector.load %arg7[%c0_18, %c0_19] : memref<3x192xf32, #tpu.memory_space<vmem>>, vector<3x192xf32>
    %49 = vector.extract_strided_slice %48 {offsets = [0, 0], sizes = [1, 192], strides = [1, 1]} : vector<3x192xf32> to vector<1x192xf32>
    %50 = vector.broadcast %49 : vector<1x192xf32> to vector<24x192xf32>
    %51 = arith.mulf %45, %50 : vector<24x192xf32>
    %52 = vector.extract_strided_slice %48 {offsets = [1, 0], sizes = [1, 192], strides = [1, 1]} : vector<3x192xf32> to vector<1x192xf32>
    %53 = vector.broadcast %52 : vector<1x192xf32> to vector<24x192xf32>
    %54 = arith.mulf %30, %53 : vector<24x192xf32>
    %55 = arith.addf %51, %54 : vector<24x192xf32>
    %56 = vector.extract_strided_slice %48 {offsets = [2, 0], sizes = [1, 192], strides = [1, 1]} : vector<3x192xf32> to vector<1x192xf32>
    %57 = vector.broadcast %56 : vector<1x192xf32> to vector<24x192xf32>
    %58 = arith.mulf %47, %57 : vector<24x192xf32>
    %59 = arith.addf %55, %58 : vector<24x192xf32>
    %cst_20 = arith.constant 0.000000e+00 : f32
    %60 = vector.broadcast %cst_20 : f32 to vector<24x192xf32>
    %61 = arith.subf %60, %59 : vector<24x192xf32>
    %62 = math.exp %61 : vector<24x192xf32>
    %cst_21 = arith.constant 1.000000e+00 : f32
    %63 = vector.broadcast %cst_21 : f32 to vector<24x192xf32>
    %64 = arith.addf %63, %62 : vector<24x192xf32>
    %cst_22 = arith.constant 1.000000e+00 : f32
    %65 = vector.broadcast %cst_22 : f32 to vector<24x192xf32>
    %66 = arith.divf %65, %64 : vector<24x192xf32>
    %67 = arith.mulf %59, %66 : vector<24x192xf32>
    %68 = arith.truncf %67 : vector<24x192xf32> to vector<24x192xbf16>
    %c0_23 = arith.constant 0 : index
    %c0_24 = arith.constant 0 : index
    %69 = vector.load %arg8[%c0_23, %c0_24] : memref<192x192xbf16, #tpu.memory_space<vmem>>, vector<192x192xbf16>
    %cst_25 = arith.constant dense<0.000000e+00> : vector<24x192xf32>
    %70 = tpu.matmul %68, %69, %cst_25 {dimension_numbers = #tpu.dot_dimension_numbers<[1], [0], [0], [1], [0, 0, 1, 1], [], []>} : vector<24x192xbf16>, vector<192x192xbf16>, vector<24x192xf32> -> vector<24x192xf32>
    %c0_26 = arith.constant 0 : index
    %c0_27 = arith.constant 0 : index
    %71 = vector.load %arg9[%c0_26, %c0_27] : memref<1x192xf32, #tpu.memory_space<vmem>>, vector<1x192xf32>
    %72 = vector.broadcast %71 : vector<1x192xf32> to vector<24x192xf32>
    %73 = arith.addf %70, %72 : vector<24x192xf32>
    %cst_28 = arith.constant 0.000000e+00 : f32
    %74 = vector.broadcast %cst_28 : f32 to vector<24x192xf32>
    %75 = arith.maximumf %73, %74 : vector<24x192xf32>
    %76 = math.absf %73 : vector<24x192xf32>
    %cst_29 = arith.constant 0.000000e+00 : f32
    %77 = vector.broadcast %cst_29 : f32 to vector<24x192xf32>
    %78 = arith.subf %77, %76 : vector<24x192xf32>
    %79 = math.exp %78 : vector<24x192xf32>
    %cst_30 = arith.constant 1.000000e+00 : f32
    %80 = vector.broadcast %cst_30 : f32 to vector<24x192xf32>
    %81 = arith.addf %80, %79 : vector<24x192xf32>
    %82 = math.log %81 : vector<24x192xf32>
    %83 = arith.addf %75, %82 : vector<24x192xf32>
    %cst_31 = arith.constant 0.000000e+00 : f32
    %84 = vector.broadcast %cst_31 : f32 to vector<24x192xf32>
    %85 = arith.subf %84, %83 : vector<24x192xf32>
    %86 = math.exp %85 : vector<24x192xf32>
    %cst_32 = arith.constant 1.000000e+00 : f32
    %87 = vector.broadcast %cst_32 : f32 to vector<24x192xf32>
    %88 = arith.addf %87, %86 : vector<24x192xf32>
    %cst_33 = arith.constant 1.000000e+00 : f32
    %89 = vector.broadcast %cst_33 : f32 to vector<24x192xf32>
    %90 = arith.divf %89, %88 : vector<24x192xf32>
    %91 = arith.mulf %67, %90 : vector<24x192xf32>
    %cst_34 = arith.constant 0.000000e+00 : f32
    %92 = vector.broadcast %cst_34 : f32 to vector<24x192xf32>
    %93 = arith.subf %92, %31 : vector<24x192xf32>
    %94 = math.exp %93 : vector<24x192xf32>
    %cst_35 = arith.constant 1.000000e+00 : f32
    %95 = vector.broadcast %cst_35 : f32 to vector<24x192xf32>
    %96 = arith.addf %95, %94 : vector<24x192xf32>
    %cst_36 = arith.constant 1.000000e+00 : f32
    %97 = vector.broadcast %cst_36 : f32 to vector<24x192xf32>
    %98 = arith.divf %97, %96 : vector<24x192xf32>
    %99 = arith.mulf %91, %98 : vector<24x192xf32>
    %100 = arith.truncf %99 : vector<24x192xf32> to vector<24x192xbf16>
    %c0_37 = arith.constant 0 : index
    %c0_38 = arith.constant 0 : index
    %101 = vector.load %arg10[%c0_37, %c0_38] : memref<192x128xbf16, #tpu.memory_space<vmem>>, vector<192x128xbf16>
    %cst_39 = arith.constant dense<0.000000e+00> : vector<24x128xf32>
    %102 = tpu.matmul %100, %101, %cst_39 {dimension_numbers = #tpu.dot_dimension_numbers<[1], [0], [0], [1], [0, 0, 1, 1], [], []>} : vector<24x192xbf16>, vector<192x128xbf16>, vector<24x128xf32> -> vector<24x128xf32>
    %c0_40 = arith.constant 0 : index
    %c0_41 = arith.constant 0 : index
    %103 = vector.load %arg11[%c0_40, %c0_41] : memref<1x128xf32, #tpu.memory_space<vmem>>, vector<1x128xf32>
    %104 = vector.broadcast %103 : vector<1x128xf32> to vector<24x128xf32>
    %105 = arith.mulf %102, %104 : vector<24x128xf32>
    %106 = arith.addf %105, %1 : vector<24x128xf32>
    %c0_42 = arith.constant 0 : index
    %c0_43 = arith.constant 0 : index
    %c0_44 = arith.constant 0 : index
    %107 = vector.load %arg12[%c0_42, %c0_43, %c0_44] : memref<1x24x128xf32, #tpu.memory_space<vmem>>, vector<1x24x128xf32>
    %108 = vector.shape_cast %107 : vector<1x24x128xf32> to vector<24x128xf32>
    %109 = vector.shape_cast %106 : vector<24x128xf32> to vector<1x24x128xf32>
    tpu.vector_store %arg12[%c0_42, %c0_43, %c0_44], %109 {strides = array<i32>} : memref<1x24x128xf32, #tpu.memory_space<vmem>>, vector<1x24x128xf32>,
    return
  }
  func.func @transform_0(%arg0: i32, %arg1: i32) -> (i32, i32, i32) {
    %c0_i32 = arith.constant 0 : i32
    %c0_i32_0 = arith.constant 0 : i32
    return %arg0, %arg1, %c0_i32 : i32, i32, i32
  }
  func.func @transform_1(%arg0: i32, %arg1: i32) -> (i32, i32, i32, i32) {
    %c0_i32 = arith.constant 0 : i32
    %c0_i32_0 = arith.constant 0 : i32
    %c0_i32_1 = arith.constant 0 : i32
    return %arg0, %arg1, %c0_i32, %c0_i32_0 : i32, i32, i32, i32
  }
  func.func @transform_2(%arg0: i32, %arg1: i32) -> (i32, i32) {
    %c0_i32 = arith.constant 0 : i32
    %c0_i32_0 = arith.constant 0 : i32
    %c0_i32_1 = arith.constant 0 : i32
    return %c0_i32, %c0_i32_0 : i32, i32
  }
  func.func @transform_3(%arg0: i32, %arg1: i32) -> (i32, i32) {
    %c0_i32 = arith.constant 0 : i32
    %c0_i32_0 = arith.constant 0 : i32
    %c0_i32_1 = arith.constant 0 : i32
    return %c0_i32, %c0_i32_0 : i32, i32
  }
  func.func @transform_4(%arg0: i32, %arg1: i32) -> (i32, i32) {
    %c0_i32 = arith.constant 0 : i32
    %c0_i32_0 = arith.constant 0 : i32
    %c0_i32_1 = arith.constant 0 : i32
    return %c0_i32, %c0_i32_0 : i32, i32
  }
  func.func @transform_5(%arg0: i32, %arg1: i32) -> (i32, i32) {
    %c0_i32 = arith.constant 0 : i32
    %c0_i32_0 = arith.constant 0 : i32
    %c0_i32_1 = arith.constant 0 : i32
    return %c0_i32, %c0_i32_0 : i32, i32
  }
  func.func @transform_6(%arg0: i32, %arg1: i32) -> (i32, i32) {
    %c0_i32 = arith.constant 0 : i32
    %c0_i32_0 = arith.constant 0 : i32
    %c0_i32_1 = arith.constant 0 : i32
    return %c0_i32, %c0_i32_0 : i32, i32
  }
  func.func @transform_7(%arg0: i32, %arg1: i32) -> (i32, i32) {
    %c0_i32 = arith.constant 0 : i32
    %c0_i32_0 = arith.constant 0 : i32
    %c0_i32_1 = arith.constant 0 : i32
    return %c0_i32, %c0_i32_0 : i32, i32
  }
  func.func @transform_8(%arg0: i32, %arg1: i32) -> (i32, i32) {
    %c0_i32 = arith.constant 0 : i32
    %c0_i32_0 = arith.constant 0 : i32
    %c0_i32_1 = arith.constant 0 : i32
    return %c0_i32, %c0_i32_0 : i32, i32
  }
  func.func @transform_9(%arg0: i32, %arg1: i32) -> (i32, i32) {
    %c0_i32 = arith.constant 0 : i32
    %c0_i32_0 = arith.constant 0 : i32
    %c0_i32_1 = arith.constant 0 : i32
    return %c0_i32, %c0_i32_0 : i32, i32
  }
  func.func @transform_10(%arg0: i32, %arg1: i32) -> (i32, i32, i32) {
    %c0_i32 = arith.constant 0 : i32
    %c0_i32_0 = arith.constant 0 : i32
    return %arg0, %arg1, %c0_i32 : i32, i32, i32
  }
}

module attributes {stable_mosaic.version = 11 : i64} {
  func.func @tail_kernel(%arg0: i32, %arg1: memref<48x128xf32, #tpu.memory_space<vmem>>, %arg2: memref<48x128xf32, #tpu.memory_space<vmem>>, %arg3: memref<128x128xbf16, #tpu.memory_space<vmem>>, %arg4: memref<128x128xbf16, #tpu.memory_space<vmem>>, %arg5: memref<1x128xf32, #tpu.memory_space<vmem>>, %arg6: memref<128x512xbf16, #tpu.memory_space<vmem>>, %arg7: memref<1x512xf32, #tpu.memory_space<vmem>>, %arg8: memref<8x64x128xbf16, #tpu.memory_space<vmem>>, %arg9: memref<8x1x128xf32, #tpu.memory_space<vmem>>, %arg10: memref<48x1024xf32, #tpu.memory_space<vmem>>) attributes {dimension_semantics = [#tpu.dimension_semantics<parallel>], iteration_bounds = array<i64: 1>, scalar_prefetch = 0 : i64, scratch_operands = 0 : i64, tpu.core_type = #tpu.core_type<tc>, window_params = [{transform_indices = @transform_0, window_bounds = array<i64: 48, 128>}, {transform_indices = @transform_1, window_bounds = array<i64: 48, 128>}, {pipeline_mode = #tpu.pipeline_mode<synchronous>, transform_indices = @transform_2, window_bounds = array<i64: 128, 128>}, {pipeline_mode = #tpu.pipeline_mode<synchronous>, transform_indices = @transform_3, window_bounds = array<i64: 128, 128>}, {pipeline_mode = #tpu.pipeline_mode<synchronous>, transform_indices = @transform_4, window_bounds = array<i64: 1, 128>}, {pipeline_mode = #tpu.pipeline_mode<synchronous>, transform_indices = @transform_5, window_bounds = array<i64: 128, 512>}, {pipeline_mode = #tpu.pipeline_mode<synchronous>, transform_indices = @transform_6, window_bounds = array<i64: 1, 512>}, {pipeline_mode = #tpu.pipeline_mode<synchronous>, transform_indices = @transform_7, window_bounds = array<i64: 8, 64, 128>}, {pipeline_mode = #tpu.pipeline_mode<synchronous>, transform_indices = @transform_8, window_bounds = array<i64: 8, 1, 128>}, {transform_indices = @transform_9, window_bounds = array<i64: 48, 1024>}]} {
    %c0 = arith.constant 0 : index
    %c0_0 = arith.constant 0 : index
    %0 = vector.load %arg1[%c0, %c0_0] : memref<48x128xf32, #tpu.memory_space<vmem>>, vector<48x128xf32>
    %1 = arith.truncf %0 : vector<48x128xf32> to vector<48x128xbf16>
    %c0_1 = arith.constant 0 : index
    %c0_2 = arith.constant 0 : index
    %2 = vector.load %arg2[%c0_1, %c0_2] : memref<48x128xf32, #tpu.memory_space<vmem>>, vector<48x128xf32>
    %3 = arith.truncf %2 : vector<48x128xf32> to vector<48x128xbf16>
    %c0_3 = arith.constant 0 : index
    %c0_4 = arith.constant 0 : index
    %4 = vector.load %arg3[%c0_3, %c0_4] : memref<128x128xbf16, #tpu.memory_space<vmem>>, vector<128x128xbf16>
    %cst = arith.constant dense<0.000000e+00> : vector<48x128xf32>
    %5 = tpu.matmul %1, %4, %cst {dimension_numbers = #tpu.dot_dimension_numbers<[1], [0], [0], [1], [0, 0, 1, 1], [], []>} : vector<48x128xbf16>, vector<128x128xbf16>, vector<48x128xf32> -> vector<48x128xf32>
    %c0_5 = arith.constant 0 : index
    %c0_6 = arith.constant 0 : index
    %6 = vector.load %arg4[%c0_5, %c0_6] : memref<128x128xbf16, #tpu.memory_space<vmem>>, vector<128x128xbf16>
    %cst_7 = arith.constant dense<0.000000e+00> : vector<48x128xf32>
    %7 = tpu.matmul %3, %6, %cst_7 {dimension_numbers = #tpu.dot_dimension_numbers<[1], [0], [0], [1], [0, 0, 1, 1], [], []>} : vector<48x128xbf16>, vector<128x128xbf16>, vector<48x128xf32> -> vector<48x128xf32>
    %8 = arith.addf %5, %7 : vector<48x128xf32>
    %c0_8 = arith.constant 0 : index
    %c0_9 = arith.constant 0 : index
    %9 = vector.load %arg5[%c0_8, %c0_9] : memref<1x128xf32, #tpu.memory_space<vmem>>, vector<1x128xf32>
    %10 = vector.broadcast %9 : vector<1x128xf32> to vector<48x128xf32>
    %11 = arith.addf %8, %10 : vector<48x128xf32>
    %cst_10 = arith.constant dense<0.000000e+00> : vector<48xf32>
    %12 = vector.multi_reduction <add>, %11, %cst_10 [1] : vector<48x128xf32> to vector<48xf32>
    %13 = vector.shape_cast %12 : vector<48xf32> to vector<48x1xf32>
    %cst_11 = arith.constant 1.280000e+02 : f32
    %14 = vector.broadcast %cst_11 : f32 to vector<48x1xf32>
    %15 = arith.divf %13, %14 : vector<48x1xf32>
    %16 = vector.broadcast %15 : vector<48x1xf32> to vector<48x128xf32>
    %17 = arith.subf %11, %16 : vector<48x128xf32>
    %18 = arith.mulf %17, %17 : vector<48x128xf32>
    %cst_12 = arith.constant dense<0.000000e+00> : vector<48xf32>
    %19 = vector.multi_reduction <add>, %18, %cst_12 [1] : vector<48x128xf32> to vector<48xf32>
    %20 = vector.shape_cast %19 : vector<48xf32> to vector<48x1xf32>
    %cst_13 = arith.constant 1.280000e+02 : f32
    %21 = vector.broadcast %cst_13 : f32 to vector<48x1xf32>
    %22 = arith.divf %20, %21 : vector<48x1xf32>
    %cst_14 = arith.constant 9.99999974E-6 : f32
    %23 = vector.broadcast %cst_14 : f32 to vector<48x1xf32>
    %24 = arith.addf %22, %23 : vector<48x1xf32>
    %25 = math.rsqrt %24 : vector<48x1xf32>
    %26 = vector.broadcast %25 : vector<48x1xf32> to vector<48x128xf32>
    %27 = arith.mulf %17, %26 : vector<48x128xf32>
    %28 = arith.truncf %27 : vector<48x128xf32> to vector<48x128xbf16>
    %c0_15 = arith.constant 0 : index
    %c0_16 = arith.constant 0 : index
    %29 = vector.load %arg6[%c0_15, %c0_16] : memref<128x512xbf16, #tpu.memory_space<vmem>>, vector<128x512xbf16>
    %cst_17 = arith.constant dense<0.000000e+00> : vector<48x512xf32>
    %30 = tpu.matmul %28, %29, %cst_17 {dimension_numbers = #tpu.dot_dimension_numbers<[1], [0], [0], [1], [0, 0, 1, 1], [], []>} : vector<48x128xbf16>, vector<128x512xbf16>, vector<48x512xf32> -> vector<48x512xf32>
    %c0_18 = arith.constant 0 : index
    %c0_19 = arith.constant 0 : index
    %31 = vector.load %arg7[%c0_18, %c0_19] : memref<1x512xf32, #tpu.memory_space<vmem>>, vector<1x512xf32>
    %32 = vector.broadcast %31 : vector<1x512xf32> to vector<48x512xf32>
    %33 = arith.addf %30, %32 : vector<48x512xf32>
    %cst_20 = arith.constant 5.000000e-01 : f32
    %34 = vector.broadcast %cst_20 : f32 to vector<48x512xf32>
    %35 = arith.mulf %34, %33 : vector<48x512xf32>
    %cst_21 = arith.constant 0.707106769 : f32
    %36 = vector.broadcast %cst_21 : f32 to vector<48x512xf32>
    %37 = arith.mulf %33, %36 : vector<48x512xf32>
    %cst_22 = arith.constant 0.000000e+00 : f32
    %38 = vector.broadcast %cst_22 : f32 to vector<48x512xf32>
    %39 = arith.cmpf olt, %37, %38 : vector<48x512xf32>
    %cst_23 = arith.constant -1.000000e+00 : f32
    %cst_24 = arith.constant 1.000000e+00 : f32
    %40 = vector.broadcast %cst_23 : f32 to vector<48x512xf32>
    %41 = vector.broadcast %cst_24 : f32 to vector<48x512xf32>
    %42 = arith.select %39, %40, %41 : vector<48x512xi1>, vector<48x512xf32>
    %43 = math.absf %37 : vector<48x512xf32>
    %cst_25 = arith.constant 0.327591091 : f32
    %44 = vector.broadcast %cst_25 : f32 to vector<48x512xf32>
    %45 = arith.mulf %44, %43 : vector<48x512xf32>
    %cst_26 = arith.constant 1.000000e+00 : f32
    %46 = vector.broadcast %cst_26 : f32 to vector<48x512xf32>
    %47 = arith.addf %46, %45 : vector<48x512xf32>
    %cst_27 = arith.constant 1.000000e+00 : f32
    %48 = vector.broadcast %cst_27 : f32 to vector<48x512xf32>
    %49 = arith.divf %48, %47 : vector<48x512xf32>
    %cst_28 = arith.constant 1.06140542 : f32
    %50 = vector.broadcast %cst_28 : f32 to vector<48x512xf32>
    %51 = arith.mulf %50, %49 : vector<48x512xf32>
    %cst_29 = arith.constant -1.45315206 : f32
    %52 = vector.broadcast %cst_29 : f32 to vector<48x512xf32>
    %53 = arith.addf %51, %52 : vector<48x512xf32>
    %54 = arith.mulf %53, %49 : vector<48x512xf32>
    %cst_30 = arith.constant 1.42141378 : f32
    %55 = vector.broadcast %cst_30 : f32 to vector<48x512xf32>
    %56 = arith.addf %54, %55 : vector<48x512xf32>
    %57 = arith.mulf %56, %49 : vector<48x512xf32>
    %cst_31 = arith.constant -0.284496725 : f32
    %58 = vector.broadcast %cst_31 : f32 to vector<48x512xf32>
    %59 = arith.addf %57, %58 : vector<48x512xf32>
    %60 = arith.mulf %59, %49 : vector<48x512xf32>
    %cst_32 = arith.constant 0.254829586 : f32
    %61 = vector.broadcast %cst_32 : f32 to vector<48x512xf32>
    %62 = arith.addf %60, %61 : vector<48x512xf32>
    %63 = arith.mulf %62, %49 : vector<48x512xf32>
    %cst_33 = arith.constant 0.000000e+00 : f32
    %64 = vector.broadcast %cst_33 : f32 to vector<48x512xf32>
    %65 = arith.subf %64, %43 : vector<48x512xf32>
    %66 = arith.mulf %65, %43 : vector<48x512xf32>
    %67 = math.exp %66 : vector<48x512xf32>
    %68 = arith.mulf %63, %67 : vector<48x512xf32>
    %cst_34 = arith.constant 1.000000e+00 : f32
    %69 = vector.broadcast %cst_34 : f32 to vector<48x512xf32>
    %70 = arith.subf %69, %68 : vector<48x512xf32>
    %71 = arith.mulf %42, %70 : vector<48x512xf32>
    %cst_35 = arith.constant 1.000000e+00 : f32
    %72 = vector.broadcast %cst_35 : f32 to vector<48x512xf32>
    %73 = arith.addf %72, %71 : vector<48x512xf32>
    %74 = arith.mulf %35, %73 : vector<48x512xf32>
    %75 = vector.extract_strided_slice %74 {offsets = [0, 0], sizes = [48, 64], strides = [1, 1]} : vector<48x512xf32> to vector<48x64xf32>
    %76 = arith.truncf %75 : vector<48x64xf32> to vector<48x64xbf16>
    %c0_36 = arith.constant 0 : index
    %c0_37 = arith.constant 0 : index
    %c0_38 = arith.constant 0 : index
    %77 = vector.load %arg8[%c0_36, %c0_37, %c0_38] : memref<8x64x128xbf16, #tpu.memory_space<vmem>>, vector<1x64x128xbf16>
    %78 = vector.shape_cast %77 : vector<1x64x128xbf16> to vector<64x128xbf16>
    %cst_39 = arith.constant dense<0.000000e+00> : vector<48x128xf32>
    %79 = tpu.matmul %76, %78, %cst_39 {dimension_numbers = #tpu.dot_dimension_numbers<[1], [0], [0], [1], [0, 0, 1, 1], [], []>} : vector<48x64xbf16>, vector<64x128xbf16>, vector<48x128xf32> -> vector<48x128xf32>
    %c0_40 = arith.constant 0 : index
    %c0_41 = arith.constant 0 : index
    %c0_42 = arith.constant 0 : index
    %80 = vector.load %arg9[%c0_40, %c0_41, %c0_42] : memref<8x1x128xf32, #tpu.memory_space<vmem>>, vector<1x1x128xf32>
    %81 = vector.shape_cast %80 : vector<1x1x128xf32> to vector<1x128xf32>
    %82 = vector.broadcast %81 : vector<1x128xf32> to vector<48x128xf32>
    %83 = arith.addf %79, %82 : vector<48x128xf32>
    %c0_43 = arith.constant 0 : index
    %c0_44 = arith.constant 0 : index
    %84 = vector.load %arg10[%c0_43, %c0_44] : memref<48x1024xf32, #tpu.memory_space<vmem>>, vector<48x128xf32>
    tpu.vector_store %arg10[%c0_43, %c0_44], %83 {strides = array<i32>} : memref<48x1024xf32, #tpu.memory_space<vmem>>, vector<48x128xf32>,
    %85 = vector.extract_strided_slice %74 {offsets = [0, 64], sizes = [48, 64], strides = [1, 1]} : vector<48x512xf32> to vector<48x64xf32>
    %86 = arith.truncf %85 : vector<48x64xf32> to vector<48x64xbf16>
    %c1 = arith.constant 1 : index
    %c0_45 = arith.constant 0 : index
    %c0_46 = arith.constant 0 : index
    %87 = vector.load %arg8[%c1, %c0_45, %c0_46] : memref<8x64x128xbf16, #tpu.memory_space<vmem>>, vector<1x64x128xbf16>
    %88 = vector.shape_cast %87 : vector<1x64x128xbf16> to vector<64x128xbf16>
    %cst_47 = arith.constant dense<0.000000e+00> : vector<48x128xf32>
    %89 = tpu.matmul %86, %88, %cst_47 {dimension_numbers = #tpu.dot_dimension_numbers<[1], [0], [0], [1], [0, 0, 1, 1], [], []>} : vector<48x64xbf16>, vector<64x128xbf16>, vector<48x128xf32> -> vector<48x128xf32>
    %c1_48 = arith.constant 1 : index
    %c0_49 = arith.constant 0 : index
    %c0_50 = arith.constant 0 : index
    %90 = vector.load %arg9[%c1_48, %c0_49, %c0_50] : memref<8x1x128xf32, #tpu.memory_space<vmem>>, vector<1x1x128xf32>
    %91 = vector.shape_cast %90 : vector<1x1x128xf32> to vector<1x128xf32>
    %92 = vector.broadcast %91 : vector<1x128xf32> to vector<48x128xf32>
    %93 = arith.addf %89, %92 : vector<48x128xf32>
    %c0_51 = arith.constant 0 : index
    %c128 = arith.constant 128 : index
    %94 = vector.load %arg10[%c0_51, %c128] : memref<48x1024xf32, #tpu.memory_space<vmem>>, vector<48x128xf32>
    tpu.vector_store %arg10[%c0_51, %c128], %93 {strides = array<i32>} : memref<48x1024xf32, #tpu.memory_space<vmem>>, vector<48x128xf32>,
    %95 = vector.extract_strided_slice %74 {offsets = [0, 128], sizes = [48, 64], strides = [1, 1]} : vector<48x512xf32> to vector<48x64xf32>
    %96 = arith.truncf %95 : vector<48x64xf32> to vector<48x64xbf16>
    %c2 = arith.constant 2 : index
    %c0_52 = arith.constant 0 : index
    %c0_53 = arith.constant 0 : index
    %97 = vector.load %arg8[%c2, %c0_52, %c0_53] : memref<8x64x128xbf16, #tpu.memory_space<vmem>>, vector<1x64x128xbf16>
    %98 = vector.shape_cast %97 : vector<1x64x128xbf16> to vector<64x128xbf16>
    %cst_54 = arith.constant dense<0.000000e+00> : vector<48x128xf32>
    %99 = tpu.matmul %96, %98, %cst_54 {dimension_numbers = #tpu.dot_dimension_numbers<[1], [0], [0], [1], [0, 0, 1, 1], [], []>} : vector<48x64xbf16>, vector<64x128xbf16>, vector<48x128xf32> -> vector<48x128xf32>
    %c2_55 = arith.constant 2 : index
    %c0_56 = arith.constant 0 : index
    %c0_57 = arith.constant 0 : index
    %100 = vector.load %arg9[%c2_55, %c0_56, %c0_57] : memref<8x1x128xf32, #tpu.memory_space<vmem>>, vector<1x1x128xf32>
    %101 = vector.shape_cast %100 : vector<1x1x128xf32> to vector<1x128xf32>
    %102 = vector.broadcast %101 : vector<1x128xf32> to vector<48x128xf32>
    %103 = arith.addf %99, %102 : vector<48x128xf32>
    %c0_58 = arith.constant 0 : index
    %c256 = arith.constant 256 : index
    %104 = vector.load %arg10[%c0_58, %c256] : memref<48x1024xf32, #tpu.memory_space<vmem>>, vector<48x128xf32>
    tpu.vector_store %arg10[%c0_58, %c256], %103 {strides = array<i32>} : memref<48x1024xf32, #tpu.memory_space<vmem>>, vector<48x128xf32>,
    %105 = vector.extract_strided_slice %74 {offsets = [0, 192], sizes = [48, 64], strides = [1, 1]} : vector<48x512xf32> to vector<48x64xf32>
    %106 = arith.truncf %105 : vector<48x64xf32> to vector<48x64xbf16>
    %c3 = arith.constant 3 : index
    %c0_59 = arith.constant 0 : index
    %c0_60 = arith.constant 0 : index
    %107 = vector.load %arg8[%c3, %c0_59, %c0_60] : memref<8x64x128xbf16, #tpu.memory_space<vmem>>, vector<1x64x128xbf16>
    %108 = vector.shape_cast %107 : vector<1x64x128xbf16> to vector<64x128xbf16>
    %cst_61 = arith.constant dense<0.000000e+00> : vector<48x128xf32>
    %109 = tpu.matmul %106, %108, %cst_61 {dimension_numbers = #tpu.dot_dimension_numbers<[1], [0], [0], [1], [0, 0, 1, 1], [], []>} : vector<48x64xbf16>, vector<64x128xbf16>, vector<48x128xf32> -> vector<48x128xf32>
    %c3_62 = arith.constant 3 : index
    %c0_63 = arith.constant 0 : index
    %c0_64 = arith.constant 0 : index
    %110 = vector.load %arg9[%c3_62, %c0_63, %c0_64] : memref<8x1x128xf32, #tpu.memory_space<vmem>>, vector<1x1x128xf32>
    %111 = vector.shape_cast %110 : vector<1x1x128xf32> to vector<1x128xf32>
    %112 = vector.broadcast %111 : vector<1x128xf32> to vector<48x128xf32>
    %113 = arith.addf %109, %112 : vector<48x128xf32>
    %c0_65 = arith.constant 0 : index
    %c384 = arith.constant 384 : index
    %114 = vector.load %arg10[%c0_65, %c384] : memref<48x1024xf32, #tpu.memory_space<vmem>>, vector<48x128xf32>
    tpu.vector_store %arg10[%c0_65, %c384], %113 {strides = array<i32>} : memref<48x1024xf32, #tpu.memory_space<vmem>>, vector<48x128xf32>,
    %115 = vector.extract_strided_slice %74 {offsets = [0, 256], sizes = [48, 64], strides = [1, 1]} : vector<48x512xf32> to vector<48x64xf32>
    %116 = arith.truncf %115 : vector<48x64xf32> to vector<48x64xbf16>
    %c4 = arith.constant 4 : index
    %c0_66 = arith.constant 0 : index
    %c0_67 = arith.constant 0 : index
    %117 = vector.load %arg8[%c4, %c0_66, %c0_67] : memref<8x64x128xbf16, #tpu.memory_space<vmem>>, vector<1x64x128xbf16>
    %118 = vector.shape_cast %117 : vector<1x64x128xbf16> to vector<64x128xbf16>
    %cst_68 = arith.constant dense<0.000000e+00> : vector<48x128xf32>
    %119 = tpu.matmul %116, %118, %cst_68 {dimension_numbers = #tpu.dot_dimension_numbers<[1], [0], [0], [1], [0, 0, 1, 1], [], []>} : vector<48x64xbf16>, vector<64x128xbf16>, vector<48x128xf32> -> vector<48x128xf32>
    %c4_69 = arith.constant 4 : index
    %c0_70 = arith.constant 0 : index
    %c0_71 = arith.constant 0 : index
    %120 = vector.load %arg9[%c4_69, %c0_70, %c0_71] : memref<8x1x128xf32, #tpu.memory_space<vmem>>, vector<1x1x128xf32>
    %121 = vector.shape_cast %120 : vector<1x1x128xf32> to vector<1x128xf32>
    %122 = vector.broadcast %121 : vector<1x128xf32> to vector<48x128xf32>
    %123 = arith.addf %119, %122 : vector<48x128xf32>
    %c0_72 = arith.constant 0 : index
    %c512 = arith.constant 512 : index
    %124 = vector.load %arg10[%c0_72, %c512] : memref<48x1024xf32, #tpu.memory_space<vmem>>, vector<48x128xf32>
    tpu.vector_store %arg10[%c0_72, %c512], %123 {strides = array<i32>} : memref<48x1024xf32, #tpu.memory_space<vmem>>, vector<48x128xf32>,
    %125 = vector.extract_strided_slice %74 {offsets = [0, 320], sizes = [48, 64], strides = [1, 1]} : vector<48x512xf32> to vector<48x64xf32>
    %126 = arith.truncf %125 : vector<48x64xf32> to vector<48x64xbf16>
    %c5 = arith.constant 5 : index
    %c0_73 = arith.constant 0 : index
    %c0_74 = arith.constant 0 : index
    %127 = vector.load %arg8[%c5, %c0_73, %c0_74] : memref<8x64x128xbf16, #tpu.memory_space<vmem>>, vector<1x64x128xbf16>
    %128 = vector.shape_cast %127 : vector<1x64x128xbf16> to vector<64x128xbf16>
    %cst_75 = arith.constant dense<0.000000e+00> : vector<48x128xf32>
    %129 = tpu.matmul %126, %128, %cst_75 {dimension_numbers = #tpu.dot_dimension_numbers<[1], [0], [0], [1], [0, 0, 1, 1], [], []>} : vector<48x64xbf16>, vector<64x128xbf16>, vector<48x128xf32> -> vector<48x128xf32>
    %c5_76 = arith.constant 5 : index
    %c0_77 = arith.constant 0 : index
    %c0_78 = arith.constant 0 : index
    %130 = vector.load %arg9[%c5_76, %c0_77, %c0_78] : memref<8x1x128xf32, #tpu.memory_space<vmem>>, vector<1x1x128xf32>
    %131 = vector.shape_cast %130 : vector<1x1x128xf32> to vector<1x128xf32>
    %132 = vector.broadcast %131 : vector<1x128xf32> to vector<48x128xf32>
    %133 = arith.addf %129, %132 : vector<48x128xf32>
    %c0_79 = arith.constant 0 : index
    %c640 = arith.constant 640 : index
    %134 = vector.load %arg10[%c0_79, %c640] : memref<48x1024xf32, #tpu.memory_space<vmem>>, vector<48x128xf32>
    tpu.vector_store %arg10[%c0_79, %c640], %133 {strides = array<i32>} : memref<48x1024xf32, #tpu.memory_space<vmem>>, vector<48x128xf32>,
    %135 = vector.extract_strided_slice %74 {offsets = [0, 384], sizes = [48, 64], strides = [1, 1]} : vector<48x512xf32> to vector<48x64xf32>
    %136 = arith.truncf %135 : vector<48x64xf32> to vector<48x64xbf16>
    %c6 = arith.constant 6 : index
    %c0_80 = arith.constant 0 : index
    %c0_81 = arith.constant 0 : index
    %137 = vector.load %arg8[%c6, %c0_80, %c0_81] : memref<8x64x128xbf16, #tpu.memory_space<vmem>>, vector<1x64x128xbf16>
    %138 = vector.shape_cast %137 : vector<1x64x128xbf16> to vector<64x128xbf16>
    %cst_82 = arith.constant dense<0.000000e+00> : vector<48x128xf32>
    %139 = tpu.matmul %136, %138, %cst_82 {dimension_numbers = #tpu.dot_dimension_numbers<[1], [0], [0], [1], [0, 0, 1, 1], [], []>} : vector<48x64xbf16>, vector<64x128xbf16>, vector<48x128xf32> -> vector<48x128xf32>
    %c6_83 = arith.constant 6 : index
    %c0_84 = arith.constant 0 : index
    %c0_85 = arith.constant 0 : index
    %140 = vector.load %arg9[%c6_83, %c0_84, %c0_85] : memref<8x1x128xf32, #tpu.memory_space<vmem>>, vector<1x1x128xf32>
    %141 = vector.shape_cast %140 : vector<1x1x128xf32> to vector<1x128xf32>
    %142 = vector.broadcast %141 : vector<1x128xf32> to vector<48x128xf32>
    %143 = arith.addf %139, %142 : vector<48x128xf32>
    %c0_86 = arith.constant 0 : index
    %c768 = arith.constant 768 : index
    %144 = vector.load %arg10[%c0_86, %c768] : memref<48x1024xf32, #tpu.memory_space<vmem>>, vector<48x128xf32>
    tpu.vector_store %arg10[%c0_86, %c768], %143 {strides = array<i32>} : memref<48x1024xf32, #tpu.memory_space<vmem>>, vector<48x128xf32>,
    %145 = vector.extract_strided_slice %74 {offsets = [0, 448], sizes = [48, 64], strides = [1, 1]} : vector<48x512xf32> to vector<48x64xf32>
    %146 = arith.truncf %145 : vector<48x64xf32> to vector<48x64xbf16>
    %c7 = arith.constant 7 : index
    %c0_87 = arith.constant 0 : index
    %c0_88 = arith.constant 0 : index
    %147 = vector.load %arg8[%c7, %c0_87, %c0_88] : memref<8x64x128xbf16, #tpu.memory_space<vmem>>, vector<1x64x128xbf16>
    %148 = vector.shape_cast %147 : vector<1x64x128xbf16> to vector<64x128xbf16>
    %cst_89 = arith.constant dense<0.000000e+00> : vector<48x128xf32>
    %149 = tpu.matmul %146, %148, %cst_89 {dimension_numbers = #tpu.dot_dimension_numbers<[1], [0], [0], [1], [0, 0, 1, 1], [], []>} : vector<48x64xbf16>, vector<64x128xbf16>, vector<48x128xf32> -> vector<48x128xf32>
    %c7_90 = arith.constant 7 : index
    %c0_91 = arith.constant 0 : index
    %c0_92 = arith.constant 0 : index
    %150 = vector.load %arg9[%c7_90, %c0_91, %c0_92] : memref<8x1x128xf32, #tpu.memory_space<vmem>>, vector<1x1x128xf32>
    %151 = vector.shape_cast %150 : vector<1x1x128xf32> to vector<1x128xf32>
    %152 = vector.broadcast %151 : vector<1x128xf32> to vector<48x128xf32>
    %153 = arith.addf %149, %152 : vector<48x128xf32>
    %c0_93 = arith.constant 0 : index
    %c896 = arith.constant 896 : index
    %154 = vector.load %arg10[%c0_93, %c896] : memref<48x1024xf32, #tpu.memory_space<vmem>>, vector<48x128xf32>
    tpu.vector_store %arg10[%c0_93, %c896], %153 {strides = array<i32>} : memref<48x1024xf32, #tpu.memory_space<vmem>>, vector<48x128xf32>,
    return
  }
  func.func @transform_0(%arg0: i32) -> (i32, i32) {
    %c0_i32 = arith.constant 0 : i32
    %c0_i32_0 = arith.constant 0 : i32
    return %arg0, %c0_i32 : i32, i32
  }
  func.func @transform_1(%arg0: i32) -> (i32, i32) {
    %c0_i32 = arith.constant 0 : i32
    %c0_i32_0 = arith.constant 0 : i32
    return %arg0, %c0_i32 : i32, i32
  }
  func.func @transform_2(%arg0: i32) -> (i32, i32) {
    %c0_i32 = arith.constant 0 : i32
    %c0_i32_0 = arith.constant 0 : i32
    %c0_i32_1 = arith.constant 0 : i32
    return %c0_i32, %c0_i32_0 : i32, i32
  }
  func.func @transform_3(%arg0: i32) -> (i32, i32) {
    %c0_i32 = arith.constant 0 : i32
    %c0_i32_0 = arith.constant 0 : i32
    %c0_i32_1 = arith.constant 0 : i32
    return %c0_i32, %c0_i32_0 : i32, i32
  }
  func.func @transform_4(%arg0: i32) -> (i32, i32) {
    %c0_i32 = arith.constant 0 : i32
    %c0_i32_0 = arith.constant 0 : i32
    %c0_i32_1 = arith.constant 0 : i32
    return %c0_i32, %c0_i32_0 : i32, i32
  }
  func.func @transform_5(%arg0: i32) -> (i32, i32) {
    %c0_i32 = arith.constant 0 : i32
    %c0_i32_0 = arith.constant 0 : i32
    %c0_i32_1 = arith.constant 0 : i32
    return %c0_i32, %c0_i32_0 : i32, i32
  }
  func.func @transform_6(%arg0: i32) -> (i32, i32) {
    %c0_i32 = arith.constant 0 : i32
    %c0_i32_0 = arith.constant 0 : i32
    %c0_i32_1 = arith.constant 0 : i32
    return %c0_i32, %c0_i32_0 : i32, i32
  }
  func.func @transform_7(%arg0: i32) -> (i32, i32, i32) {
    %c0_i32 = arith.constant 0 : i32
    %c0_i32_0 = arith.constant 0 : i32
    %c0_i32_1 = arith.constant 0 : i32
    %c0_i32_2 = arith.constant 0 : i32
    return %c0_i32, %c0_i32_0, %c0_i32_1 : i32, i32, i32
  }
  func.func @transform_8(%arg0: i32) -> (i32, i32, i32) {
    %c0_i32 = arith.constant 0 : i32
    %c0_i32_0 = arith.constant 0 : i32
    %c0_i32_1 = arith.constant 0 : i32
    %c0_i32_2 = arith.constant 0 : i32
    return %c0_i32, %c0_i32_0, %c0_i32_1 : i32, i32, i32
  }
  func.func @transform_9(%arg0: i32) -> (i32, i32) {
    %c0_i32 = arith.constant 0 : i32
    %c0_i32_0 = arith.constant 0 : i32
    return %arg0, %c0_i32 : i32, i32
  }
}

</mosaic_0001>

<bundles_post_ra>
// kernel: forward.14
= control target key start
LH: loop header
LB: loop body
LE: loop exit
PB: predicated region body
PF: predicated region fallthrough
CT: control target
= control target key end

     0   :  { %s153_s0 = inlined_call_operand.vmem [shape: f32[32,128], index: 0, kind: input, shape index: {}]   ;;  %s154_s1 = inlined_call_operand.vmem [shape: f32[1,128], index: 1, kind: input, shape index: {}]   ;;  %s155_s2 = inlined_call_operand.vmem [shape: f32[1,128], index: 2, kind: input, shape index: {}]   ;;  %s156_s3 = inlined_call_operand.vmem [shape: f32[32,128], index: 3, kind: output, shape index: {}]  }
   0x1   :  { %v14_v0 = vld [vmem:[%s153_s0] sm:$0xff]  ;;  %v16_v1 = vld [vmem:[%s153_s0 + $0x10] sm:$0xff]  ;;  %v15_v2 = vld [vmem:[%s153_s0 + $0x8] sm:$0xff] }
   0x2   :  { %18 = vadd.xlane.f32.xlu0 %v14_v0  ;;  %22 = vadd.xlane.f32.xlu1 %v16_v1  ;;  %v17_v3 = vld [vmem:[%s153_s0 + $0x18] sm:$0xff]  ;;  %v93_v33 = vld [vmem:[%s154_s1] ss:$0 sm:$0xff] }
   0x3   :  { %v94_v35 = vld [vmem:[%s155_s2] ss:$0 sm:$0xff] }
   0x6   :  { %20 = vadd.xlane.f32.xlu0 %v15_v2  ;;  %24 = vadd.xlane.f32.xlu1 %v17_v3 }
  0x8b   :  { %v19_v4 = vpop.xlane.xlu0 %18  ;;  %v23_v5 = vpop.xlane.xlu1 %22 }
  0x8c   :  { %v27_v6 = vmul.f32 0.0078125, %v19_v4  ;;  %v29_v7 = vmul.f32 0.0078125, %v23_v5 }
  0x8e   :  { %v31_v8 = vsub.f32 %v14_v0, %v27_v6  ;;  %v33_v9 = vsub.f32 %v16_v1, %v29_v7 }
  0x8f   :  { %v21_v10 = vpop.xlane.xlu0 %20  ;;  %v25_v11 = vpop.xlane.xlu1 %24 }
  0x90   :  { %v28_v12 = vmul.f32 0.0078125, %v21_v10  ;;  %v35_v13 = vmul.f32 %v31_v8, %v31_v8  ;;  %v30_v14 = vmul.f32 0.0078125, %v25_v11  ;;  %v37_v17 = vmul.f32 %v33_v9, %v33_v9 }
  0x92   :  { %v32_v15 = vsub.f32 %v15_v2, %v28_v12  ;;  %39 = vadd.xlane.f32.xlu0 %v35_v13  ;;  %v34_v16 = vsub.f32 %v17_v3, %v30_v14 }
  0x94   :  { %v36_v18 = vmul.f32 %v32_v15, %v32_v15  ;;  %v38_v19 = vmul.f32 %v34_v16, %v34_v16 }
  0x96   :  { %43 = vadd.xlane.f32.xlu0 %v37_v17  ;;  %41 = vadd.xlane.f32.xlu1 %v36_v18 }
  0x9a   :  { %45 = vadd.xlane.f32.xlu1 %v38_v19 }
 0x11b   :  { %v40_v20 = vpop.xlane.xlu0 %39 }
 0x11c   :  { %v47_v21 = vmul.f32 0.0078125, %v40_v20 }
 0x11e   :  { %v51_v22 = vadd.f32 1e-05, %v47_v21 }
 0x11f   :  { %v42_v23 = vpop.xlane.xlu1 %41  ;;  %v44_v24 = vpop.xlane.xlu0 %43 }
 0x120   :  { %95 = vrsqrt.f32 %v51_v22  ;;  %v48_v25 = vmul.f32 0.0078125, %v42_v23  ;;  %v49_v26 = vmul.f32 0.0078125, %v44_v24 }
 0x122   :  { %v52_v27 = vadd.f32 1e-05, %v48_v25  ;;  %v53_v28 = vadd.f32 1e-05, %v49_v26 }
 0x123   :  { %v46_v29 = vpop.xlane.xlu1 %45 }
 0x124   :  { %97 = vrsqrt.f32 %v52_v27  ;;  %v50_v30 = vmul.f32 0.0078125, %v46_v29 }
 0x125   :  { %99 = vrsqrt.f32 %v53_v28 }
 0x126   :  { %v54_v31 = vadd.f32 1e-05, %v50_v30 }
 0x128   :  { %101 = vrsqrt.f32 %v54_v31 }
 0x12d   :  { %v96_v32 = vpop.eup %95 }
 0x12e   :  { %v59_v34 = vmul.f32 %v96_v32, %v31_v8 }
 0x130   :  { %v70_v36 = vmul.f32 %v93_v33, %v59_v34 }
 0x131   :  { %v98_v37 = vpop.eup %97 }
 0x132   :  { %v100_v38 = vpop.eup %99  ;;  %v81_v39 = vadd.f32 %v94_v35, %v70_v36  ;;  %v60_v40 = vmul.f32 %v98_v37, %v32_v15 }
 0x133   :  { %v61_v41 = vmul.f32 %v100_v38, %v33_v9 }
 0x134   :  { %85 = vst [vmem:[%s156_s3] sm:$0xff] %v81_v39  ;;  %v71_v42 = vmul.f32 %v93_v33, %v60_v40 }
 0x135   :  { %v102_v43 = vpop.eup %101  ;;  %v72_v44 = vmul.f32 %v93_v33, %v61_v41 }
 0x136   :  { %v82_v45 = vadd.f32 %v94_v35, %v71_v42  ;;  %v62_v46 = vmul.f32 %v102_v43, %v34_v16 }
 0x137   :  { %v83_v47 = vadd.f32 %v94_v35, %v72_v44 }
 0x138   :  { %86 = vst [vmem:[%s156_s3 + $0x8] sm:$0xff] %v82_v45  ;;  %v73_v48 = vmul.f32 %v93_v33, %v62_v46 }
 0x139   :  { %87 = vst [vmem:[%s156_s3 + $0x10] sm:$0xff] %v83_v47 }
 0x13a   :  { %v84_v49 = vadd.f32 %v94_v35, %v73_v48 }
 0x13c   :  { %88 = vst [vmem:[%s156_s3 + $0x18] sm:$0xff] %v84_v49 }

// kernel: forward.11
= control target key start
LH: loop header
LB: loop body
LE: loop exit
PB: predicated region body
PF: predicated region fallthrough
CT: control target
= control target key end

     0   :  { %s1840_s13 = smov 0   ;;  %s1842_s14 = smov 0   ;;  %s2156_s0 = inlined_call_operand.vmem [shape: f32[2,16,128], index: 0, kind: input, shape index: {}]   ;;  %s2157_s1 = inlined_call_operand.vmem [shape: f32[2,1,2,128], index: 1, kind: input, shape index: {}]   ;;  %s2158_s2 = inlined_call_operand.vmem [shape: f32[1,128], index: 2, kind: input, shape index: {}]   ;;  %s2159_s3 = inlined_call_operand.vmem [shape: f32[1,128], index: 3, kind: input, shape index: {}]   ;;  %s2160_s4 = inlined_call_operand.vmem [shape: bf16[128,384], index: 4, kind: input, shape index: {}]   ;;  %s2161_s5 = inlined_call_operand.vmem [shape: f32[3,192], index: 5, kind: input, shape index: {}]   ;;  %s2162_s6 = inlined_call_operand.vmem [shape: bf16[192,192], index: 6, kind: input, shape index: {}]   ;;  %s2163_s7 = inlined_call_operand.vmem [shape: f32[1,192], index: 7, kind: input, shape index: {}]   ;;  %s2164_s8 = inlined_call_operand.vmem [shape: bf16[192,128], index: 8, kind: input, shape index: {}]   ;;  %s2165_s9 = inlined_call_operand.vmem [shape: f32[1,128], index: 9, kind: input, shape index: {}]   ;;  %s2166_s10 = inlined_call_operand.vmem [shape: f32[2,16,128], index: 10, kind: output, shape index: {}]  }
   0x1   :  { %s1844_s15 = smov 0  }
   0x2 LB: > { %s32_s16 = sadd.s32 1, %s1777_s14  ;;  %p1476_p0 = scmp.ge.s32.totalorder %s1781_s15, 1  ;;  %s1781_s15 = sphi %s1844_s15, %s20_s15   ;;  %s1777_s14 = sphi %s1842_s14, %s2168_s14   ;;  %s1773_s13 = sphi %s1840_s13, %s2167_s13  }
   0x3   : > { %p34_p1 = scmp.ge.s32.totalorder %s32_s16, 2  ;;  %p347_p2 = scmp.lt.s32.totalorder %s1781_s15, 3 }
   0x5   : > { %s2170_s16 = smov (%p34_p1, %s32_s16), 0  ;;  %p348_p3 = pnand %p1476_p0, %p347_p2 }
   0x6   : > { %p401_p4 = scmp.lt.s32.totalorder (!%p348_p3), %s1773_s13, 1  ;;  %s1784_s29 = smov (!%p348_p3), 64  }
   0x7   : > { %351 = sbr.rel (%p348_p3) target bundleno = 1068 (0x42c), region = 60 }
   0xc   : > { %s2172_s13 = smov (!%p401_p4, %s1773_s13), 1  ;;  %vm435_vm0 = vcmask 1041408   ;;  %v1607_v4 = vld [vmem:[%s2160_s4 + $0xac] ss:$12 sps:$4 sm:$0xff]   ;;  %v1609_v5 = vld [vmem:[%s2160_s4 + $0xa8] ss:$12 sps:$4 sm:$0xff]  }
   0xd   : > { %s1549_s17 = sshll.u32 %s2172_s13, 4  ;;  %s1479_s18 = sshll.u32 %s2172_s13, 1  ;;  %v1610_v6 = vld [vmem:[%s2160_s4 + $0xb0] ss:$12 sps:$4 sm:$0xff]   ;;  %650 = vmatprep.subr.bf16.mxu0 %v1607_v4  ;;  %v1611_v20 = vld [vmem:[%s2160_s4 + $0x94] ss:$12 sps:$4 sm:$0xff]  }
   0xe   : > { %s1867_s21 = scalar_lea.vmem %s2156_s0, %s1549_s17  ;;  %s416_s24 = scalar_lea.vmem %s2157_s1, %s1479_s18  ;;  %1561 = vmatprep.subr.bf16.mxu1 %v1610_v6  ;;  %651 = vmatpush1.bf16.msra.mxu0 %v1609_v5  ;;  %v1613_v21 = vld [vmem:[%s2160_s4 + $0x90] ss:$12 sps:$4 sm:$0xff]   ;;  %v1614_v22 = vld [vmem:[%s2160_s4 + $0x98] ss:$12 sps:$4 sm:$0xff]   ;;  %v1618_v25 = vld [vmem:[%s2160_s4 + $0x80] ss:$12 sps:$4 sm:$0xff]  }
   0xf   : > { %v428_v0 = vld [vmem:[%s1867_s21] sm:$0xff]  ;;  %v429_v1 = vld [vmem:[%s1867_s21 + $0x8] sm:$0xff]  ;;  %1562 = vmatpush3.bf16.msra.mxu1 %v1610_v6  ;;  %652 = vmatprep.subr.bf16.mxu0 %v1611_v20  ;;  %v1626_v30 = vld [vmem:[%s2160_s4 + $0x50] ss:$12 sps:$4 sm:$0xff]   ;;  %v1783_v34 = vmov 0   ;;  %vm764_vm1 = vcmask 1040384   ;;  %s425_s12 = scalar_lea.vmem %s2166_s10, %s1549_s17 }
  0x10   : > { %431 = vadd.xlane.f32.xlu0 %v428_v0  ;;  %v430_v2 = vld [vmem:[%s416_s24] sm:$0x3]  ;;  %1563 = vmatprep.subr.bf16.mxu1 %v1614_v22  ;;  %v1615_v23 = vld [vmem:[%s2160_s4 + $0x7c] ss:$12 sps:$4 sm:$0xff]   ;;  %v1617_v24 = vld [vmem:[%s2160_s4 + $0x78] ss:$12 sps:$4 sm:$0xff]  }
  0x11   : > { %v436_v3 = vsel %vm435_vm0, %v430_v2, 0.0  ;;  %v1619_v26 = vld [vmem:[%s2160_s4 + $0x64] ss:$12 sps:$4 sm:$0xff]   ;;  %v1621_v27 = vld [vmem:[%s2160_s4 + $0x60] ss:$12 sps:$4 sm:$0xff]   ;;  %682 = vmatprep.mubr.bf16.mxu0 %v1783_v34  ;;  %vm777_vm2 = vcmask 1046528  }
  0x12   : > { %437 = vadd.xlane.f32.xlu1 %v436_v3  ;;  %653 = vmatpush1.bf16.msra.mxu0 %v1613_v21  ;;  %v1622_v28 = vld [vmem:[%s2160_s4 + $0x68] ss:$12 sps:$4 sm:$0xff]   ;;  %v1623_v29 = vld [vmem:[%s2160_s4 + $0x4c] ss:$12 sps:$4 sm:$0xff]   ;;  %v1629_v35 = vld [vmem:[%s2160_s4 + $0x30] ss:$12 sps:$4 sm:$0xff]  }
  0x13   : > { %1564 = vmatpush3.bf16.msra.mxu1 %v1614_v22  ;;  %654 = vmatprep.subr.bf16.mxu0 %v1615_v23  ;;  %v1625_v31 = vld [vmem:[%s2160_s4 + $0x48] ss:$12 sps:$4 sm:$0xff]   ;;  %v1630_v33 = vld [vmem:[%s2160_s4 + $0x38] ss:$12 sps:$4 sm:$0xff]   ;;  %v1634_v37 = vld [vmem:[%s2160_s4 + $0x20] ss:$12 sps:$4 sm:$0xff]  }
  0x14   : > { %433 = vadd.xlane.f32.xlu0 %v429_v1  ;;  %1565 = vmatprep.subr.bf16.mxu1 %v1618_v25  ;;  %v1627_v32 = vld [vmem:[%s2160_s4 + $0x34] ss:$12 sps:$4 sm:$0xff]   ;;  %v1631_v36 = vld [vmem:[%s2160_s4 + $0x1c] ss:$12 sps:$4 sm:$0xff]   ;;  %v1633_v38 = vld [vmem:[%s2160_s4 + $0x18] ss:$12 sps:$4 sm:$0xff]  }
  0x15   : > { %v1635_v39 = vld [vmem:[%s2160_s4 + $0x4] ss:$12 sps:$4 sm:$0xff]   ;;  %v1638_v40 = vld [vmem:[%s2160_s4 + $0x8] ss:$12 sps:$4 sm:$0xff]   ;;  %v1637_v41 = vld [vmem:[%s2160_s4] ss:$12 sps:$4 sm:$0xff]  }
  0x16   : > { %655 = vmatpush1.bf16.msra.mxu0 %v1617_v24  ;;  %v1482_v53 = vld [vmem:[%s2158_s2] ss:$0 sm:$0xff]  ;;  %v1641_v3 = vld [vmem:[%s2162_s6 + $0x74] ss:$8 sps:$4 sm:$0xff]   ;;  %v1639_v4 = vld [vmem:[%s2162_s6 + $0x70] ss:$8 sps:$4 sm:$0xff]  }
  0x17   : > { %1566 = vmatpush3.bf16.msra.mxu1 %v1618_v25  ;;  %656 = vmatprep.subr.bf16.mxu0 %v1619_v26  ;;  %v1483_v59 = vld [vmem:[%s2159_s3] ss:$0 sm:$0xff]  ;;  %v1644_v5 = vld [vmem:[%s2162_s6 + $0x64] ss:$8 sps:$4 sm:$0xff]   ;;  %v1663_v20 = vld [vmem:[%s2162_s6 + $0xb0] ss:$8 sps:$4 sm:$0xff]  }
  0x18   : > { %1567 = vmatprep.subr.bf16.mxu1 %v1622_v28  ;;  %v1642_v6 = vld [vmem:[%s2162_s6 + $0x60] ss:$8 sps:$4 sm:$0xff]   ;;  %v1668_v21 = vld [vmem:[%s2162_s6 + $0xa4] ss:$8 sps:$4 sm:$0xff]   ;;  %v1671_v23 = vld [vmem:[%s2162_s6 + $0x94] ss:$8 sps:$4 sm:$0xff]  }
  0x19   : > { %v1666_v22 = vld [vmem:[%s2162_s6 + $0xa0] ss:$8 sps:$4 sm:$0xff]   ;;  %v1669_v24 = vld [vmem:[%s2162_s6 + $0x90] ss:$8 sps:$4 sm:$0xff]   ;;  %v1674_v26 = vld [vmem:[%s2162_s6 + $0x84] ss:$8 sps:$4 sm:$0xff]  }
  0x1a   : > { %657 = vmatpush1.bf16.msra.mxu0 %v1621_v27  ;;  %v1672_v25 = vld [vmem:[%s2162_s6 + $0x80] ss:$8 sps:$4 sm:$0xff]   ;;  %v798_v27 = vlaneseq  ;;  %vm1058_vm3 = vcmask 523264  }
  0x1b   : > { %1568 = vmatpush3.bf16.msra.mxu1 %v1622_v28  ;;  %658 = vmatprep.subr.bf16.mxu0 %v1623_v29 }
  0x1c   : > { %1569 = vmatprep.subr.bf16.mxu1 %v1626_v30  ;;  %v799_v28 = vshrl.u32 %v798_v27, 7 }
  0x1e   : > { %659 = vmatpush1.bf16.msra.mxu0 %v1625_v31  ;;  %v2044_v29 = vsub.s32 1, %v799_v28  ;;  %v796_v31 = vld [vmem:[%s2161_s5] sm:$0x77] }
  0x1f   : > { %1570 = vmatpush3.bf16.msra.mxu1 %v1626_v30  ;;  %660 = vmatprep.subr.bf16.mxu0 %v1627_v32  ;;  %v826_v30 = vsub.s32 5, %v799_v28  ;;  %v2049_v32 = vsub.s32 0, %v799_v28 }
  0x20   : > { %1571 = vmatprep.subr.bf16.mxu1 %v1630_v33 }
  0x22   : > { %661 = vmatpush1.bf16.msra.mxu0 %v1629_v35  ;;  %v804_v35 = vsub.s32 4, %v799_v28 }
  0x23   : > { %1572 = vmatpush3.bf16.msra.mxu1 %v1630_v33  ;;  %662 = vmatprep.subr.bf16.mxu0 %v1631_v36  ;;  %v848_v33 = vsub.s32 2, %v799_v28  ;;  %v852_v36 = vsub.s32 6, %v799_v28 }
  0x24   : > { %1573 = vmatprep.subr.bf16.mxu1 %v1634_v37 }
  0x26   : > { %663 = vmatpush1.bf16.msra.mxu0 %v1633_v38  ;;  %v827_v38 = vrot.slane %v796_v31, %v826_v30 }
  0x27   : > { %1574 = vmatpush3.bf16.msra.mxu1 %v1634_v37  ;;  %664 = vmatprep.subr.bf16.mxu0 %v1635_v39  ;;  %v823_v37 = vrot.slane %v796_v31, %v2044_v29 }
  0x28   : > { %1575 = vmatprep.subr.bf16.mxu1 %v1638_v40 }
  0x2a   : > { %665 = vmatpush1.bf16.msra.mxu0 %v1637_v41  ;;  %v849_v41 = vrot.slane %v796_v31, %v848_v33 }
  0x2b   : > { %1576 = vmatpush3.bf16.msra.mxu1 %v1638_v40  ;;  %1062 = vmatprep.subr.bf16.mxu0 %v1641_v3  ;;  %v801_v40 = vrot.slane %v796_v31, %v2049_v32 }
  0x2c   : > { %1316 = vmatprep.subr.bf16.mxu1 %v1783_v34 }
  0x99   : > { %v432_v7 = vpop.xlane.xlu0 %431 }
  0x9a   : > { %v440_v8 = vmul.f32 0.0078125, %v432_v7  ;;  %v1647_v7 = vld [vmem:[%s2162_s6 + $0x54] ss:$8 sps:$4 sm:$0xff]  }
  0x9b   : > { %v438_v9 = vpop.xlane.xlu1 %437 }
  0x9c   : > { %v1884_v10 = vsub.f32 %v428_v0, %v440_v8  ;;  %v442_v11 = vmul.f32 0.0078125, %v438_v9  ;;  %v1645_v8 = vld [vmem:[%s2162_s6 + $0x50] ss:$8 sps:$4 sm:$0xff]   ;;  %v1650_v9 = vld [vmem:[%s2162_s6 + $0x44] ss:$8 sps:$4 sm:$0xff]  }
  0x9d   : > { %v434_v12 = vpop.xlane.xlu0 %433 }
  0x9e   : > { %v1886_v13 = vsub.f32 %v430_v2, %v442_v11  ;;  %v441_v14 = vmul.f32 0.0078125, %v434_v12  ;;  %v446_v15 = vmul.f32 %v1884_v10, %v1884_v10  ;;  %v1653_v11 = vld [vmem:[%s2162_s6 + $0x34] ss:$8 sps:$4 sm:$0xff]   ;;  %v1651_v12 = vld [vmem:[%s2162_s6 + $0x30] ss:$8 sps:$4 sm:$0xff]  }
  0xa0   : > { %v1890_v16 = vsub.f32 %v429_v1, %v441_v14  ;;  %449 = vadd.xlane.f32.xlu1 %v446_v15  ;;  %v448_v17 = vmul.f32 %v1886_v13, %v1886_v13  ;;  %v1654_v14 = vld [vmem:[%s2162_s6 + $0x20] ss:$8 sps:$4 sm:$0xff]   ;;  %v1659_v15 = vld [vmem:[%s2162_s6 + $0x14] ss:$8 sps:$4 sm:$0xff]  }
  0xa2   : > { %v453_v18 = vsel %vm435_vm0, %v448_v17, 0.0  ;;  %v447_v19 = vmul.f32 %v1890_v16, %v1890_v16  ;;  %v1662_v17 = vld [vmem:[%s2162_s6 + $0x4] ss:$8 sps:$4 sm:$0xff]  }
  0xa4   : > { %454 = vadd.xlane.f32.xlu1 %v453_v18  ;;  %451 = vadd.xlane.f32.xlu0 %v447_v19  ;;  %v1660_v18 = vld [vmem:[%s2162_s6] ss:$8 sps:$4 sm:$0xff]   ;;  %v1665_v19 = vld [vmem:[%s2162_s6 + $0xb4] ss:$8 sps:$4 sm:$0xff]  }
 0x129   : > { %v450_v42 = vpop.xlane.xlu1 %449 }
 0x12a   : > { %v456_v43 = vmul.f32 0.0078125, %v450_v42 }
 0x12c   : > { %v459_v44 = vadd.f32 1e-05, %v456_v43 }
 0x12d   : > { %v455_v45 = vpop.xlane.xlu1 %454  ;;  %v452_v46 = vpop.xlane.xlu0 %451 }
 0x12e   : > { %1687 = vrsqrt.f32 %v459_v44  ;;  %v458_v47 = vmul.f32 0.0078125, %v455_v45  ;;  %v457_v48 = vmul.f32 0.0078125, %v452_v46  ;;  %v805_v44 = vrot.slane %v796_v31, %v804_v35 }
 0x12f   : > { %v853_v45 = vrot.slane %v796_v31, %v852_v36  ;;  %v833_v46 = vrot.slane %v823_v37, %v2044_v29 }
 0x130   : > { %v461_v49 = vadd.f32 1e-05, %v458_v47  ;;  %v460_v50 = vadd.f32 1e-05, %v457_v48  ;;  %v837_v47 = vrot.slane %v827_v38, %v2044_v29 }
 0x132   : > { %1689 = vrsqrt.f32 %v461_v49 }
 0x133   : > { %1691 = vrsqrt.f32 %v460_v50 }
 0x13b   : > { %v1688_v51 = vpop.eup %1687 }
 0x13c   : > { %v465_v52 = vmul.f32 %v1688_v51, %v1884_v10  ;;  %v1648_v10 = vld [vmem:[%s2162_s6 + $0x40] ss:$8 sps:$4 sm:$0xff]  }
 0x13e   : > { %v475_v58 = vmul.f32 %v1482_v53, %v465_v52  ;;  %v811_v52 = vrot.slane %v801_v40, %v2049_v32 }
 0x13f   : > { %v1690_v54 = vpop.eup %1689 }
 0x140   : > { %v1692_v55 = vpop.eup %1691  ;;  %v467_v56 = vmul.f32 %v1690_v54, %v1886_v13  ;;  %v485_v63 = vadd.f32 %v1483_v59, %v475_v58  ;;  %v1656_v13 = vld [vmem:[%s2162_s6 + $0x24] ss:$8 sps:$4 sm:$0xff]  }
 0x141   : > { %v466_v57 = vmul.f32 %v1692_v55, %v1890_v16  ;;  %v1657_v16 = vld [vmem:[%s2162_s6 + $0x10] ss:$8 sps:$4 sm:$0xff]  }
 0x142   : > { %v477_v60 = vmul.f32 %v1482_v53, %v467_v56 }
 0x143   : > { %v476_v61 = vmul.f32 %v1482_v53, %v466_v57  ;;  %v859_v53 = vrot.slane %v849_v41, %v848_v33 }
 0x144   : > { %v487_v62 = vadd.f32 %v1483_v59, %v477_v60 }
 0x145   : > { %v486_v0 = vadd.f32 %v1483_v59, %v476_v61 }
 0x146   : > { %v489_v1 = vpack.c.bf16 %v487_v62, %v487_v62  ;;  %v815_v62 = vrot.slane %v805_v44, %v2049_v32 }
 0x147   : > { %v488_v2 = vpack.c.bf16 %v486_v0, %v485_v63  ;;  %v863_v63 = vrot.slane %v853_v45, %v848_v33 }
 0x149   : > { %683 = vmatmul.mubr.bf16.vlgmr.msra.gmra.mxu0 %v488_v2  ;;  %1577 = vmatprep.mubr.bf16.mxu1 %v488_v2 }
 0x14a   : > { %1578 = vmatmul.mubr.bf16.vlgmr.msra.gmra.mxu1 %v489_v1  ;;  %692 = vmatprep.mubr.bf16.mxu0 %v1783_v34 }
 0x14b   : > { %1063 = vmatpush1.bf16.msra.mxu0 %v1639_v4 }
 0x14c   : > { %1064 = vmatprep.subr.bf16.mxu0 %v1644_v5 }
 0x14f   : > { %1065 = vmatpush1.bf16.msra.mxu0 %v1642_v6 }
 0x150   : > { %1066 = vmatprep.subr.bf16.mxu0 %v1647_v7 }
 0x151   : > { %693 = vmatmul.mubr.bf16.gmra.mxu0 %v489_v1 }
 0x153   : > { %1067 = vmatpush1.bf16.msra.mxu0 %v1645_v8 }
 0x154   : > { %1068 = vmatprep.subr.bf16.mxu0 %v1650_v9 }
 0x157   : > { %1069 = vmatpush1.bf16.msra.mxu0 %v1648_v10 }
 0x158   : > { %1070 = vmatprep.subr.bf16.mxu0 %v1653_v11 }
 0x15b   : > { %1071 = vmatpush1.bf16.msra.mxu0 %v1651_v12 }
 0x15c   : > { %1072 = vmatprep.subr.bf16.mxu0 %v1656_v13 }
 0x15f   : > { %1073 = vmatpush1.bf16.msra.mxu0 %v1654_v14 }
 0x160   : > { %1074 = vmatprep.subr.bf16.mxu0 %v1659_v15 }
 0x163   : > { %1075 = vmatpush1.bf16.msra.mxu0 %v1657_v16 }
 0x164   : > { %1076 = vmatprep.subr.bf16.mxu0 %v1662_v17 }
 0x167   : > { %1077 = vmatpush1.bf16.msra.mxu0 %v1660_v18 }
 0x168   : > { %1086 = vmatprep.subr.bf16.mxu0 %v1665_v19 }
 0x16b   : > { %1087 = vmatpush2.bf16.msra.mxu0 %v1663_v20 }
 0x16c   : > { %1088 = vmatprep.subr.bf16.mxu0 %v1668_v21 }
 0x16f   : > { %1089 = vmatpush2.bf16.msra.mxu0 %v1666_v22 }
 0x170   : > { %1090 = vmatprep.subr.bf16.mxu0 %v1671_v23 }
 0x173   : > { %1091 = vmatpush2.bf16.msra.mxu0 %v1669_v24 }
 0x174   : > { %1092 = vmatprep.subr.bf16.mxu0 %v1674_v26 }
 0x177   : > { %1093 = vmatpush2.bf16.msra.mxu0 %v1672_v25 }
 0x209   : > { %v684_v39 = vpop.f32.mrf.mxu0 }
 0x20a   : > { %v1579_v42 = vpop.f32.mrf.mxu1  ;;  %v765_v54 = vrot.slane %v684_v39, 7  ;;  %v778_v59 = vrot.slane %v684_v39, 1  ;;  %v838_v4 = vmul.f32 %v833_v46, %v684_v39 }
 0x20b   : > { %v686_v43 = vpop.f32.mrf.mxu0 }
 0x20c   : > { %v1169_v48 = vsub.f32 0.0, %v686_v43  ;;  %v735_v49 = vpop.f32.mrf.mxu1  ;;  %v766_v0 = vrot.slane %v686_v43, 7  ;;  %v781_v8 = vrot.slane %v686_v43, 1  ;;  %v839_v12 = vmul.f32 %v837_v47, %v686_v43 }
 0x20d   : > { %v1170_v50 = vsub.f32 0.0, %v735_v49  ;;  %v688_v51 = vpop.f32.mrf.mxu0 }
 0x20e   : > { %v1173_v55 = vmul.f32 1.442695, %v1169_v48  ;;  %v767_v56 = vrot.slane %v688_v51, 7  ;;  %v779_v57 = vrot.slane %v688_v51, 1  ;;  %v1580_v58 = vpop.f32.mrf.mxu1  ;;  %v840_v14 = vmul.f32 %v833_v46, %v688_v51 }
 0x20f   : > { %v1175_v60 = vmul.f32 1.442695, %v1170_v50  ;;  %v690_v61 = vpop.f32.mrf.mxu0 }
 0x210   : > { %1693 = vpow2.f32 %v1173_v55  ;;  %v768_v1 = vsel %vm764_vm1, %v765_v54, %v767_v56  ;;  %v769_v2 = vrot.slane %v690_v61, 7  ;;  %v738_v3 = vpop.f32.mrf.mxu1  ;;  %v780_v5 = vsel %vm777_vm2, %v778_v59, %v779_v57 }
 0x211   : > { %1695 = vpow2.f32 %v1175_v60  ;;  %v782_v6 = vrot.slane %v690_v61, 1  ;;  %v694_v7 = vpop.f32.mrf.mxu0  ;;  %v1171_v10 = vsub.f32 0.0, %v690_v61  ;;  %v1172_v11 = vsub.f32 0.0, %v738_v3 }
 0x212   : > { %v770_v9 = vsel %vm764_vm1, %v766_v0, %v769_v2  ;;  %v818_v13 = vmul.f32 %v811_v52, %v768_v1  ;;  %v755_v15 = vmul.f32 0.0, %v694_v7  ;;  %v864_v17 = vmul.f32 %v859_v53, %v780_v5 }
 0x213   : > { %v696_v16 = vpop.f32.mrf.mxu0  ;;  %v1177_v18 = vmul.f32 1.442695, %v1171_v10  ;;  %v1179_v19 = vmul.f32 1.442695, %v1172_v11  ;;  %v783_v21 = vsel %vm777_vm2, %v781_v8, %v782_v6  ;;  %v819_v22 = vmul.f32 %v815_v62, %v770_v9 }
 0x214   : > { %v756_v20 = vmul.f32 0.0, %v696_v16  ;;  %v775_v23 = vsel %vm764_vm1, %v755_v15, %v765_v54  ;;  %v790_v24 = vrot.slane %v755_v15, 2  ;;  %v841_v30 = vmul.f32 %v837_v47, %v690_v61 }
 0x215   : > { %v698_v25 = vpop.f32.mrf.mxu0  ;;  %1697 = vpow2.f32 %v1177_v18  ;;  %v816_v26 = vmul.f32 %v811_v52, %v775_v23  ;;  %v844_v36 = vadd.f32 %v840_v14, %v818_v13  ;;  %v865_v42 = vmul.f32 %v863_v63, %v783_v21  ;;  %v1676_v23 = vld [vmem:[%s2164_s8 + $0x30] sm:$0xff]  }
 0x216   : > { %v776_v27 = vsel %vm764_vm1, %v756_v20, %v766_v0  ;;  %v791_v28 = vrot.slane %v756_v20, 2  ;;  %1699 = vpow2.f32 %v1179_v19  ;;  %v794_v31 = vsel %vm777_vm2, %v779_v57, %v790_v24  ;;  %v1677_v24 = vld [vmem:[%s2164_s8 + $0x28] sm:$0xff]   ;;  %v1678_v25 = vld [vmem:[%s2164_s8 + $0x20] sm:$0xff]  }
 0x217   : > { %v817_v33 = vmul.f32 %v815_v62, %v776_v27  ;;  %v699_v35 = vpop.f32.mrf.mxu0  ;;  %v842_v37 = vadd.f32 %v838_v4, %v816_v26  ;;  %v866_v38 = vmul.f32 %v859_v53, %v794_v31  ;;  %v845_v40 = vadd.f32 %v841_v30, %v819_v22  ;;  %v1675_v22 = vld [vmem:[%s2164_s8 + $0x38] sm:$0xff]   ;;  %v1680_v27 = vld [vmem:[%s2164_s8 + $0x10] sm:$0xff]   ;;  %v1682_v30 = vld [vmem:[%s2164_s8] sm:$0xff]  }
 0x218   : > { %v795_v39 = vsel %vm777_vm2, %v782_v6, %v791_v28  ;;  %1317 = vmatpush1.bf16.msra.mxu1 %v1675_v22  ;;  %v1679_v26 = vld [vmem:[%s2164_s8 + $0x18] sm:$0xff]   ;;  %v1681_v28 = vld [vmem:[%s2164_s8 + $0x8] sm:$0xff]  }
 0x219   : > { %v843_v41 = vadd.f32 %v839_v12, %v817_v33  ;;  %v867_v43 = vmul.f32 %v863_v63, %v795_v39  ;;  %v868_v44 = vadd.f32 %v864_v17, %v842_v37  ;;  %v870_v45 = vadd.f32 %v866_v38, %v844_v36  ;;  %1318 = vmatprep.subr.bf16.mxu1 %v1783_v34  ;;  %v1683_v31 = vld [vmem:[%s2164_s8 + $0x58] sm:$0xff]   ;;  %v1684_v33 = vld [vmem:[%s2164_s8 + $0x50] sm:$0xff]   ;;  %v1685_v35 = vld [vmem:[%s2164_s8 + $0x48] sm:$0xff]  }
 0x21a   : > { %v1686_v36 = vld [vmem:[%s2164_s8 + $0x40] sm:$0xff]  }
 0x21b   : > { %v869_v46 = vadd.f32 %v865_v42, %v843_v41  ;;  %v871_v48 = vadd.f32 %v867_v43, %v845_v40  ;;  %v872_v49 = vsub.f32 0.0, %v868_v44  ;;  %v874_v47 = vsub.f32 0.0, %v870_v45  ;;  %v926_v37 = vld [vmem:[%s2163_s7] sm:$0x3] }
 0x21c   : > { %1319 = vmatpush1.bf16.msra.mxu1 %v1676_v23  ;;  %v931_v38 = vrot.slane %v926_v37, %v2049_v32  ;;  %v935_v39 = vrot.slane %v926_v37, %v2044_v29 }
 0x21d   : > { %v1694_v50 = vpop.eup %1693  ;;  %v873_v51 = vsub.f32 0.0, %v869_v46  ;;  %v875_v52 = vsub.f32 0.0, %v871_v48  ;;  %v876_v56 = vmul.f32 1.442695, %v872_v49  ;;  %v880_v53 = vmul.f32 1.442695, %v874_v47  ;;  %1320 = vmatprep.subr.bf16.mxu1 %v1783_v34 }
 0x21e   : > { %v1696_v54 = vpop.eup %1695  ;;  %v1181_v55 = vadd.f32 1.0, %v1694_v50 }
 0x21f   : > { %v1182_v57 = vadd.f32 1.0, %v1696_v54  ;;  %v878_v58 = vmul.f32 1.442695, %v873_v51  ;;  %v882_v59 = vmul.f32 1.442695, %v875_v52 }
 0x220   : > { %1701 = vrcp.f32 %v1181_v55  ;;  %1321 = vmatpush1.bf16.msra.mxu1 %v1677_v24 }
 0x221   : > { %1703 = vrcp.f32 %v1182_v57  ;;  %1322 = vmatprep.subr.bf16.mxu1 %v1783_v34 }
 0x222   : > { %1705 = vpow2.f32 %v876_v56  ;;  %v1698_v60 = vpop.eup %1697 }
 0x223   : > { %1707 = vpow2.f32 %v880_v53  ;;  %v1700_v61 = vpop.eup %1699  ;;  %v1183_v62 = vadd.f32 1.0, %v1698_v60 }
 0x224   : > { %1709 = vpow2.f32 %v878_v58  ;;  %v1184_v63 = vadd.f32 1.0, %v1700_v61  ;;  %1323 = vmatpush1.bf16.msra.mxu1 %v1678_v25 }
 0x225   : > { %1711 = vpow2.f32 %v882_v59  ;;  %1324 = vmatprep.subr.bf16.mxu1 %v1783_v34 }
 0x226   : > { %1713 = vrcp.f32 %v1183_v62 }
 0x227   : > { %1715 = vrcp.f32 %v1184_v63 }
 0x228   : > { %1325 = vmatpush1.bf16.msra.mxu1 %v1679_v26 }
 0x229   : > { %1326 = vmatprep.subr.bf16.mxu1 %v1783_v34 }
 0x22c   : > { %1327 = vmatpush1.bf16.msra.mxu1 %v1680_v27 }
 0x22d   : > { %v1702_v0 = vpop.eup %1701  ;;  %1328 = vmatprep.subr.bf16.mxu1 %v1783_v34 }
 0x22e   : > { %v1704_v1 = vpop.eup %1703  ;;  %1197 = vrot.lane.b32.xlu0 %v1702_v0, %s1784_s29 }
 0x22f   : > { %v1706_v2 = vpop.eup %1705  ;;  %1199 = vrot.lane.b32.xlu1 %v1704_v1, %s1784_s29 }
 0x230   : > { %v1708_v3 = vpop.eup %1707  ;;  %v884_v4 = vadd.f32 1.0, %v1706_v2  ;;  %1329 = vmatpush1.bf16.msra.mxu1 %v1681_v28 }
 0x231   : > { %v1710_v5 = vpop.eup %1709  ;;  %v886_v6 = vadd.f32 1.0, %v1708_v3  ;;  %1330 = vmatprep.subr.bf16.mxu1 %v1783_v34 }
 0x232   : > { %v1712_v7 = vpop.eup %1711  ;;  %1717 = vrcp.f32 %v884_v4  ;;  %v885_v8 = vadd.f32 1.0, %v1710_v5 }
 0x233   : > { %v1714_v9 = vpop.eup %1713  ;;  %1719 = vrcp.f32 %v886_v6  ;;  %v887_v10 = vadd.f32 1.0, %v1712_v7 }
 0x234   : > { %1721 = vrcp.f32 %v885_v8  ;;  %1201 = vrot.lane.b32.xlu1 %v1714_v9, %s1784_s29  ;;  %v1716_v11 = vpop.eup %1715  ;;  %1331 = vmatpush1.bf16.msra.mxu1 %v1682_v30 }
 0x235   : > { %1723 = vrcp.f32 %v887_v10  ;;  %1340 = vmatprep.subr.bf16.mxu1 %v1783_v34 }
 0x238   : > { %1203 = vrot.lane.b32.xlu1 %v1716_v11, %s1784_s29  ;;  %1341 = vmatpush2.bf16.msra.mxu1 %v1683_v31 }
 0x239   : > { %1342 = vmatprep.subr.bf16.mxu1 %v1783_v34 }
 0x23c   : > { %1343 = vmatpush2.bf16.msra.mxu1 %v1684_v33 }
 0x23d   : > { %1344 = vmatprep.subr.bf16.mxu1 %v1783_v34 }
 0x23f   : > { %v1718_v12 = vpop.eup %1717 }
 0x240   : > { %v1720_v13 = vpop.eup %1719  ;;  %v2065_v16 = vmul.f32 %v1718_v12, %v868_v44  ;;  %1345 = vmatpush2.bf16.msra.mxu1 %v1685_v35 }
 0x241   : > { %v1722_v14 = vpop.eup %1721  ;;  %v2067_v17 = vmul.f32 %v1720_v13, %v870_v45  ;;  %1346 = vmatprep.subr.bf16.mxu1 %v1783_v34 }
 0x242   : > { %v1724_v15 = vpop.eup %1723  ;;  %v2069_v18 = vmul.f32 %v1722_v14, %v869_v46 }
 0x243   : > { %v2071_v19 = vmul.f32 %v1724_v15, %v871_v48  ;;  %v900_v21 = vpack.c.bf16 %v2067_v17, %v2065_v16 }
 0x244   : > { %1347 = vmatpush2.bf16.msra.mxu1 %v1686_v36 }
 0x245   : > { %v901_v20 = vpack.c.bf16 %v2071_v19, %v2069_v18 }
 0x247   : > { %1532 = vmatprep.mubr.msk.bf16.mxu0 %vm1058_vm3, %v901_v20 }
 0x248   : > { %1095 = vmatmul.mubr.bf16.vlgmr.msra.gmra.mxu0 %v900_v21 }
 0x308   : > { %v1096_v40 = vpop.f32.mrf.mxu0 }
 0x309   : > { %v1097_v41 = vadd.f32 %v1096_v40, %v931_v38  ;;  %v1200_v40 = vpop.permute.xlu1 %1199 }
 0x30a   : > { %v1098_v42 = vpop.f32.mrf.mxu0 }
 0x30b   : > { %v1109_v43 = vand.u32 2147483647, %v1097_v41  ;;  %v1099_v44 = vadd.f32 %v1098_v42, %v935_v39  ;;  %v1105_v2 = vmax.f32 %v1097_v41, 0.0 }
 0x30c   : > { %v1100_v45 = vpop.f32.mrf.mxu0 }
 0x30d   : > { %v1113_v46 = vsub.f32 0.0, %v1109_v43  ;;  %v1110_v48 = vand.u32 2147483647, %v1099_v44  ;;  %v1101_v49 = vadd.f32 %v1100_v45, %v931_v38  ;;  %v1106_v6 = vmax.f32 %v1099_v44, 0.0  ;;  %v1202_v41 = vpop.permute.xlu1 %1201 }
 0x30e   : > { %v1102_v47 = vpop.f32.mrf.mxu0 }
 0x30f   : > { %v1117_v34 = vmul.f32 1.442695, %v1113_v46  ;;  %v1114_v50 = vsub.f32 0.0, %v1110_v48  ;;  %v1111_v51 = vand.u32 2147483647, %v1101_v49  ;;  %v1103_v52 = vadd.f32 %v1102_v47, %v935_v39  ;;  %v1198_v47 = vpop.permute.xlu0 %1197 }
 0x310   : > { %v1107_v11 = vmax.f32 %v1101_v49, 0.0 }
 0x311   : > { %1725 = vpow2.f32 %v1117_v34  ;;  %v1119_v54 = vmul.f32 1.442695, %v1114_v50  ;;  %v1115_v55 = vsub.f32 0.0, %v1111_v51  ;;  %v1112_v32 = vand.u32 2147483647, %v1103_v52  ;;  %v1204_v45 = vpop.permute.xlu1 %1203 }
 0x312   : > { %v1108_v21 = vmax.f32 %v1103_v52, 0.0  ;;  %v1206_v50 = vsel %vm1058_vm3, %v1202_v41, %v1204_v45 }
 0x313   : > { %1727 = vpow2.f32 %v1119_v54  ;;  %v1121_v29 = vmul.f32 1.442695, %v1115_v55  ;;  %v1116_v56 = vsub.f32 0.0, %v1112_v32  ;;  %v1205_v54 = vsel %vm1058_vm3, %v1198_v47, %v1200_v40 }
 0x315   : > { %1729 = vpow2.f32 %v1121_v29  ;;  %v1123_v57 = vmul.f32 1.442695, %v1116_v56 }
 0x317   : > { %1731 = vpow2.f32 %v1123_v57 }
 0x31e   : > { %v1726_v53 = vpop.eup %1725 }
 0x31f   : > { %v1125_v58 = vadd.f32 1.0, %v1726_v53  ;;  %v1757_v53 = vld [vmem:[%s1867_s21] sm:$0xff] }
 0x320   : > { %v1728_v59 = vpop.eup %1727 }
 0x321   : > { %1733 = vlog2.f32 %v1125_v58  ;;  %v1126_v60 = vadd.f32 1.0, %v1728_v59 }
 0x322   : > { %v1730_v61 = vpop.eup %1729 }
 0x323   : > { %1735 = vlog2.f32 %v1126_v60  ;;  %v1127_v62 = vadd.f32 1.0, %v1730_v61 }
 0x324   : > { %v1732_v63 = vpop.eup %1731 }
 0x325   : > { %1737 = vlog2.f32 %v1127_v62  ;;  %v1128_v0 = vadd.f32 1.0, %v1732_v63  ;;  %v1758_v62 = vld [vmem:[%s1867_s21 + $0x8] sm:$0xff] }
 0x327   : > { %1739 = vlog2.f32 %v1128_v0 }
 0x32e   : > { %v1734_v1 = vpop.eup %1733 }
 0x32f   : > { %v1130_v3 = vmul.f32 0.6931472, %v1734_v1 }
 0x330   : > { %v1736_v4 = vpop.eup %1735 }
 0x331   : > { %v1137_v5 = vadd.f32 %v1130_v3, %v1105_v2  ;;  %v1132_v7 = vmul.f32 0.6931472, %v1736_v4 }
 0x332   : > { %v1738_v8 = vpop.eup %1737 }
 0x333   : > { %v1141_v9 = vsub.f32 0.0, %v1137_v5  ;;  %v1138_v10 = vadd.f32 %v1132_v7, %v1106_v6  ;;  %v1134_v12 = vmul.f32 0.6931472, %v1738_v8 }
 0x334   : > { %v1740_v13 = vpop.eup %1739 }
 0x335   : > { %v1145_v14 = vmul.f32 1.442695, %v1141_v9  ;;  %v1142_v15 = vsub.f32 0.0, %v1138_v10  ;;  %v1139_v20 = vadd.f32 %v1134_v12, %v1107_v11  ;;  %v1136_v22 = vmul.f32 0.6931472, %v1740_v13 }
 0x337   : > { %1741 = vpow2.f32 %v1145_v14  ;;  %v1147_v23 = vmul.f32 1.442695, %v1142_v15  ;;  %v1143_v24 = vsub.f32 0.0, %v1139_v20  ;;  %v1140_v25 = vadd.f32 %v1136_v22, %v1108_v21 }
 0x339   : > { %1743 = vpow2.f32 %v1147_v23  ;;  %v1149_v26 = vmul.f32 1.442695, %v1143_v24  ;;  %v1144_v27 = vsub.f32 0.0, %v1140_v25 }
 0x33b   : > { %1745 = vpow2.f32 %v1149_v26  ;;  %v1151_v28 = vmul.f32 1.442695, %v1144_v27 }
 0x33d   : > { %1747 = vpow2.f32 %v1151_v28 }
 0x344   : > { %v1742_v30 = vpop.eup %1741 }
 0x345   : > { %v1153_v31 = vadd.f32 1.0, %v1742_v30 }
 0x346   : > { %v1744_v33 = vpop.eup %1743 }
 0x347   : > { %v1154_v35 = vadd.f32 1.0, %v1744_v33  ;;  %1749 = vrcp.f32 %v1153_v31 }
 0x348   : > { %v1746_v36 = vpop.eup %1745 }
 0x349   : > { %v1155_v37 = vadd.f32 1.0, %v1746_v36  ;;  %1751 = vrcp.f32 %v1154_v35 }
 0x34a   : > { %v1748_v38 = vpop.eup %1747 }
 0x34b   : > { %1753 = vrcp.f32 %v1155_v37  ;;  %v1156_v39 = vadd.f32 1.0, %v1748_v38 }
 0x34d   : > { %1755 = vrcp.f32 %v1156_v39 }
 0x354   : > { %v1750_v42 = vpop.eup %1749 }
 0x355   : > { %v1165_v34 = vmul.f32 %v1750_v42, %v2065_v16  ;;  %v1546_v16 = vld [vmem:[%s2165_s9] ss:$0 sm:$0xff] }
 0x356   : > { %v1752_v43 = vpop.eup %1751 }
 0x357   : > { %v1166_v48 = vmul.f32 %v1752_v43, %v2069_v18  ;;  %v1211_v29 = vmul.f32 %v1205_v54, %v1165_v34 }
 0x358   : > { %v1754_v44 = vpop.eup %1753 }
 0x359   : > { %v1167_v46 = vmul.f32 %v1754_v44, %v2067_v17  ;;  %v1212_v55 = vmul.f32 %v1200_v40, %v1166_v48 }
 0x35a   : > { %v1756_v49 = vpop.eup %1755 }
 0x35b   : > { %v1168_v51 = vmul.f32 %v1756_v49, %v2071_v19  ;;  %v1213_v52 = vmul.f32 %v1206_v50, %v1167_v46 }
 0x35d   : > { %v1214_v32 = vmul.f32 %v1204_v45, %v1168_v51  ;;  %v1215_v56 = vpack.c.bf16 %v1213_v52, %v1211_v29 }
 0x35f   : > { %v1216_v17 = vpack.c.bf16 %v1214_v32, %v1212_v55 }
 0x361   : > { %1545 = vmatprep.mubr.msk.bf16.mxu1 %vm1058_vm3, %v1216_v17 }
 0x362   : > { %1349 = vmatmul.mubr.bf16.vlgmr.msra.gmra.mxu1 %v1215_v56 }
 0x422   : > { %v1350_v18 = vpop.f32.mrf.mxu1 }
 0x423   : > { %v1364_v57 = vmul.f32 %v1546_v16, %v1350_v18 }
 0x424   : > { %v1352_v19 = vpop.f32.mrf.mxu1 }
 0x425   : > { %v1366_v58 = vadd.f32 %v1757_v53, %v1364_v57 }
 0x426   : > { %v1353_v59 = vpop.f32.mrf.mxu1 }
 0x427   : > { %1368 = vst [vmem:[%s425_s12] sm:$0xff] %v1366_v58  ;;  %v1365_v60 = vmul.f32 %v1546_v16, %v1353_v59 }
 0x428   : > { %v1355_v61 = vpop.f32.mrf.mxu1 }
 0x429   : > { %v1367_v63 = vadd.f32 %v1758_v62, %v1365_v60 }
 0x42b   : > { %1369 = vst [vmem:[%s425_s12 + $0x8] sm:$0xff] %v1367_v63 }
 0x42c PF: > { %s20_s15 = sadd.s32 1, %s1781_s15   ;;  %s2167_s13 = smov %s1777_s14 }
 0x42d   : > { %p17_p5 = scmp.ge.s32.totalorder %s20_s15, 4   ;;  %s2168_s14 = smov %s2170_s16 }
 0x42f   :  { %19 = sbr.rel (!%p17_p5) target bundleno = 2 (0x2), region = 93 }

// kernel: forward.15
= control target key start
LH: loop header
LB: loop body
LE: loop exit
PB: predicated region body
PF: predicated region fallthrough
CT: control target
= control target key end

     0   :  { %s2012_s13 = smov 0   ;;  %s2014_s14 = smov 0   ;;  %s2448_s0 = inlined_call_operand.vmem [shape: f32[2,24,128], index: 0, kind: input, shape index: {}]   ;;  %s2449_s1 = inlined_call_operand.vmem [shape: f32[2,1,2,128], index: 1, kind: input, shape index: {}]   ;;  %s2450_s2 = inlined_call_operand.vmem [shape: f32[1,128], index: 2, kind: input, shape index: {}]   ;;  %s2451_s3 = inlined_call_operand.vmem [shape: f32[1,128], index: 3, kind: input, shape index: {}]   ;;  %s2452_s4 = inlined_call_operand.vmem [shape: bf16[128,384], index: 4, kind: input, shape index: {}]   ;;  %s2453_s5 = inlined_call_operand.vmem [shape: f32[3,192], index: 5, kind: input, shape index: {}]   ;;  %s2454_s6 = inlined_call_operand.vmem [shape: bf16[192,192], index: 6, kind: input, shape index: {}]   ;;  %s2455_s7 = inlined_call_operand.vmem [shape: f32[1,192], index: 7, kind: input, shape index: {}]   ;;  %s2456_s8 = inlined_call_operand.vmem [shape: bf16[192,128], index: 8, kind: input, shape index: {}]   ;;  %s2457_s9 = inlined_call_operand.vmem [shape: f32[1,128], index: 9, kind: input, shape index: {}]   ;;  %s2458_s10 = inlined_call_operand.vmem [shape: f32[2,24,128], index: 10, kind: output, shape index: {}]  }
   0x1   :  { %s2016_s15 = smov 0  }
   0x2 LB: > { %s32_s16 = sadd.s32 1, %s1949_s14  ;;  %p1614_p0 = scmp.ge.s32.totalorder %s1953_s15, 1  ;;  %s1953_s15 = sphi %s2016_s15, %s20_s15   ;;  %s1949_s14 = sphi %s2014_s14, %s2460_s14   ;;  %s1945_s13 = sphi %s2012_s13, %s2459_s13  }
   0x3   : > { %p34_p1 = scmp.ge.s32.totalorder %s32_s16, 2  ;;  %p347_p2 = scmp.lt.s32.totalorder %s1953_s15, 3 }
   0x5   : > { %s2462_s16 = smov (%p34_p1, %s32_s16), 0  ;;  %p348_p3 = pnand %p1614_p0, %p347_p2 }
   0x6   : > { %p401_p4 = scmp.lt.s32.totalorder (!%p348_p3), %s1945_s13, 1  ;;  %s1956_s29 = smov (!%p348_p3), 64  }
   0x7   : > { %351 = sbr.rel (%p348_p3) target bundleno = 1078 (0x436), region = 60 }
   0xc   : > { %s2464_s13 = smov (!%p401_p4, %s1945_s13), 1  ;;  %vm438_vm0 = vcmask 1041408   ;;  %v1744_v5 = vld [vmem:[%s2452_s4 + $0xac] ss:$12 sps:$4 sm:$0xff]   ;;  %v1746_v6 = vld [vmem:[%s2452_s4 + $0xa8] ss:$12 sps:$4 sm:$0xff]  }
   0xd   : > { %s1616_s17 = sshll.u32 %s2464_s13, 1  ;;  %s1717_s18 = smul.u32 24, %s2464_s13  ;;  %664 = vmatprep.subr.bf16.mxu0 %v1744_v5  ;;  %v1747_v24 = vld [vmem:[%s2452_s4 + $0x94] ss:$12 sps:$4 sm:$0xff]   ;;  %v1749_v25 = vld [vmem:[%s2452_s4 + $0xb0] ss:$12 sps:$4 sm:$0xff]  }
   0xe   : > { %s416_s21 = scalar_lea.vmem %s2449_s1, %s1616_s17  ;;  %665 = vmatpush1.bf16.msra.mxu0 %v1746_v6  ;;  %v1750_v26 = vld [vmem:[%s2452_s4 + $0x90] ss:$12 sps:$4 sm:$0xff]   ;;  %1697 = vmatprep.subr.bf16.mxu1 %v1749_v25  ;;  %v1753_v28 = vld [vmem:[%s2452_s4 + $0x98] ss:$12 sps:$4 sm:$0xff]   ;;  %v1757_v31 = vld [vmem:[%s2452_s4 + $0x80] ss:$12 sps:$4 sm:$0xff]  }
   0xf   : > { %v431_v0 = vld [vmem:[%s416_s21] sm:$0x3]  ;;  %s2042_s24 = scalar_lea.vmem %s2448_s0, %s1717_s18  ;;  %666 = vmatprep.subr.bf16.mxu0 %v1747_v24  ;;  %1698 = vmatpush3.bf16.msra.mxu1 %v1749_v25  ;;  %v1751_v27 = vld [vmem:[%s2452_s4 + $0x7c] ss:$12 sps:$4 sm:$0xff]   ;;  %v1754_v29 = vld [vmem:[%s2452_s4 + $0x78] ss:$12 sps:$4 sm:$0xff]   ;;  %s425_s12 = scalar_lea.vmem %s2458_s10, %s1717_s18 }
  0x10   : > { %v439_v1 = vsel %vm438_vm0, %v431_v0, 0.0  ;;  %v428_v2 = vld [vmem:[%s2042_s24] sm:$0xff]  ;;  %v430_v3 = vld [vmem:[%s2042_s24 + $0x10] sm:$0xff]  ;;  %v429_v4 = vld [vmem:[%s2042_s24 + $0x8] sm:$0xff]  ;;  %1699 = vmatprep.subr.bf16.mxu1 %v1753_v28  ;;  %v1955_v41 = vmov 0   ;;  %vm783_vm1 = vcmask 1040384  }
  0x11   : > { %440 = vadd.xlane.f32.xlu1 %v439_v1  ;;  %432 = vadd.xlane.f32.xlu0 %v428_v2  ;;  %v1755_v30 = vld [vmem:[%s2452_s4 + $0x64] ss:$12 sps:$4 sm:$0xff]   ;;  %v1758_v32 = vld [vmem:[%s2452_s4 + $0x60] ss:$12 sps:$4 sm:$0xff]   ;;  %v1761_v34 = vld [vmem:[%s2452_s4 + $0x68] ss:$12 sps:$4 sm:$0xff]  }
  0x12   : > { %667 = vmatpush1.bf16.msra.mxu0 %v1750_v26  ;;  %v1759_v33 = vld [vmem:[%s2452_s4 + $0x4c] ss:$12 sps:$4 sm:$0xff]   ;;  %v1762_v35 = vld [vmem:[%s2452_s4 + $0x48] ss:$12 sps:$4 sm:$0xff]   ;;  %v1765_v37 = vld [vmem:[%s2452_s4 + $0x50] ss:$12 sps:$4 sm:$0xff]   ;;  %696 = vmatprep.mubr.bf16.mxu0 %v1955_v41 }
  0x13   : > { %668 = vmatprep.subr.bf16.mxu0 %v1751_v27  ;;  %1700 = vmatpush3.bf16.msra.mxu1 %v1753_v28  ;;  %v1763_v36 = vld [vmem:[%s2452_s4 + $0x34] ss:$12 sps:$4 sm:$0xff]   ;;  %v1766_v38 = vld [vmem:[%s2452_s4 + $0x30] ss:$12 sps:$4 sm:$0xff]   ;;  %v1769_v40 = vld [vmem:[%s2452_s4 + $0x38] ss:$12 sps:$4 sm:$0xff]  }
  0x14   : > { %1701 = vmatprep.subr.bf16.mxu1 %v1757_v31  ;;  %v1767_v39 = vld [vmem:[%s2452_s4 + $0x1c] ss:$12 sps:$4 sm:$0xff]   ;;  %v1770_v42 = vld [vmem:[%s2452_s4 + $0x18] ss:$12 sps:$4 sm:$0xff]   ;;  %v1773_v44 = vld [vmem:[%s2452_s4 + $0x20] ss:$12 sps:$4 sm:$0xff]  }
  0x15   : > { %436 = vadd.xlane.f32.xlu1 %v430_v3  ;;  %434 = vadd.xlane.f32.xlu0 %v429_v4  ;;  %v1771_v43 = vld [vmem:[%s2452_s4 + $0x4] ss:$12 sps:$4 sm:$0xff]   ;;  %v1774_v45 = vld [vmem:[%s2452_s4] ss:$12 sps:$4 sm:$0xff]   ;;  %v1775_v46 = vld [vmem:[%s2452_s4 + $0x8] ss:$12 sps:$4 sm:$0xff]  }
  0x16   : > { %669 = vmatpush1.bf16.msra.mxu0 %v1754_v29  ;;  %v1618_v61 = vld [vmem:[%s2450_s2] ss:$0 sm:$0xff]  ;;  %v1788_v24 = vld [vmem:[%s2454_s6 + $0x30] ss:$8 sps:$4 sm:$0xff]   ;;  %v1793_v25 = vld [vmem:[%s2454_s6 + $0x24] ss:$8 sps:$4 sm:$0xff]  }
  0x17   : > { %670 = vmatprep.subr.bf16.mxu0 %v1755_v30  ;;  %1702 = vmatpush3.bf16.msra.mxu1 %v1757_v31  ;;  %v1791_v26 = vld [vmem:[%s2454_s6 + $0x20] ss:$8 sps:$4 sm:$0xff]   ;;  %v1796_v27 = vld [vmem:[%s2454_s6 + $0x14] ss:$8 sps:$4 sm:$0xff]   ;;  %v1794_v28 = vld [vmem:[%s2454_s6 + $0x10] ss:$8 sps:$4 sm:$0xff]  }
  0x18   : > { %1703 = vmatprep.subr.bf16.mxu1 %v1761_v34  ;;  %v1799_v29 = vld [vmem:[%s2454_s6 + $0x4] ss:$8 sps:$4 sm:$0xff]   ;;  %v1797_v30 = vld [vmem:[%s2454_s6] ss:$8 sps:$4 sm:$0xff]   ;;  %v1802_v31 = vld [vmem:[%s2454_s6 + $0xb4] ss:$8 sps:$4 sm:$0xff]  }
  0x19   : > { %vm802_vm2 = vcmask 1046528   ;;  %vm1115_vm3 = vcmask 523264  }
  0x1a   : > { %671 = vmatpush1.bf16.msra.mxu0 %v1758_v32  ;;  %v1800_v32 = vld [vmem:[%s2454_s6 + $0xb0] ss:$8 sps:$4 sm:$0xff]  }
  0x1b   : > { %672 = vmatprep.subr.bf16.mxu0 %v1759_v33  ;;  %1704 = vmatpush3.bf16.msra.mxu1 %v1761_v34  ;;  %v1805_v33 = vld [vmem:[%s2454_s6 + $0xa4] ss:$8 sps:$4 sm:$0xff]   ;;  %v1803_v34 = vld [vmem:[%s2454_s6 + $0xa0] ss:$8 sps:$4 sm:$0xff]  }
  0x1c   : > { %1705 = vmatprep.subr.bf16.mxu1 %v1765_v37 }
  0x1e   : > { %673 = vmatpush1.bf16.msra.mxu0 %v1762_v35  ;;  %v1808_v35 = vld [vmem:[%s2454_s6 + $0x94] ss:$8 sps:$4 sm:$0xff]  }
  0x1f   : > { %674 = vmatprep.subr.bf16.mxu0 %v1763_v36  ;;  %1706 = vmatpush3.bf16.msra.mxu1 %v1765_v37  ;;  %v1806_v36 = vld [vmem:[%s2454_s6 + $0x90] ss:$8 sps:$4 sm:$0xff]   ;;  %v1809_v37 = vld [vmem:[%s2454_s6 + $0x80] ss:$8 sps:$4 sm:$0xff]  }
  0x20   : > { %1707 = vmatprep.subr.bf16.mxu1 %v1769_v40 }
  0x22   : > { %675 = vmatpush1.bf16.msra.mxu0 %v1766_v38  ;;  %v1811_v38 = vld [vmem:[%s2454_s6 + $0x84] ss:$8 sps:$4 sm:$0xff]  }
  0x23   : > { %676 = vmatprep.subr.bf16.mxu0 %v1767_v39  ;;  %1708 = vmatpush3.bf16.msra.mxu1 %v1769_v40  ;;  %v829_v39 = vlaneseq }
  0x24   : > { %1709 = vmatprep.subr.bf16.mxu1 %v1773_v44 }
  0x25   : > { %v830_v40 = vshrl.u32 %v829_v39, 7 }
  0x26   : > { %677 = vmatpush1.bf16.msra.mxu0 %v1770_v42 }
  0x27   : > { %678 = vmatprep.subr.bf16.mxu0 %v1771_v43  ;;  %1710 = vmatpush3.bf16.msra.mxu1 %v1773_v44  ;;  %v2222_v42 = vsub.s32 1, %v830_v40  ;;  %v827_v43 = vld [vmem:[%s2453_s5] sm:$0x77]  ;;  %v859_v44 = vsub.s32 5, %v830_v40 }
  0x28   : > { %1711 = vmatprep.subr.bf16.mxu1 %v1775_v46 }
  0x2a   : > { %679 = vmatpush1.bf16.msra.mxu0 %v1774_v45  ;;  %v2227_v45 = vsub.s32 0, %v830_v40 }
  0x2b   : > { %1712 = vmatpush3.bf16.msra.mxu1 %v1775_v46  ;;  %v885_v46 = vsub.s32 2, %v830_v40 }
  0x2c   : > { %1444 = vmatprep.subr.bf16.mxu1 %v1955_v41 }
  0x9a   : > { %v441_v7 = vpop.xlane.xlu1 %440  ;;  %v433_v8 = vpop.xlane.xlu0 %432 }
  0x9b   : > { %v446_v9 = vmul.f32 0.0078125, %v441_v7  ;;  %v443_v10 = vmul.f32 0.0078125, %v433_v8 }
  0x9d   : > { %v2054_v11 = vsub.f32 %v428_v2, %v443_v10  ;;  %v2056_v12 = vsub.f32 %v431_v0, %v446_v9  ;;  %v1619_v2 = vld [vmem:[%s2451_s3] ss:$0 sm:$0xff] }
  0x9e   : > { %v437_v13 = vpop.xlane.xlu1 %436  ;;  %v435_v14 = vpop.xlane.xlu0 %434 }
  0x9f   : > { %v445_v15 = vmul.f32 0.0078125, %v437_v13  ;;  %v444_v16 = vmul.f32 0.0078125, %v435_v14  ;;  %v451_v17 = vmul.f32 %v2054_v11, %v2054_v11  ;;  %v454_v20 = vmul.f32 %v2056_v12, %v2056_v12 }
  0xa1   : > { %v2060_v18 = vsub.f32 %v430_v3, %v445_v15  ;;  %v2062_v19 = vsub.f32 %v429_v4, %v444_v16  ;;  %455 = vadd.xlane.f32.xlu0 %v451_v17  ;;  %v461_v23 = vsel %vm438_vm0, %v454_v20, 0.0  ;;  %v1778_v16 = vld [vmem:[%s2454_s6 + $0x74] ss:$8 sps:$4 sm:$0xff]   ;;  %v1781_v17 = vld [vmem:[%s2454_s6 + $0x64] ss:$8 sps:$4 sm:$0xff]  }
  0xa2   : > { %1122 = vmatprep.subr.bf16.mxu0 %v1778_v16  ;;  %v1782_v20 = vld [vmem:[%s2454_s6 + $0x50] ss:$8 sps:$4 sm:$0xff]  }
  0xa3   : > { %v453_v21 = vmul.f32 %v2060_v18, %v2060_v18  ;;  %v452_v22 = vmul.f32 %v2062_v19, %v2062_v19 }
  0xa5   : > { %459 = vadd.xlane.f32.xlu0 %v453_v21  ;;  %457 = vadd.xlane.f32.xlu1 %v452_v22  ;;  %v1787_v21 = vld [vmem:[%s2454_s6 + $0x44] ss:$8 sps:$4 sm:$0xff]   ;;  %v1785_v22 = vld [vmem:[%s2454_s6 + $0x40] ss:$8 sps:$4 sm:$0xff]  }
  0xa9   : > { %462 = vadd.xlane.f32.xlu1 %v461_v23  ;;  %v1790_v23 = vld [vmem:[%s2454_s6 + $0x34] ss:$8 sps:$4 sm:$0xff]  }
 0x12a   : > { %v456_v47 = vpop.xlane.xlu0 %455 }
 0x12b   : > { %v464_v48 = vmul.f32 0.0078125, %v456_v47  ;;  %v835_v47 = vsub.s32 4, %v830_v40 }
 0x12d   : > { %v468_v49 = vadd.f32 1e-05, %v464_v48  ;;  %v889_v48 = vsub.s32 6, %v830_v40 }
 0x12e   : > { %v458_v50 = vpop.xlane.xlu1 %457  ;;  %v460_v51 = vpop.xlane.xlu0 %459 }
 0x12f   : > { %1824 = vrsqrt.f32 %v468_v49  ;;  %v465_v52 = vmul.f32 0.0078125, %v458_v50  ;;  %v466_v53 = vmul.f32 0.0078125, %v460_v51  ;;  %v856_v49 = vrot.slane %v827_v43, %v2222_v42 }
 0x130   : > { %v860_v50 = vrot.slane %v827_v43, %v859_v44  ;;  %v832_v51 = vrot.slane %v827_v43, %v2227_v45 }
 0x131   : > { %v469_v54 = vadd.f32 1e-05, %v465_v52  ;;  %v470_v55 = vadd.f32 1e-05, %v466_v53  ;;  %v886_v52 = vrot.slane %v827_v43, %v885_v46 }
 0x132   : > { %v463_v56 = vpop.xlane.xlu1 %462 }
 0x133   : > { %1826 = vrsqrt.f32 %v469_v54  ;;  %v467_v57 = vmul.f32 0.0078125, %v463_v56  ;;  %v836_v54 = vrot.slane %v827_v43, %v835_v47  ;;  %v866_v56 = vrot.slane %v856_v49, %v2222_v42 }
 0x134   : > { %1828 = vrsqrt.f32 %v470_v55  ;;  %v890_v55 = vrot.slane %v827_v43, %v889_v48 }
 0x135   : > { %v471_v58 = vadd.f32 1e-05, %v467_v57 }
 0x137   : > { %1830 = vrsqrt.f32 %v471_v58  ;;  %v2237_v58 = vrot.slane %v860_v50, %v2222_v42 }
 0x13c   : > { %v1825_v59 = vpop.eup %1824 }
 0x13d   : > { %v476_v60 = vmul.f32 %v1825_v59, %v2054_v11 }
 0x13f   : > { %v487_v1 = vmul.f32 %v1618_v61, %v476_v60  ;;  %v2241_v60 = vrot.slane %v832_v51, %v2227_v45 }
 0x140   : > { %v1827_v62 = vpop.eup %1826 }
 0x141   : > { %v1829_v63 = vpop.eup %1828  ;;  %v477_v0 = vmul.f32 %v1827_v62, %v2062_v19  ;;  %v498_v6 = vadd.f32 %v1619_v2, %v487_v1  ;;  %v1784_v19 = vld [vmem:[%s2454_s6 + $0x54] ss:$8 sps:$4 sm:$0xff]  }
 0x142   : > { %v478_v3 = vmul.f32 %v1829_v63, %v2060_v18  ;;  %v1779_v18 = vld [vmem:[%s2454_s6 + $0x60] ss:$8 sps:$4 sm:$0xff]  }
 0x143   : > { %v488_v4 = vmul.f32 %v1618_v61, %v477_v0 }
 0x144   : > { %v1831_v5 = vpop.eup %1830  ;;  %v489_v9 = vmul.f32 %v1618_v61, %v478_v3  ;;  %v2250_v3 = vrot.slane %v890_v55, %v885_v46 }
 0x145   : > { %v499_v7 = vadd.f32 %v1619_v2, %v488_v4  ;;  %v479_v8 = vmul.f32 %v1831_v5, %v2056_v12  ;;  %v1776_v12 = vld [vmem:[%s2454_s6 + $0x70] ss:$8 sps:$4 sm:$0xff]  }
 0x146   : > { %v500_v13 = vadd.f32 %v1619_v2, %v489_v9 }
 0x147   : > { %v502_v10 = vpack.c.bf16 %v499_v7, %v498_v6  ;;  %v490_v11 = vmul.f32 %v1618_v61, %v479_v8  ;;  %v2243_v61 = vrot.slane %v886_v52, %v885_v46 }
 0x149   : > { %697 = vmatmul.mubr.bf16.vlgmr.msra.gmra.mxu0 %v502_v10  ;;  %1713 = vmatprep.mubr.bf16.mxu1 %v502_v10  ;;  %v501_v14 = vadd.f32 %v1619_v2, %v490_v11  ;;  %v2248_v2 = vrot.slane %v836_v54, %v2227_v45 }
 0x14a   : > { %706 = vmatprep.mubr.bf16.mxu0 %v1955_v41  ;;  %1123 = vmatpush1.bf16.msra.mxu0 %v1776_v12 }
 0x14b   : > { %v503_v15 = vpack.c.bf16 %v501_v14, %v500_v13  ;;  %1124 = vmatprep.subr.bf16.mxu0 %v1781_v17 }
 0x14d   : > { %1714 = vmatmul.mubr.bf16.vlgmr.msra.gmra.mxu1 %v503_v15 }
 0x14e   : > { %1125 = vmatpush1.bf16.msra.mxu0 %v1779_v18 }
 0x14f   : > { %1126 = vmatprep.subr.bf16.mxu0 %v1784_v19 }
 0x151   : > { %707 = vmatmul.mubr.bf16.gmra.mxu0 %v503_v15 }
 0x152   : > { %1127 = vmatpush1.bf16.msra.mxu0 %v1782_v20 }
 0x153   : > { %1128 = vmatprep.subr.bf16.mxu0 %v1787_v21 }
 0x156   : > { %1129 = vmatpush1.bf16.msra.mxu0 %v1785_v22 }
 0x157   : > { %1130 = vmatprep.subr.bf16.mxu0 %v1790_v23 }
 0x15a   : > { %1131 = vmatpush1.bf16.msra.mxu0 %v1788_v24 }
 0x15b   : > { %1132 = vmatprep.subr.bf16.mxu0 %v1793_v25 }
 0x15e   : > { %1133 = vmatpush1.bf16.msra.mxu0 %v1791_v26 }
 0x15f   : > { %1134 = vmatprep.subr.bf16.mxu0 %v1796_v27 }
 0x162   : > { %1135 = vmatpush1.bf16.msra.mxu0 %v1794_v28 }
 0x163   : > { %1136 = vmatprep.subr.bf16.mxu0 %v1799_v29 }
 0x166   : > { %1137 = vmatpush1.bf16.msra.mxu0 %v1797_v30 }
 0x167   : > { %1146 = vmatprep.subr.bf16.mxu0 %v1802_v31 }
 0x16a   : > { %1147 = vmatpush2.bf16.msra.mxu0 %v1800_v32 }
 0x16b   : > { %1148 = vmatprep.subr.bf16.mxu0 %v1805_v33 }
 0x16e   : > { %1149 = vmatpush2.bf16.msra.mxu0 %v1803_v34 }
 0x16f   : > { %1150 = vmatprep.subr.bf16.mxu0 %v1808_v35 }
 0x172   : > { %1151 = vmatpush2.bf16.msra.mxu0 %v1806_v36 }
 0x173   : > { %1152 = vmatprep.subr.bf16.mxu0 %v1811_v38 }
 0x176   : > { %1153 = vmatpush2.bf16.msra.mxu0 %v1809_v37 }
 0x209   : > { %v2231_v53 = vpop.f32.mrf.mxu0 }
 0x20a   : > { %v784_v62 = vrot.slane %v2231_v53, 7  ;;  %v803_v63 = vrot.slane %v2231_v53, 1  ;;  %v2253_v4 = vmul.f32 %v866_v56, %v2231_v53 }
 0x20b   : > { %v2234_v57 = vpop.f32.mrf.mxu0 }
 0x20c   : > { %v1269_v59 = vsub.f32 0.0, %v2234_v57  ;;  %v785_v8 = vrot.slane %v2234_v57, 7  ;;  %v806_v9 = vrot.slane %v2234_v57, 1  ;;  %v2259_v10 = vmul.f32 %v2237_v58, %v2234_v57 }
 0x20d   : > { %v702_v0 = vpop.f32.mrf.mxu0  ;;  %v1715_v1 = vpop.f32.mrf.mxu1 }
 0x20e   : > { %v1275_v5 = vmul.f32 1.442695, %v1269_v59  ;;  %v786_v6 = vrot.slane %v702_v0, 7  ;;  %v804_v7 = vrot.slane %v702_v0, 1  ;;  %v1274_v11 = vsub.f32 0.0, %v1715_v1 }
 0x20f   : > { %v704_v13 = vpop.f32.mrf.mxu0  ;;  %v751_v14 = vpop.f32.mrf.mxu1  ;;  %v873_v18 = vmul.f32 %v866_v56, %v702_v0 }
 0x210   : > { %1832 = vpow2.f32 %v1275_v5  ;;  %v787_v15 = vsel %vm783_vm1, %v784_v62, %v786_v6  ;;  %v805_v16 = vsel %vm802_vm2, %v803_v63, %v804_v7  ;;  %v788_v12 = vrot.slane %v704_v13, 7 }
 0x211   : > { %v849_v17 = vmul.f32 %v2241_v60, %v787_v15  ;;  %v1285_v19 = vmul.f32 1.442695, %v1274_v11  ;;  %v807_v20 = vrot.slane %v704_v13, 1  ;;  %v708_v21 = vpop.f32.mrf.mxu0  ;;  %v1716_v22 = vpop.f32.mrf.mxu1  ;;  %v901_v23 = vmul.f32 %v2243_v61, %v805_v16 }
 0x212   : > { %v789_v24 = vsel %vm783_vm1, %v785_v8, %v788_v12  ;;  %v1271_v25 = vsub.f32 0.0, %v704_v13  ;;  %v1270_v26 = vsub.f32 0.0, %v751_v14  ;;  %v874_v30 = vmul.f32 %v2237_v58, %v704_v13 }
 0x213   : > { %v879_v27 = vadd.f32 %v873_v18, %v849_v17  ;;  %v808_v28 = vsel %vm802_vm2, %v806_v9, %v807_v20  ;;  %v850_v29 = vmul.f32 %v2248_v2, %v789_v24  ;;  %v710_v31 = vpop.f32.mrf.mxu0  ;;  %1834 = vpow2.f32 %v1285_v19  ;;  %v754_v46 = vpop.f32.mrf.mxu1 }
 0x214   : > { %v1279_v32 = vmul.f32 1.442695, %v1271_v25  ;;  %v1277_v33 = vmul.f32 1.442695, %v1270_v26  ;;  %v790_v34 = vrot.slane %v708_v21, 7  ;;  %v902_v36 = vmul.f32 %v2250_v3, %v808_v28 }
 0x215   : > { %v880_v35 = vadd.f32 %v874_v30, %v850_v29  ;;  %v809_v37 = vrot.slane %v708_v21, 1  ;;  %v792_v38 = vrot.slane %v710_v31, 7  ;;  %v712_v39 = vpop.f32.mrf.mxu0  ;;  %v875_v43 = vmul.f32 %v866_v56, %v708_v21 }
 0x216   : > { %1836 = vpow2.f32 %v1279_v32  ;;  %v791_v40 = vsel %vm783_vm1, %v786_v6, %v790_v34  ;;  %v811_v44 = vrot.slane %v710_v31, 1  ;;  %v876_v54 = vmul.f32 %v2237_v58, %v710_v31 }
 0x217   : > { %1838 = vpow2.f32 %v1277_v33  ;;  %v810_v47 = vsel %vm802_vm2, %v804_v7, %v809_v37  ;;  %v851_v48 = vmul.f32 %v2241_v60, %v791_v40  ;;  %v793_v49 = vsel %vm783_vm1, %v788_v12, %v792_v38  ;;  %v714_v50 = vpop.f32.mrf.mxu0 }
 0x218   : > { %v903_v51 = vmul.f32 %v2243_v61, %v810_v47  ;;  %v812_v52 = vsel %vm802_vm2, %v807_v20, %v811_v44  ;;  %v1273_v55 = vsub.f32 0.0, %v710_v31  ;;  %v852_v59 = vmul.f32 %v2248_v2, %v793_v49 }
 0x219   : > { %v904_v56 = vmul.f32 %v2250_v3, %v812_v52  ;;  %v1272_v63 = vsub.f32 0.0, %v754_v46  ;;  %v772_v0 = vmul.f32 0.0, %v712_v39  ;;  %v881_v1 = vadd.f32 %v875_v43, %v851_v48 }
 0x21a   : > { %v2283_v5 = vadd.f32 %v903_v51, %v879_v27  ;;  %v1283_v6 = vmul.f32 1.442695, %v1273_v55  ;;  %v773_v7 = vmul.f32 0.0, %v714_v50  ;;  %v882_v22 = vadd.f32 %v876_v54, %v852_v59 }
 0x21b   : > { %v1281_v9 = vmul.f32 1.442695, %v1272_v63  ;;  %v800_v11 = vsel %vm783_vm1, %v772_v0, %v784_v62  ;;  %v821_v13 = vrot.slane %v772_v0, 2  ;;  %v2288_v14 = vadd.f32 %v904_v56, %v880_v35 }
 0x21c   : > { %v915_v58 = vsub.f32 0.0, %v2283_v5  ;;  %1840 = vpow2.f32 %v1283_v6  ;;  %v847_v15 = vmul.f32 %v2241_v60, %v800_v11  ;;  %v801_v16 = vsel %vm783_vm1, %v773_v7, %v785_v8 }
 0x21d   : > { %v1833_v12 = vpop.eup %1832  ;;  %1842 = vpow2.f32 %v1281_v9  ;;  %v825_v17 = vsel %vm802_vm2, %v809_v37, %v821_v13  ;;  %v822_v18 = vrot.slane %v773_v7, 2  ;;  %v848_v53 = vmul.f32 %v2248_v2, %v801_v16 }
 0x21e   : > { %v1287_v62 = vadd.f32 1.0, %v1833_v12  ;;  %v923_v19 = vmul.f32 1.442695, %v915_v58  ;;  %v877_v20 = vadd.f32 %v2253_v4, %v847_v15  ;;  %v905_v21 = vmul.f32 %v2243_v61, %v825_v17 }
 0x21f   : > { %v826_v60 = vsel %vm802_vm2, %v811_v44, %v822_v18  ;;  %v878_v57 = vadd.f32 %v2259_v10, %v848_v53  ;;  %v916_v8 = vsub.f32 0.0, %v2288_v14 }
 0x220   : > { %1844 = vrcp.f32 %v1287_v62  ;;  %v2302_v24 = vadd.f32 %v901_v23, %v877_v20  ;;  %v906_v25 = vmul.f32 %v2250_v3, %v826_v60  ;;  %v2305_v26 = vadd.f32 %v905_v21, %v881_v1  ;;  %v1835_v2 = vpop.eup %1834  ;;  %v1812_v60 = vld [vmem:[%s2456_s8 + $0x38] sm:$0xff]  }
 0x221   : > { %v2307_v27 = vadd.f32 %v902_v36, %v878_v57  ;;  %v925_v4 = vmul.f32 1.442695, %v916_v8  ;;  %1846 = vpow2.f32 %v923_v19  ;;  %v1292_v46 = vadd.f32 1.0, %v1835_v2  ;;  %1445 = vmatpush1.bf16.msra.mxu1 %v1812_v60  ;;  %v1813_v57 = vld [vmem:[%s2456_s8 + $0x30] sm:$0xff]   ;;  %v1814_v8 = vld [vmem:[%s2456_s8 + $0x28] sm:$0xff]  }
 0x222   : > { %v913_v61 = vsub.f32 0.0, %v2302_v24  ;;  %v2310_v28 = vadd.f32 %v906_v25, %v882_v22  ;;  %v917_v30 = vsub.f32 0.0, %v2305_v26  ;;  %1446 = vmatprep.subr.bf16.mxu1 %v1955_v41  ;;  %v1816_v25 = vld [vmem:[%s2456_s8 + $0x18] sm:$0xff]   ;;  %v1818_v2 = vld [vmem:[%s2456_s8 + $0x8] sm:$0xff]  }
 0x223   : > { %v1837_v29 = vpop.eup %1836  ;;  %v914_v10 = vsub.f32 0.0, %v2307_v27  ;;  %1848 = vpow2.f32 %v925_v4  ;;  %v1820_v4 = vld [vmem:[%s2456_s8 + $0x58] sm:$0xff]  }
 0x224   : > { %v1839_v23 = vpop.eup %1838  ;;  %v1289_v31 = vadd.f32 1.0, %v1837_v29  ;;  %v919_v32 = vmul.f32 1.442695, %v913_v61  ;;  %v918_v3 = vsub.f32 0.0, %v2310_v28  ;;  %v927_v36 = vmul.f32 1.442695, %v917_v30 }
 0x225   : > { %v1288_v33 = vadd.f32 1.0, %v1839_v23  ;;  %v921_v34 = vmul.f32 1.442695, %v914_v10  ;;  %1447 = vmatpush1.bf16.msra.mxu1 %v1813_v57  ;;  %v1821_v61 = vld [vmem:[%s2456_s8 + $0x50] sm:$0xff]   ;;  %v1823_v29 = vld [vmem:[%s2456_s8 + $0x40] sm:$0xff]  }
 0x226   : > { %1850 = vrcp.f32 %v1289_v31  ;;  %v929_v35 = vmul.f32 1.442695, %v918_v3  ;;  %1448 = vmatprep.subr.bf16.mxu1 %v1955_v41  ;;  %v983_v10 = vld [vmem:[%s2455_s7] sm:$0x3] }
 0x227   : > { %1852 = vrcp.f32 %v1288_v33  ;;  %v988_v30 = vrot.slane %v983_v10, %v2227_v45  ;;  %v992_v23 = vrot.slane %v983_v10, %v2222_v42 }
 0x228   : > { %1854 = vpow2.f32 %v919_v32 }
 0x229   : > { %v1841_v37 = vpop.eup %1840  ;;  %1856 = vpow2.f32 %v921_v34  ;;  %1449 = vmatpush1.bf16.msra.mxu1 %v1814_v8 }
 0x22a   : > { %v1843_v38 = vpop.eup %1842  ;;  %v1291_v39 = vadd.f32 1.0, %v1841_v37  ;;  %1858 = vpow2.f32 %v929_v35  ;;  %1450 = vmatprep.subr.bf16.mxu1 %v1955_v41 }
 0x22b   : > { %v1290_v40 = vadd.f32 1.0, %v1843_v38  ;;  %1860 = vpow2.f32 %v927_v36 }
 0x22c   : > { %1862 = vrcp.f32 %v1291_v39 }
 0x22d   : > { %v1845_v43 = vpop.eup %1844  ;;  %1864 = vrcp.f32 %v1290_v40 }
 0x22e   : > { %1311 = vrot.lane.b32.xlu0 %v1845_v43, %s1956_s29  ;;  %v1847_v44 = vpop.eup %1846  ;;  %1866 = vrcp.f32 %v1292_v46 }
 0x22f   : > { %v933_v48 = vadd.f32 1.0, %v1847_v44 }
 0x230   : > { %v1849_v47 = vpop.eup %1848 }
 0x231   : > { %v934_v50 = vadd.f32 1.0, %v1849_v47  ;;  %1868 = vrcp.f32 %v933_v48 }
 0x233   : > { %v1851_v49 = vpop.eup %1850  ;;  %1870 = vrcp.f32 %v934_v50 }
 0x234   : > { %v1853_v51 = vpop.eup %1852 }
 0x235   : > { %v1855_v52 = vpop.eup %1854  ;;  %1313 = vrot.lane.b32.xlu1 %v1853_v51, %s1956_s29 }
 0x236   : > { %v1857_v54 = vpop.eup %1856  ;;  %v931_v55 = vadd.f32 1.0, %v1855_v52 }
 0x237   : > { %v1859_v59 = vpop.eup %1858  ;;  %v932_v56 = vadd.f32 1.0, %v1857_v54 }
 0x238   : > { %v1861_v63 = vpop.eup %1860  ;;  %1872 = vrcp.f32 %v931_v55  ;;  %v936_v0 = vadd.f32 1.0, %v1859_v59 }
 0x239   : > { %v1863_v1 = vpop.eup %1862  ;;  %1874 = vrcp.f32 %v932_v56  ;;  %1315 = vrot.lane.b32.xlu1 %v1851_v49, %s1956_s29  ;;  %v935_v6 = vadd.f32 1.0, %v1861_v63 }
 0x23a   : > { %1876 = vrcp.f32 %v936_v0  ;;  %1319 = vrot.lane.b32.xlu0 %v1863_v1, %s1956_s29  ;;  %v1865_v7 = vpop.eup %1864 }
 0x23b   : > { %1878 = vrcp.f32 %v935_v6  ;;  %v1867_v9 = vpop.eup %1866 }
 0x23d   : > { %1317 = vrot.lane.b32.xlu1 %v1865_v7, %s1956_s29 }
 0x23e   : > { %v1869_v11 = vpop.eup %1868 }
 0x23f   : > { %v2331_v53 = vmul.f32 %v1869_v11, %v2283_v5 }
 0x240   : > { %v1871_v13 = vpop.eup %1870 }
 0x241   : > { %1321 = vrot.lane.b32.xlu1 %v1867_v9, %s1956_s29  ;;  %v2328_v18 = vmul.f32 %v1871_v13, %v2288_v14 }
 0x245   : > { %v1873_v58 = vpop.eup %1872 }
 0x246   : > { %v1875_v15 = vpop.eup %1874  ;;  %v2322_v16 = vmul.f32 %v1873_v58, %v2302_v24  ;;  %v1815_v24 = vld [vmem:[%s2456_s8 + $0x20] sm:$0xff]  }
 0x247   : > { %v1877_v12 = vpop.eup %1876  ;;  %v2325_v17 = vmul.f32 %v1875_v15, %v2307_v27  ;;  %1451 = vmatpush1.bf16.msra.mxu1 %v1815_v24  ;;  %v1819_v27 = vld [vmem:[%s2456_s8] sm:$0xff]  }
 0x248   : > { %v2334_v62 = vmul.f32 %v1877_v12, %v2310_v28  ;;  %v955_v20 = vpack.c.bf16 %v2331_v53, %v2322_v16  ;;  %v1879_v21 = vpop.eup %1878  ;;  %1452 = vmatprep.subr.bf16.mxu1 %v1955_v41  ;;  %v1822_v28 = vld [vmem:[%s2456_s8 + $0x48] sm:$0xff]  }
 0x249   : > { %v956_v19 = vpack.c.bf16 %v2328_v18, %v2325_v17  ;;  %v2345_v5 = vmul.f32 %v1879_v21, %v2305_v26  ;;  %v1817_v26 = vld [vmem:[%s2456_s8 + $0x10] sm:$0xff]  }
 0x24a   : > { %v958_v14 = vpack.c.bf16 %v2334_v62, %v2334_v62 }
 0x24b   : > { %1668 = vmatprep.mubr.msk.bf16.mxu0 %vm1115_vm3, %v956_v19  ;;  %v957_v22 = vpack.c.bf16 %v2345_v5, %v2345_v5  ;;  %1453 = vmatpush1.bf16.msra.mxu1 %v1816_v25 }
 0x24c   : > { %1155 = vmatmul.mubr.bf16.vlgmr.msra.gmra.mxu0 %v955_v20  ;;  %1454 = vmatprep.subr.bf16.mxu1 %v1955_v41 }
 0x24d   : > { %1669 = vmatprep.mubr.msk.bf16.mxu0 %vm1115_vm3, %v958_v14 }
 0x24f   : > { %1455 = vmatpush1.bf16.msra.mxu1 %v1817_v26 }
 0x250   : > { %1456 = vmatprep.subr.bf16.mxu1 %v1955_v41 }
 0x253   : > { %1457 = vmatpush1.bf16.msra.mxu1 %v1818_v2 }
 0x254   : > { %1165 = vmatmul.mubr.bf16.gmra.mxu0 %v957_v22  ;;  %1458 = vmatprep.subr.bf16.mxu1 %v1955_v41 }
 0x257   : > { %1459 = vmatpush1.bf16.msra.mxu1 %v1819_v27 }
 0x258   : > { %1468 = vmatprep.subr.bf16.mxu1 %v1955_v41 }
 0x25b   : > { %1469 = vmatpush2.bf16.msra.mxu1 %v1820_v4 }
 0x25c   : > { %1470 = vmatprep.subr.bf16.mxu1 %v1955_v41 }
 0x25f   : > { %1471 = vmatpush2.bf16.msra.mxu1 %v1821_v61 }
 0x260   : > { %1472 = vmatprep.subr.bf16.mxu1 %v1955_v41 }
 0x263   : > { %1473 = vmatpush2.bf16.msra.mxu1 %v1822_v28 }
 0x264   : > { %1474 = vmatprep.subr.bf16.mxu1 %v1955_v41 }
 0x267   : > { %1475 = vmatpush2.bf16.msra.mxu1 %v1823_v29 }
 0x30c   : > { %v1156_v31 = vpop.f32.mrf.mxu0 }
 0x30d   : > { %v1157_v32 = vadd.f32 %v1156_v31, %v988_v30 }
 0x30e   : > { %v1158_v3 = vpop.f32.mrf.mxu0 }
 0x30f   : > { %v1179_v33 = vand.u32 2147483647, %v1157_v32  ;;  %v1159_v34 = vadd.f32 %v1158_v3, %v992_v23  ;;  %v1173_v8 = vmax.f32 %v1157_v32, 0.0 }
 0x310   : > { %v1160_v35 = vpop.f32.mrf.mxu0 }
 0x311   : > { %v1185_v36 = vsub.f32 0.0, %v1179_v33  ;;  %v1180_v37 = vand.u32 2147483647, %v1159_v34  ;;  %v2401_v38 = vadd.f32 %v1160_v35, %v988_v30  ;;  %v1174_v2 = vmax.f32 %v1159_v34, 0.0 }
 0x312   : > { %v1162_v41 = vpop.f32.mrf.mxu0 }
 0x313   : > { %v1191_v39 = vmul.f32 1.442695, %v1185_v36  ;;  %v1186_v40 = vsub.f32 0.0, %v1180_v37  ;;  %v1181_v43 = vand.u32 2147483647, %v2401_v38  ;;  %v2404_v44 = vadd.f32 %v1162_v41, %v992_v23 }
 0x314   : > { %v1166_v45 = vpop.f32.mrf.mxu0  ;;  %v1175_v29 = vmax.f32 %v2401_v38, 0.0 }
 0x315   : > { %1880 = vpow2.f32 %v1191_v39  ;;  %v1193_v42 = vmul.f32 1.442695, %v1186_v40  ;;  %v1187_v46 = vsub.f32 0.0, %v1181_v43  ;;  %v2406_v47 = vadd.f32 %v1166_v45, %v988_v30 }
 0x316   : > { %v1182_v48 = vand.u32 2147483647, %v2404_v44  ;;  %v1168_v49 = vpop.f32.mrf.mxu0  ;;  %v1176_v35 = vmax.f32 %v2404_v44, 0.0 }
 0x317   : > { %1882 = vpow2.f32 %v1193_v42  ;;  %v1195_v50 = vmul.f32 1.442695, %v1187_v46  ;;  %v1183_v51 = vand.u32 2147483647, %v2406_v47  ;;  %v2410_v54 = vadd.f32 %v1168_v49, %v992_v23 }
 0x318   : > { %v1188_v52 = vsub.f32 0.0, %v1182_v48  ;;  %v1170_v55 = vpop.f32.mrf.mxu0  ;;  %v1177_v32 = vmax.f32 %v2406_v47, 0.0 }
 0x319   : > { %1884 = vpow2.f32 %v1195_v50  ;;  %v1189_v59 = vsub.f32 0.0, %v1183_v51  ;;  %v1184_v63 = vand.u32 2147483647, %v2410_v54  ;;  %v1178_v42 = vmax.f32 %v2410_v54, 0.0 }
 0x31a   : > { %v1197_v56 = vmul.f32 1.442695, %v1188_v52  ;;  %v1171_v0 = vpop.f32.mrf.mxu0 }
 0x31b   : > { %v1199_v1 = vmul.f32 1.442695, %v1189_v59  ;;  %v1190_v6 = vsub.f32 0.0, %v1184_v63 }
 0x31c   : > { %1886 = vpow2.f32 %v1197_v56 }
 0x31d   : > { %1888 = vpow2.f32 %v1199_v1  ;;  %v1201_v7 = vmul.f32 1.442695, %v1190_v6 }
 0x31f   : > { %1890 = vpow2.f32 %v1201_v7  ;;  %v1314_v7 = vpop.permute.xlu1 %1313 }
 0x322   : > { %v1881_v9 = vpop.eup %1880 }
 0x323   : > { %v1203_v11 = vadd.f32 1.0, %v1881_v9 }
 0x324   : > { %v1883_v13 = vpop.eup %1882 }
 0x325   : > { %1892 = vlog2.f32 %v1203_v11  ;;  %v1204_v58 = vadd.f32 1.0, %v1883_v13 }
 0x326   : > { %v1885_v15 = vpop.eup %1884 }
 0x327   : > { %1894 = vlog2.f32 %v1204_v58  ;;  %v1205_v12 = vadd.f32 1.0, %v1885_v15  ;;  %v1316_v58 = vpop.permute.xlu1 %1315 }
 0x329   : > { %v1887_v19 = vpop.eup %1886  ;;  %1896 = vlog2.f32 %v1205_v12 }
 0x32a   : > { %v1889_v20 = vpop.eup %1888  ;;  %v1206_v21 = vadd.f32 1.0, %v1887_v19 }
 0x32b   : > { %v1207_v14 = vadd.f32 1.0, %v1889_v20  ;;  %v1318_v20 = vpop.permute.xlu1 %1317 }
 0x32c   : > { %1898 = vlog2.f32 %v1206_v21  ;;  %v1891_v22 = vpop.eup %1890 }
 0x32d   : > { %1900 = vlog2.f32 %v1207_v14  ;;  %v1208_v60 = vadd.f32 1.0, %v1891_v22 }
 0x32f   : > { %1902 = vlog2.f32 %v1208_v60 }
 0x332   : > { %v1893_v57 = vpop.eup %1892 }
 0x333   : > { %v1210_v24 = vmul.f32 0.6931472, %v1893_v57  ;;  %v1324_v57 = vsel %vm1115_vm3, %v1316_v58, %v1318_v20 }
 0x334   : > { %v1895_v25 = vpop.eup %1894 }
 0x335   : > { %v1221_v26 = vadd.f32 %v1210_v24, %v1173_v8  ;;  %v1212_v27 = vmul.f32 0.6931472, %v1895_v25  ;;  %v1312_v24 = vpop.permute.xlu0 %1311 }
 0x336   : > { %v1897_v4 = vpop.eup %1896 }
 0x337   : > { %v1227_v61 = vsub.f32 0.0, %v1221_v26  ;;  %v1222_v28 = vadd.f32 %v1212_v27, %v1174_v2  ;;  %v1214_v10 = vmul.f32 0.6931472, %v1897_v4  ;;  %v1323_v2 = vsel %vm1115_vm3, %v1312_v24, %v1314_v7 }
 0x339   : > { %v1899_v30 = vpop.eup %1898  ;;  %v1233_v23 = vmul.f32 1.442695, %v1227_v61  ;;  %v1228_v31 = vsub.f32 0.0, %v1222_v28  ;;  %v1223_v3 = vadd.f32 %v1214_v10, %v1175_v29 }
 0x33a   : > { %v1901_v33 = vpop.eup %1900  ;;  %v1216_v36 = vmul.f32 0.6931472, %v1899_v30  ;;  %v1320_v30 = vpop.permute.xlu0 %1319 }
 0x33b   : > { %1904 = vpow2.f32 %v1233_v23  ;;  %v1235_v37 = vmul.f32 1.442695, %v1228_v31  ;;  %v1229_v34 = vsub.f32 0.0, %v1223_v3  ;;  %v1218_v41 = vmul.f32 0.6931472, %v1901_v33 }
 0x33c   : > { %v1224_v39 = vadd.f32 %v1216_v36, %v1176_v35  ;;  %v1903_v40 = vpop.eup %1902 }
 0x33d   : > { %1906 = vpow2.f32 %v1235_v37  ;;  %v1237_v43 = vmul.f32 1.442695, %v1229_v34  ;;  %v1225_v38 = vadd.f32 %v1218_v41, %v1177_v32  ;;  %v1220_v46 = vmul.f32 0.6931472, %v1903_v40  ;;  %v1928_v32 = vld [vmem:[%s2042_s24] sm:$0xff]  ;;  %v1929_v40 = vld [vmem:[%s2042_s24 + $0x8] sm:$0xff] }
 0x33e   : > { %v1230_v45 = vsub.f32 0.0, %v1224_v39 }
 0x33f   : > { %1908 = vpow2.f32 %v1237_v43  ;;  %v1231_v48 = vsub.f32 0.0, %v1225_v38  ;;  %v1226_v44 = vadd.f32 %v1220_v46, %v1178_v42  ;;  %v1930_v46 = vld [vmem:[%s2042_s24 + $0x10] sm:$0xff] }
 0x340   : > { %v1239_v49 = vmul.f32 1.442695, %v1230_v45 }
 0x341   : > { %v1241_v50 = vmul.f32 1.442695, %v1231_v48  ;;  %v1232_v47 = vsub.f32 0.0, %v1226_v44 }
 0x342   : > { %1910 = vpow2.f32 %v1239_v49 }
 0x343   : > { %1912 = vpow2.f32 %v1241_v50  ;;  %v1243_v51 = vmul.f32 1.442695, %v1232_v47 }
 0x345   : > { %1914 = vpow2.f32 %v1243_v51 }
 0x348   : > { %v1905_v52 = vpop.eup %1904 }
 0x349   : > { %v1245_v55 = vadd.f32 1.0, %v1905_v52 }
 0x34a   : > { %v1907_v59 = vpop.eup %1906 }
 0x34b   : > { %v1246_v56 = vadd.f32 1.0, %v1907_v59  ;;  %1916 = vrcp.f32 %v1245_v55 }
 0x34c   : > { %v1909_v63 = vpop.eup %1908 }
 0x34d   : > { %v1247_v0 = vadd.f32 1.0, %v1909_v63  ;;  %1918 = vrcp.f32 %v1246_v56 }
 0x34f   : > { %v1911_v54 = vpop.eup %1910  ;;  %1920 = vrcp.f32 %v1247_v0 }
 0x350   : > { %v1913_v1 = vpop.eup %1912  ;;  %v1248_v6 = vadd.f32 1.0, %v1911_v54 }
 0x351   : > { %v1249_v9 = vadd.f32 1.0, %v1913_v1 }
 0x352   : > { %1922 = vrcp.f32 %v1248_v6  ;;  %v1915_v11 = vpop.eup %1914 }
 0x353   : > { %v1250_v13 = vadd.f32 1.0, %v1915_v11  ;;  %1924 = vrcp.f32 %v1249_v9 }
 0x355   : > { %1926 = vrcp.f32 %v1250_v13 }
 0x358   : > { %v1917_v15 = vpop.eup %1916 }
 0x359   : > { %v1263_v60 = vmul.f32 %v1917_v15, %v2322_v16 }
 0x35a   : > { %v1919_v12 = vpop.eup %1918 }
 0x35b   : > { %v1264_v14 = vmul.f32 %v1919_v12, %v2325_v17  ;;  %v1332_v28 = vmul.f32 %v1323_v2, %v1263_v60  ;;  %v1322_v17 = vpop.permute.xlu1 %1321 }
 0x35c   : > { %v1921_v19 = vpop.eup %1920  ;;  %v1325_v23 = vsel %vm1115_vm3, %v1320_v30, %v1322_v17 }
 0x35d   : > { %v1265_v21 = vmul.f32 %v1921_v19, %v2331_v53  ;;  %v1333_v27 = vmul.f32 %v1314_v7, %v1264_v14 }
 0x35f   : > { %v1923_v22 = vpop.eup %1922  ;;  %v1334_v25 = vmul.f32 %v1324_v57, %v1265_v21 }
 0x360   : > { %v1266_v8 = vmul.f32 %v1923_v22, %v2328_v18  ;;  %v1925_v26 = vpop.eup %1924 }
 0x361   : > { %v1338_v10 = vpack.c.bf16 %v1334_v25, %v1332_v28  ;;  %v1267_v16 = vmul.f32 %v1925_v26, %v2345_v5 }
 0x362   : > { %v1335_v4 = vmul.f32 %v1318_v20, %v1266_v8  ;;  %v1927_v61 = vpop.eup %1926 }
 0x363   : > { %v1268_v53 = vmul.f32 %v1927_v61, %v2334_v62  ;;  %v1336_v3 = vmul.f32 %v1325_v23, %v1267_v16  ;;  %v1684_v62 = vld [vmem:[%s2457_s9] ss:$0 sm:$0xff] }
 0x364   : > { %v1339_v29 = vpack.c.bf16 %v1335_v4, %v1333_v27 }
 0x365   : > { %v1337_v18 = vmul.f32 %v1322_v17, %v1268_v53  ;;  %v1340_v33 = vpack.c.bf16 %v1336_v3, %v1336_v3 }
 0x366   : > { %1682 = vmatprep.mubr.msk.bf16.mxu1 %vm1115_vm3, %v1339_v29 }
 0x367   : > { %1477 = vmatmul.mubr.bf16.vlgmr.msra.gmra.mxu1 %v1338_v10  ;;  %v1341_v31 = vpack.c.bf16 %v1337_v18, %v1337_v18 }
 0x369   : > { %1683 = vmatprep.mubr.msk.bf16.mxu1 %vm1115_vm3, %v1341_v31 }
 0x36f   : > { %1485 = vmatmul.mubr.bf16.gmra.mxu1 %v1340_v33 }
 0x427   : > { %v1478_v5 = vpop.f32.mrf.mxu1 }
 0x428   : > { %v1499_v35 = vmul.f32 %v1684_v62, %v1478_v5 }
 0x429   : > { %v1480_v36 = vpop.f32.mrf.mxu1 }
 0x42a   : > { %v1502_v37 = vadd.f32 %v1928_v32, %v1499_v35 }
 0x42b   : > { %v1481_v34 = vpop.f32.mrf.mxu1 }
 0x42c   : > { %1505 = vst [vmem:[%s425_s12] sm:$0xff] %v1502_v37  ;;  %v1500_v41 = vmul.f32 %v1684_v62, %v1481_v34 }
 0x42d   : > { %v1483_v39 = vpop.f32.mrf.mxu1 }
 0x42e   : > { %v1503_v43 = vadd.f32 %v1929_v40, %v1500_v41 }
 0x42f   : > { %v1486_v38 = vpop.f32.mrf.mxu1 }
 0x430   : > { %1506 = vst [vmem:[%s425_s12 + $0x8] sm:$0xff] %v1503_v43  ;;  %v1501_v45 = vmul.f32 %v1684_v62, %v1486_v38 }
 0x431   : > { %v1488_v42 = vpop.f32.mrf.mxu1 }
 0x432   : > { %v1504_v48 = vadd.f32 %v1930_v46, %v1501_v45 }
 0x433   : > { %v1489_v49 = vpop.f32.mrf.mxu1 }
 0x434   : > { %1507 = vst [vmem:[%s425_s12 + $0x10] sm:$0xff] %v1504_v48 }
 0x435   : > { %v1490_v44 = vpop.f32.mrf.mxu1 }
 0x436 PF: > { %s20_s15 = sadd.s32 1, %s1953_s15   ;;  %s2459_s13 = smov %s1949_s14 }
 0x437   : > { %p17_p5 = scmp.ge.s32.totalorder %s20_s15, 4   ;;  %s2460_s14 = smov %s2462_s16 }
 0x439   :  { %19 = sbr.rel (!%p17_p5) target bundleno = 2 (0x2), region = 93 }

// kernel: forward.10
= control target key start
LH: loop header
LB: loop body
LE: loop exit
PB: predicated region body
PF: predicated region fallthrough
CT: control target
= control target key end

     0   :  { %15 = vsyncpa [#allocation3], 0  ;;  %s2334_s0 = inlined_call_operand.vmem [shape: f32[2,16,128], index: 0, kind: input, shape index: {}]   ;;  %s2335_s1 = inlined_call_operand.vmem [shape: f32[2,1,2,128], index: 1, kind: input, shape index: {}]   ;;  %s2336_s2 = inlined_call_operand.vmem [shape: f32[1,128], index: 2, kind: input, shape index: {}]   ;;  %s2337_s3 = inlined_call_operand.vmem [shape: f32[1,128], index: 3, kind: input, shape index: {}]   ;;  %s2338_s4 = inlined_call_operand.vmem [shape: bf16[128,384], index: 4, kind: input, shape index: {}]   ;;  %s2339_s5 = inlined_call_operand.hbm [shape: f32[3,192], index: 5, kind: input, shape index: {}]   ;;  %s2340_s6 = inlined_call_operand.vmem [shape: bf16[192,192], index: 6, kind: input, shape index: {}]   ;;  %s2341_s7 = inlined_call_operand.hbm [shape: f32[1,192], index: 7, kind: input, shape index: {}]   ;;  %s2342_s8 = inlined_call_operand.vmem [shape: bf16[192,128], index: 8, kind: input, shape index: {}]   ;;  %s2343_s9 = inlined_call_operand.vmem [shape: f32[1,128], index: 9, kind: input, shape index: {}]   ;;  %s2344_s10 = inlined_call_operand.vmem [shape: f32[2,16,128], index: 10, kind: output, shape index: {}]  }
   0x1   :  { %16 = vsyncpa [#allocation5], 0  ;;  %s1975_s13 = smov 0   ;;  %s1977_s14 = smov 0  }
   0x2   :  { %s1979_s15 = smov 0  }
   0x3 LB: > { %s1520_s16 = sadd.s32 4294967295, %s1914_s15   ;;  %s34_s17 = sadd.s32 1, %s1910_s14  ;;  %s1914_s15 = sphi %s1979_s15, %s22_s15   ;;  %s1910_s14 = sphi %s1977_s14, %s2354_s14   ;;  %s1906_s13 = sphi %s1975_s13, %s2353_s13  }
   0x4   : > { %p36_p0 = scmp.ge.s32.totalorder %s34_s17, 2  ;;  %p1522_p1 = scmp.ge.s32.totalorder %s1914_s15, 1 }
   0x5   : > { %p291_p2 = scmp.lt.s32.totalorder %s1914_s15, 3  ;;  %p2000_p4 = scmp.eq.s32.totalorder %s1520_s16, 0 }
   0x6   : > { %s2356_s17 = smov (%p36_p0, %s34_s17), 0  ;;  %s1916_s20 = smov [#allocation2]  }
   0x7   : > { %p1996_p3 = pnand %p1522_p1, %p291_p2  ;;  %s313_s21 = sshll.u32 %s1916_s20, 4  ;;  %s314_s21 = int_to_ptr.vmem [resolvable:$true] %s313_s21 }
   0x8   : > { %s2349_s19 = scalar_select %p2000_p4, 1, 0 }
   0x9   : > { %s2348_s18 = scalar_select %p1996_p3, 1, 0 }
   0xa   : > { %p1641_p5 = pneg %p1996_p3  ;;  %s1917_s22 = smov [#allocation4]  }
   0xb   : > { %s327_s23 = sshll.u32 %s1917_s22, 4  ;;  %s1843_s25 = scalar_lea.vmem %s314_s21, 128  ;;  %s328_s23 = int_to_ptr.vmem [resolvable:$true] %s327_s23 }
   0xc   : > { %p2008_p6 = pnand %p2000_p4, %p1641_p5  ;;  %p1844_p8 = scmp.ne.s32.totalorder %s314_s21, %s1843_s25 }
   0xd   : > { %p1851_p11 = scmp.lt.s32.totalorder %s314_s21, %s314_s21  ;;  %p1852_p12 = scmp.lt.s32.totalorder %s1843_s25, %s1843_s25 }
   0xe   : > { %p1834_p7 = pneg %p2008_p6 }
   0xf   : > { %p1853_p13 = por %p1852_p12, %p1851_p11 }
  0x10   : > { %p1846_p9 = pnand %p1844_p8, %p1834_p7 }
  0x12   : > { %p1847_p10 = pneg %p1846_p9 }
  0x14   : > { %p1854_p0 = pnand %p1853_p13, %p1847_p10 }
  0x16   : > { %1857 = shalt.err (!%p1854_p0)
}
  0x17   : > { %1644 = dma.hbm_to_vmem [thread:$0]  (!%p2008_p6), %s2339_s5, 128, %s314_s21, [#allocation3]  }
  0x18   : > { %s1869_s28 = scalar_lea.vmem %s328_s23, 32  ;;  %p1877_p8 = scmp.lt.s32.totalorder %s328_s23, %s328_s23 }
  0x19   : > { %p1870_p1 = scmp.ne.s32.totalorder %s328_s23, %s1869_s28  ;;  %p1878_p9 = scmp.lt.s32.totalorder %s1869_s28, %s1869_s28 }
  0x1b   : > { %p1872_p2 = pnand %p1870_p1, %p1834_p7  ;;  %p1879_p4 = por %p1878_p9, %p1877_p8 }
  0x1d   : > { %p1873_p5 = pneg %p1872_p2 }
  0x1f   : > { %p1880_p3 = pnand %p1879_p4, %p1873_p5 }
  0x21   : > { %1883 = shalt.err (!%p1880_p3)
}
  0x22   : > { %1647 = dma.hbm_to_vmem [thread:$0]  (!%p2008_p6), %s2341_s7, 32, %s328_s23, [#allocation5]  }
  0x23   : > { %p2351_p10 = scmp.ne.s32.totalorder %s2348_s18, 0 }
  0x24   : > { %p2352_p11 = scmp.ne.s32.totalorder (!%p2351_p10), %s2349_s19, 0 }
  0x25   : > { %369 = sbr.rel (%p2351_p10) target bundleno = 1103 (0x44f), region = 60 }
  0x2a   : > { %1897 = dma.done.wait (%p2352_p11), [#allocation3], 128  }
  0x2b   : > { %1899 = vsyncadd (%p2352_p11), [#allocation3], 4294967168 }
  0x2c   : > { %1901 = dma.done.wait (%p2352_p11), [#allocation5], 32  }
  0x2d   : > { %1903 = vsyncadd (%p2352_p11), [#allocation5], 4294967264  ;;  %p427_p3 = scmp.lt.s32.totalorder %s1906_s13, 1  ;;  %vm461_vm0 = vcmask 1041408   ;;  %v1680_v4 = vld [vmem:[%s2338_s4 + $0xac] ss:$12 sps:$4 sm:$0xff]  }
  0x2e   : > { %v1682_v5 = vld [vmem:[%s2338_s4 + $0xa8] ss:$12 sps:$4 sm:$0xff]   ;;  %v1683_v6 = vld [vmem:[%s2338_s4 + $0xb0] ss:$12 sps:$4 sm:$0xff]   ;;  %676 = vmatprep.subr.bf16.mxu0 %v1680_v4  ;;  %v1687_v22 = vld [vmem:[%s2338_s4 + $0x98] ss:$12 sps:$4 sm:$0xff]  }
  0x2f   : > { %s2358_s13 = smov (!%p427_p3, %s1906_s13), 1  ;;  %1613 = vmatprep.subr.bf16.mxu1 %v1683_v6  ;;  %677 = vmatpush1.bf16.msra.mxu0 %v1682_v5  ;;  %v1684_v20 = vld [vmem:[%s2338_s4 + $0x94] ss:$12 sps:$4 sm:$0xff]   ;;  %v1686_v21 = vld [vmem:[%s2338_s4 + $0x90] ss:$12 sps:$4 sm:$0xff]   ;;  %v1918_v34 = vmov 0  }
  0x30   : > { %s1601_s11 = sshll.u32 %s2358_s13, 4  ;;  %s1531_s12 = sshll.u32 %s2358_s13, 1  ;;  %1614 = vmatpush3.bf16.msra.mxu1 %v1683_v6  ;;  %678 = vmatprep.subr.bf16.mxu0 %v1684_v20  ;;  %v1688_v23 = vld [vmem:[%s2338_s4 + $0x7c] ss:$12 sps:$4 sm:$0xff]   ;;  %v1690_v24 = vld [vmem:[%s2338_s4 + $0x78] ss:$12 sps:$4 sm:$0xff]  }
  0x31   : > { %s2051_s20 = scalar_lea.vmem %s2334_s0, %s1601_s11  ;;  %s442_s22 = scalar_lea.vmem %s2335_s1, %s1531_s12  ;;  %1615 = vmatprep.subr.bf16.mxu1 %v1687_v22  ;;  %v1691_v25 = vld [vmem:[%s2338_s4 + $0x80] ss:$12 sps:$4 sm:$0xff]   ;;  %v1692_v26 = vld [vmem:[%s2338_s4 + $0x64] ss:$12 sps:$4 sm:$0xff]   ;;  %v1695_v28 = vld [vmem:[%s2338_s4 + $0x68] ss:$12 sps:$4 sm:$0xff]   ;;  %708 = vmatprep.mubr.bf16.mxu0 %v1918_v34 }
  0x32   : > { %v454_v0 = vld [vmem:[%s2051_s20] sm:$0xff]  ;;  %v455_v2 = vld [vmem:[%s2051_s20 + $0x8] sm:$0xff]  ;;  %v1699_v30 = vld [vmem:[%s2338_s4 + $0x50] ss:$12 sps:$4 sm:$0xff]   ;;  %vm790_vm1 = vcmask 1040384   ;;  %vm803_vm2 = vcmask 1046528   ;;  %s451_s26 = scalar_lea.vmem %s2344_s10, %s1601_s11 }
  0x33   : > { %v456_v1 = vld [vmem:[%s442_s22] sm:$0x3]  ;;  %457 = vadd.xlane.f32.xlu0 %v454_v0  ;;  %679 = vmatpush1.bf16.msra.mxu0 %v1686_v21  ;;  %v1696_v29 = vld [vmem:[%s2338_s4 + $0x4c] ss:$12 sps:$4 sm:$0xff]   ;;  %v1698_v31 = vld [vmem:[%s2338_s4 + $0x48] ss:$12 sps:$4 sm:$0xff]  }
  0x34   : > { %v462_v3 = vsel %vm461_vm0, %v456_v1, 0.0  ;;  %1616 = vmatpush3.bf16.msra.mxu1 %v1687_v22  ;;  %680 = vmatprep.subr.bf16.mxu0 %v1688_v23  ;;  %v1694_v27 = vld [vmem:[%s2338_s4 + $0x60] ss:$12 sps:$4 sm:$0xff]   ;;  %v1703_v33 = vld [vmem:[%s2338_s4 + $0x38] ss:$12 sps:$4 sm:$0xff]   ;;  %s1919_s25 = smov 64  }
  0x35   : > { %463 = vadd.xlane.f32.xlu1 %v462_v3  ;;  %1617 = vmatprep.subr.bf16.mxu1 %v1691_v25  ;;  %v1700_v32 = vld [vmem:[%s2338_s4 + $0x34] ss:$12 sps:$4 sm:$0xff]   ;;  %v1702_v35 = vld [vmem:[%s2338_s4 + $0x30] ss:$12 sps:$4 sm:$0xff]   ;;  %v1706_v38 = vld [vmem:[%s2338_s4 + $0x18] ss:$12 sps:$4 sm:$0xff]  }
  0x36   : > { %v1704_v36 = vld [vmem:[%s2338_s4 + $0x1c] ss:$12 sps:$4 sm:$0xff]   ;;  %v1707_v37 = vld [vmem:[%s2338_s4 + $0x20] ss:$12 sps:$4 sm:$0xff]   ;;  %v1708_v39 = vld [vmem:[%s2338_s4 + $0x4] ss:$12 sps:$4 sm:$0xff]  }
  0x37   : > { %459 = vadd.xlane.f32.xlu0 %v455_v2  ;;  %681 = vmatpush1.bf16.msra.mxu0 %v1690_v24  ;;  %v1711_v40 = vld [vmem:[%s2338_s4 + $0x8] ss:$12 sps:$4 sm:$0xff]   ;;  %v1710_v41 = vld [vmem:[%s2338_s4] ss:$12 sps:$4 sm:$0xff]   ;;  %v1712_v4 = vld [vmem:[%s2340_s6 + $0x70] ss:$8 sps:$4 sm:$0xff]  }
  0x38   : > { %1618 = vmatpush3.bf16.msra.mxu1 %v1691_v25  ;;  %682 = vmatprep.subr.bf16.mxu0 %v1692_v26  ;;  %v1534_v53 = vld [vmem:[%s2336_s2] ss:$0 sm:$0xff]  ;;  %v1714_v3 = vld [vmem:[%s2340_s6 + $0x74] ss:$8 sps:$4 sm:$0xff]   ;;  %v1717_v5 = vld [vmem:[%s2340_s6 + $0x64] ss:$8 sps:$4 sm:$0xff]  }
  0x39   : > { %1619 = vmatprep.subr.bf16.mxu1 %v1695_v28  ;;  %v1535_v59 = vld [vmem:[%s2337_s3] ss:$0 sm:$0xff]  ;;  %v1736_v20 = vld [vmem:[%s2340_s6 + $0xb0] ss:$8 sps:$4 sm:$0xff]   ;;  %v1741_v21 = vld [vmem:[%s2340_s6 + $0xa4] ss:$8 sps:$4 sm:$0xff]  }
  0x3a   : > { %v1715_v6 = vld [vmem:[%s2340_s6 + $0x60] ss:$8 sps:$4 sm:$0xff]   ;;  %v1744_v23 = vld [vmem:[%s2340_s6 + $0x94] ss:$8 sps:$4 sm:$0xff]   ;;  %v1742_v24 = vld [vmem:[%s2340_s6 + $0x90] ss:$8 sps:$4 sm:$0xff]  }
  0x3b   : > { %683 = vmatpush1.bf16.msra.mxu0 %v1694_v27  ;;  %v1739_v22 = vld [vmem:[%s2340_s6 + $0xa0] ss:$8 sps:$4 sm:$0xff]   ;;  %v1747_v26 = vld [vmem:[%s2340_s6 + $0x84] ss:$8 sps:$4 sm:$0xff]   ;;  %v824_v27 = vlaneseq  ;;  %vm1084_vm3 = vcmask 523264  }
  0x3c   : > { %1620 = vmatpush3.bf16.msra.mxu1 %v1695_v28  ;;  %684 = vmatprep.subr.bf16.mxu0 %v1696_v29  ;;  %v1745_v25 = vld [vmem:[%s2340_s6 + $0x80] ss:$8 sps:$4 sm:$0xff]  }
  0x3d   : > { %1621 = vmatprep.subr.bf16.mxu1 %v1699_v30  ;;  %v825_v28 = vshrl.u32 %v824_v27, 7 }
  0x3f   : > { %685 = vmatpush1.bf16.msra.mxu0 %v1698_v31  ;;  %v2228_v29 = vsub.s32 1, %v825_v28  ;;  %v822_v31 = vld [vmem:[#allocation2] sm:$0x77] }
  0x40   : > { %1622 = vmatpush3.bf16.msra.mxu1 %v1699_v30  ;;  %686 = vmatprep.subr.bf16.mxu0 %v1700_v32  ;;  %v852_v30 = vsub.s32 5, %v825_v28  ;;  %v2230_v32 = vsub.s32 0, %v825_v28 }
  0x41   : > { %1623 = vmatprep.subr.bf16.mxu1 %v1703_v33 }
  0x43   : > { %687 = vmatpush1.bf16.msra.mxu0 %v1702_v35  ;;  %v830_v35 = vsub.s32 4, %v825_v28 }
  0x44   : > { %1624 = vmatpush3.bf16.msra.mxu1 %v1703_v33  ;;  %688 = vmatprep.subr.bf16.mxu0 %v1704_v36  ;;  %v874_v33 = vsub.s32 2, %v825_v28  ;;  %v878_v36 = vsub.s32 6, %v825_v28 }
  0x45   : > { %1625 = vmatprep.subr.bf16.mxu1 %v1707_v37 }
  0x47   : > { %689 = vmatpush1.bf16.msra.mxu0 %v1706_v38  ;;  %v853_v38 = vrot.slane %v822_v31, %v852_v30 }
  0x48   : > { %1626 = vmatpush3.bf16.msra.mxu1 %v1707_v37  ;;  %690 = vmatprep.subr.bf16.mxu0 %v1708_v39  ;;  %v849_v37 = vrot.slane %v822_v31, %v2228_v29 }
  0x49   : > { %1627 = vmatprep.subr.bf16.mxu1 %v1711_v40 }
  0x4b   : > { %691 = vmatpush1.bf16.msra.mxu0 %v1710_v41  ;;  %v875_v41 = vrot.slane %v822_v31, %v874_v33 }
  0x4c   : > { %1628 = vmatpush3.bf16.msra.mxu1 %v1711_v40  ;;  %1088 = vmatprep.subr.bf16.mxu0 %v1714_v3  ;;  %v827_v40 = vrot.slane %v822_v31, %v2230_v32 }
  0x4d   : > { %1342 = vmatprep.subr.bf16.mxu1 %v1918_v34 }
  0xbc   : > { %v458_v7 = vpop.xlane.xlu0 %457 }
  0xbd   : > { %v466_v8 = vmul.f32 0.0078125, %v458_v7  ;;  %v1720_v7 = vld [vmem:[%s2340_s6 + $0x54] ss:$8 sps:$4 sm:$0xff]  }
  0xbe   : > { %v464_v9 = vpop.xlane.xlu1 %463 }
  0xbf   : > { %v468_v10 = vmul.f32 0.0078125, %v464_v9  ;;  %v2068_v11 = vsub.f32 %v454_v0, %v466_v8  ;;  %v1718_v8 = vld [vmem:[%s2340_s6 + $0x50] ss:$8 sps:$4 sm:$0xff]   ;;  %v1723_v9 = vld [vmem:[%s2340_s6 + $0x44] ss:$8 sps:$4 sm:$0xff]  }
  0xc0   : > { %v460_v13 = vpop.xlane.xlu0 %459 }
  0xc1   : > { %v2070_v12 = vsub.f32 %v456_v1, %v468_v10  ;;  %v467_v14 = vmul.f32 0.0078125, %v460_v13  ;;  %v472_v15 = vmul.f32 %v2068_v11, %v2068_v11  ;;  %v1721_v10 = vld [vmem:[%s2340_s6 + $0x40] ss:$8 sps:$4 sm:$0xff]   ;;  %v1729_v13 = vld [vmem:[%s2340_s6 + $0x24] ss:$8 sps:$4 sm:$0xff]  }
  0xc3   : > { %v474_v16 = vmul.f32 %v2070_v12, %v2070_v12  ;;  %v2076_v17 = vsub.f32 %v455_v2, %v467_v14  ;;  %475 = vadd.xlane.f32.xlu1 %v472_v15  ;;  %v1727_v14 = vld [vmem:[%s2340_s6 + $0x20] ss:$8 sps:$4 sm:$0xff]   ;;  %v1732_v15 = vld [vmem:[%s2340_s6 + $0x14] ss:$8 sps:$4 sm:$0xff]  }
  0xc5   : > { %v479_v18 = vsel %vm461_vm0, %v474_v16, 0.0  ;;  %v473_v19 = vmul.f32 %v2076_v17, %v2076_v17  ;;  %v1730_v16 = vld [vmem:[%s2340_s6 + $0x10] ss:$8 sps:$4 sm:$0xff]  }
  0xc7   : > { %480 = vadd.xlane.f32.xlu1 %v479_v18  ;;  %477 = vadd.xlane.f32.xlu0 %v473_v19  ;;  %v1733_v18 = vld [vmem:[%s2340_s6] ss:$8 sps:$4 sm:$0xff]   ;;  %v1738_v19 = vld [vmem:[%s2340_s6 + $0xb4] ss:$8 sps:$4 sm:$0xff]  }
 0x14c   : > { %v476_v42 = vpop.xlane.xlu1 %475 }
 0x14d   : > { %v482_v43 = vmul.f32 0.0078125, %v476_v42 }
 0x14f   : > { %v485_v44 = vadd.f32 1e-05, %v482_v43 }
 0x150   : > { %v481_v45 = vpop.xlane.xlu1 %480  ;;  %v478_v46 = vpop.xlane.xlu0 %477 }
 0x151   : > { %1760 = vrsqrt.f32 %v485_v44  ;;  %v484_v47 = vmul.f32 0.0078125, %v481_v45  ;;  %v483_v48 = vmul.f32 0.0078125, %v478_v46  ;;  %v831_v44 = vrot.slane %v822_v31, %v830_v35 }
 0x152   : > { %v879_v45 = vrot.slane %v822_v31, %v878_v36  ;;  %v859_v46 = vrot.slane %v849_v37, %v2228_v29 }
 0x153   : > { %v487_v49 = vadd.f32 1e-05, %v484_v47  ;;  %v486_v50 = vadd.f32 1e-05, %v483_v48  ;;  %v863_v47 = vrot.slane %v853_v38, %v2228_v29 }
 0x155   : > { %1762 = vrsqrt.f32 %v487_v49 }
 0x156   : > { %1764 = vrsqrt.f32 %v486_v50 }
 0x15e   : > { %v1761_v51 = vpop.eup %1760 }
 0x15f   : > { %v491_v52 = vmul.f32 %v1761_v51, %v2068_v11  ;;  %v1726_v11 = vld [vmem:[%s2340_s6 + $0x34] ss:$8 sps:$4 sm:$0xff]  }
 0x161   : > { %v501_v58 = vmul.f32 %v1534_v53, %v491_v52  ;;  %v837_v52 = vrot.slane %v827_v40, %v2230_v32 }
 0x162   : > { %v1763_v54 = vpop.eup %1762 }
 0x163   : > { %v1765_v55 = vpop.eup %1764  ;;  %v493_v56 = vmul.f32 %v1763_v54, %v2070_v12  ;;  %v511_v63 = vadd.f32 %v1535_v59, %v501_v58  ;;  %v1724_v12 = vld [vmem:[%s2340_s6 + $0x30] ss:$8 sps:$4 sm:$0xff]  }
 0x164   : > { %v492_v57 = vmul.f32 %v1765_v55, %v2076_v17  ;;  %v1735_v17 = vld [vmem:[%s2340_s6 + $0x4] ss:$8 sps:$4 sm:$0xff]  }
 0x165   : > { %v503_v60 = vmul.f32 %v1534_v53, %v493_v56 }
 0x166   : > { %v502_v61 = vmul.f32 %v1534_v53, %v492_v57  ;;  %v885_v53 = vrot.slane %v875_v41, %v874_v33 }
 0x167   : > { %v513_v62 = vadd.f32 %v1535_v59, %v503_v60 }
 0x168   : > { %v512_v0 = vadd.f32 %v1535_v59, %v502_v61 }
 0x169   : > { %v515_v1 = vpack.c.bf16 %v513_v62, %v513_v62  ;;  %v841_v62 = vrot.slane %v831_v44, %v2230_v32 }
 0x16a   : > { %v514_v2 = vpack.c.bf16 %v512_v0, %v511_v63  ;;  %v889_v63 = vrot.slane %v879_v45, %v874_v33 }
 0x16c   : > { %709 = vmatmul.mubr.bf16.vlgmr.msra.gmra.mxu0 %v514_v2  ;;  %1629 = vmatprep.mubr.bf16.mxu1 %v514_v2 }
 0x16d   : > { %1630 = vmatmul.mubr.bf16.vlgmr.msra.gmra.mxu1 %v515_v1  ;;  %718 = vmatprep.mubr.bf16.mxu0 %v1918_v34 }
 0x16e   : > { %1089 = vmatpush1.bf16.msra.mxu0 %v1712_v4 }
 0x16f   : > { %1090 = vmatprep.subr.bf16.mxu0 %v1717_v5 }
 0x172   : > { %1091 = vmatpush1.bf16.msra.mxu0 %v1715_v6 }
 0x173   : > { %1092 = vmatprep.subr.bf16.mxu0 %v1720_v7 }
 0x174   : > { %719 = vmatmul.mubr.bf16.gmra.mxu0 %v515_v1 }
 0x176   : > { %1093 = vmatpush1.bf16.msra.mxu0 %v1718_v8 }
 0x177   : > { %1094 = vmatprep.subr.bf16.mxu0 %v1723_v9 }
 0x17a   : > { %1095 = vmatpush1.bf16.msra.mxu0 %v1721_v10 }
 0x17b   : > { %1096 = vmatprep.subr.bf16.mxu0 %v1726_v11 }
 0x17e   : > { %1097 = vmatpush1.bf16.msra.mxu0 %v1724_v12 }
 0x17f   : > { %1098 = vmatprep.subr.bf16.mxu0 %v1729_v13 }
 0x182   : > { %1099 = vmatpush1.bf16.msra.mxu0 %v1727_v14 }
 0x183   : > { %1100 = vmatprep.subr.bf16.mxu0 %v1732_v15 }
 0x186   : > { %1101 = vmatpush1.bf16.msra.mxu0 %v1730_v16 }
 0x187   : > { %1102 = vmatprep.subr.bf16.mxu0 %v1735_v17 }
 0x18a   : > { %1103 = vmatpush1.bf16.msra.mxu0 %v1733_v18 }
 0x18b   : > { %1112 = vmatprep.subr.bf16.mxu0 %v1738_v19 }
 0x18e   : > { %1113 = vmatpush2.bf16.msra.mxu0 %v1736_v20 }
 0x18f   : > { %1114 = vmatprep.subr.bf16.mxu0 %v1741_v21 }
 0x192   : > { %1115 = vmatpush2.bf16.msra.mxu0 %v1739_v22 }
 0x193   : > { %1116 = vmatprep.subr.bf16.mxu0 %v1744_v23 }
 0x196   : > { %1117 = vmatpush2.bf16.msra.mxu0 %v1742_v24 }
 0x197   : > { %1118 = vmatprep.subr.bf16.mxu0 %v1747_v26 }
 0x19a   : > { %1119 = vmatpush2.bf16.msra.mxu0 %v1745_v25 }
 0x22c   : > { %v710_v39 = vpop.f32.mrf.mxu0 }
 0x22d   : > { %v1631_v42 = vpop.f32.mrf.mxu1  ;;  %v791_v54 = vrot.slane %v710_v39, 7  ;;  %v804_v59 = vrot.slane %v710_v39, 1  ;;  %v864_v4 = vmul.f32 %v859_v46, %v710_v39 }
 0x22e   : > { %v712_v43 = vpop.f32.mrf.mxu0 }
 0x22f   : > { %v1195_v48 = vsub.f32 0.0, %v712_v43  ;;  %v761_v49 = vpop.f32.mrf.mxu1  ;;  %v792_v0 = vrot.slane %v712_v43, 7  ;;  %v807_v8 = vrot.slane %v712_v43, 1  ;;  %v865_v12 = vmul.f32 %v863_v47, %v712_v43 }
 0x230   : > { %v1196_v50 = vsub.f32 0.0, %v761_v49  ;;  %v714_v51 = vpop.f32.mrf.mxu0 }
 0x231   : > { %v1199_v55 = vmul.f32 1.442695, %v1195_v48  ;;  %v793_v56 = vrot.slane %v714_v51, 7  ;;  %v805_v57 = vrot.slane %v714_v51, 1  ;;  %v1632_v58 = vpop.f32.mrf.mxu1  ;;  %v866_v14 = vmul.f32 %v859_v46, %v714_v51 }
 0x232   : > { %v1201_v60 = vmul.f32 1.442695, %v1196_v50  ;;  %v716_v61 = vpop.f32.mrf.mxu0 }
 0x233   : > { %1766 = vpow2.f32 %v1199_v55  ;;  %v794_v1 = vsel %vm790_vm1, %v791_v54, %v793_v56  ;;  %v795_v2 = vrot.slane %v716_v61, 7  ;;  %v764_v3 = vpop.f32.mrf.mxu1  ;;  %v806_v5 = vsel %vm803_vm2, %v804_v59, %v805_v57 }
 0x234   : > { %1768 = vpow2.f32 %v1201_v60  ;;  %v808_v6 = vrot.slane %v716_v61, 1  ;;  %v720_v7 = vpop.f32.mrf.mxu0  ;;  %v1197_v10 = vsub.f32 0.0, %v716_v61  ;;  %v1198_v11 = vsub.f32 0.0, %v764_v3 }
 0x235   : > { %v796_v9 = vsel %vm790_vm1, %v792_v0, %v795_v2  ;;  %v844_v13 = vmul.f32 %v837_v52, %v794_v1  ;;  %v781_v15 = vmul.f32 0.0, %v720_v7  ;;  %v890_v17 = vmul.f32 %v885_v53, %v806_v5 }
 0x236   : > { %v722_v16 = vpop.f32.mrf.mxu0  ;;  %v1203_v18 = vmul.f32 1.442695, %v1197_v10  ;;  %v1205_v19 = vmul.f32 1.442695, %v1198_v11  ;;  %v809_v21 = vsel %vm803_vm2, %v807_v8, %v808_v6  ;;  %v845_v22 = vmul.f32 %v841_v62, %v796_v9 }
 0x237   : > { %v782_v20 = vmul.f32 0.0, %v722_v16  ;;  %v801_v23 = vsel %vm790_vm1, %v781_v15, %v791_v54  ;;  %v816_v24 = vrot.slane %v781_v15, 2  ;;  %v867_v30 = vmul.f32 %v863_v47, %v716_v61 }
 0x238   : > { %v724_v25 = vpop.f32.mrf.mxu0  ;;  %1770 = vpow2.f32 %v1203_v18  ;;  %v842_v26 = vmul.f32 %v837_v52, %v801_v23  ;;  %v870_v36 = vadd.f32 %v866_v14, %v844_v13  ;;  %v891_v42 = vmul.f32 %v889_v63, %v809_v21  ;;  %v1749_v23 = vld [vmem:[%s2342_s8 + $0x30] sm:$0xff]  }
 0x239   : > { %v802_v27 = vsel %vm790_vm1, %v782_v20, %v792_v0  ;;  %v817_v28 = vrot.slane %v782_v20, 2  ;;  %1772 = vpow2.f32 %v1205_v19  ;;  %v820_v31 = vsel %vm803_vm2, %v805_v57, %v816_v24  ;;  %v1750_v24 = vld [vmem:[%s2342_s8 + $0x28] sm:$0xff]   ;;  %v1751_v25 = vld [vmem:[%s2342_s8 + $0x20] sm:$0xff]  }
 0x23a   : > { %v843_v33 = vmul.f32 %v841_v62, %v802_v27  ;;  %v725_v35 = vpop.f32.mrf.mxu0  ;;  %v868_v37 = vadd.f32 %v864_v4, %v842_v26  ;;  %v892_v38 = vmul.f32 %v885_v53, %v820_v31  ;;  %v871_v40 = vadd.f32 %v867_v30, %v845_v22  ;;  %v1748_v22 = vld [vmem:[%s2342_s8 + $0x38] sm:$0xff]   ;;  %v1753_v27 = vld [vmem:[%s2342_s8 + $0x10] sm:$0xff]   ;;  %v1755_v30 = vld [vmem:[%s2342_s8] sm:$0xff]  }
 0x23b   : > { %v821_v39 = vsel %vm803_vm2, %v808_v6, %v817_v28  ;;  %1343 = vmatpush1.bf16.msra.mxu1 %v1748_v22  ;;  %v1752_v26 = vld [vmem:[%s2342_s8 + $0x18] sm:$0xff]   ;;  %v1754_v28 = vld [vmem:[%s2342_s8 + $0x8] sm:$0xff]  }
 0x23c   : > { %v869_v41 = vadd.f32 %v865_v12, %v843_v33  ;;  %v893_v43 = vmul.f32 %v889_v63, %v821_v39  ;;  %v894_v44 = vadd.f32 %v890_v17, %v868_v37  ;;  %v896_v45 = vadd.f32 %v892_v38, %v870_v36  ;;  %1344 = vmatprep.subr.bf16.mxu1 %v1918_v34  ;;  %v1756_v31 = vld [vmem:[%s2342_s8 + $0x58] sm:$0xff]   ;;  %v1757_v33 = vld [vmem:[%s2342_s8 + $0x50] sm:$0xff]   ;;  %v1758_v35 = vld [vmem:[%s2342_s8 + $0x48] sm:$0xff]  }
 0x23d   : > { %v1759_v36 = vld [vmem:[%s2342_s8 + $0x40] sm:$0xff]   ;;  %v952_v37 = vld [vmem:[#allocation4] sm:$0x3] }
 0x23e   : > { %v895_v46 = vadd.f32 %v891_v42, %v869_v41  ;;  %v897_v48 = vadd.f32 %v893_v43, %v871_v40  ;;  %v898_v49 = vsub.f32 0.0, %v894_v44  ;;  %v900_v47 = vsub.f32 0.0, %v896_v45 }
 0x23f   : > { %1345 = vmatpush1.bf16.msra.mxu1 %v1749_v23  ;;  %v957_v38 = vrot.slane %v952_v37, %v2230_v32  ;;  %v961_v39 = vrot.slane %v952_v37, %v2228_v29 }
 0x240   : > { %v1767_v50 = vpop.eup %1766  ;;  %v899_v51 = vsub.f32 0.0, %v895_v46  ;;  %v901_v52 = vsub.f32 0.0, %v897_v48  ;;  %v902_v56 = vmul.f32 1.442695, %v898_v49  ;;  %v906_v53 = vmul.f32 1.442695, %v900_v47  ;;  %1346 = vmatprep.subr.bf16.mxu1 %v1918_v34 }
 0x241   : > { %v1769_v54 = vpop.eup %1768  ;;  %v1207_v55 = vadd.f32 1.0, %v1767_v50 }
 0x242   : > { %v1208_v57 = vadd.f32 1.0, %v1769_v54  ;;  %v904_v58 = vmul.f32 1.442695, %v899_v51  ;;  %v908_v59 = vmul.f32 1.442695, %v901_v52 }
 0x243   : > { %1774 = vrcp.f32 %v1207_v55  ;;  %1347 = vmatpush1.bf16.msra.mxu1 %v1750_v24 }
 0x244   : > { %1776 = vrcp.f32 %v1208_v57  ;;  %1348 = vmatprep.subr.bf16.mxu1 %v1918_v34 }
 0x245   : > { %1778 = vpow2.f32 %v902_v56  ;;  %v1771_v60 = vpop.eup %1770 }
 0x246   : > { %1780 = vpow2.f32 %v906_v53  ;;  %v1773_v61 = vpop.eup %1772  ;;  %v1209_v62 = vadd.f32 1.0, %v1771_v60 }
 0x247   : > { %1782 = vpow2.f32 %v904_v58  ;;  %v1210_v63 = vadd.f32 1.0, %v1773_v61  ;;  %1349 = vmatpush1.bf16.msra.mxu1 %v1751_v25 }
 0x248   : > { %1784 = vpow2.f32 %v908_v59  ;;  %1350 = vmatprep.subr.bf16.mxu1 %v1918_v34 }
 0x249   : > { %1786 = vrcp.f32 %v1209_v62 }
 0x24a   : > { %1788 = vrcp.f32 %v1210_v63 }
 0x24b   : > { %1351 = vmatpush1.bf16.msra.mxu1 %v1752_v26 }
 0x24c   : > { %1352 = vmatprep.subr.bf16.mxu1 %v1918_v34 }
 0x24f   : > { %1353 = vmatpush1.bf16.msra.mxu1 %v1753_v27 }
 0x250   : > { %v1775_v0 = vpop.eup %1774  ;;  %1354 = vmatprep.subr.bf16.mxu1 %v1918_v34 }
 0x251   : > { %v1777_v1 = vpop.eup %1776  ;;  %1223 = vrot.lane.b32.xlu0 %v1775_v0, %s1919_s25 }
 0x252   : > { %v1779_v2 = vpop.eup %1778  ;;  %1225 = vrot.lane.b32.xlu1 %v1777_v1, %s1919_s25 }
 0x253   : > { %v1781_v3 = vpop.eup %1780  ;;  %v910_v4 = vadd.f32 1.0, %v1779_v2  ;;  %1355 = vmatpush1.bf16.msra.mxu1 %v1754_v28 }
 0x254   : > { %v1783_v5 = vpop.eup %1782  ;;  %v912_v6 = vadd.f32 1.0, %v1781_v3  ;;  %1356 = vmatprep.subr.bf16.mxu1 %v1918_v34 }
 0x255   : > { %v1785_v7 = vpop.eup %1784  ;;  %1790 = vrcp.f32 %v910_v4  ;;  %v911_v8 = vadd.f32 1.0, %v1783_v5 }
 0x256   : > { %v1787_v9 = vpop.eup %1786  ;;  %1792 = vrcp.f32 %v912_v6  ;;  %v913_v10 = vadd.f32 1.0, %v1785_v7 }
 0x257   : > { %1794 = vrcp.f32 %v911_v8  ;;  %1227 = vrot.lane.b32.xlu1 %v1787_v9, %s1919_s25  ;;  %v1789_v11 = vpop.eup %1788  ;;  %1357 = vmatpush1.bf16.msra.mxu1 %v1755_v30 }
 0x258   : > { %1796 = vrcp.f32 %v913_v10  ;;  %1366 = vmatprep.subr.bf16.mxu1 %v1918_v34 }
 0x25b   : > { %1229 = vrot.lane.b32.xlu1 %v1789_v11, %s1919_s25  ;;  %1367 = vmatpush2.bf16.msra.mxu1 %v1756_v31 }
 0x25c   : > { %1368 = vmatprep.subr.bf16.mxu1 %v1918_v34 }
 0x25f   : > { %1369 = vmatpush2.bf16.msra.mxu1 %v1757_v33 }
 0x260   : > { %1370 = vmatprep.subr.bf16.mxu1 %v1918_v34 }
 0x262   : > { %v1791_v12 = vpop.eup %1790 }
 0x263   : > { %v1793_v13 = vpop.eup %1792  ;;  %v2246_v16 = vmul.f32 %v1791_v12, %v894_v44  ;;  %1371 = vmatpush2.bf16.msra.mxu1 %v1758_v35 }
 0x264   : > { %v1795_v14 = vpop.eup %1794  ;;  %v2248_v17 = vmul.f32 %v1793_v13, %v896_v45  ;;  %1372 = vmatprep.subr.bf16.mxu1 %v1918_v34 }
 0x265   : > { %v1797_v15 = vpop.eup %1796  ;;  %v2250_v18 = vmul.f32 %v1795_v14, %v895_v46 }
 0x266   : > { %v2252_v19 = vmul.f32 %v1797_v15, %v897_v48  ;;  %v926_v21 = vpack.c.bf16 %v2248_v17, %v2246_v16 }
 0x267   : > { %1373 = vmatpush2.bf16.msra.mxu1 %v1759_v36 }
 0x268   : > { %v927_v20 = vpack.c.bf16 %v2252_v19, %v2250_v18 }
 0x26a   : > { %1584 = vmatprep.mubr.msk.bf16.mxu0 %vm1084_vm3, %v927_v20 }
 0x26b   : > { %1121 = vmatmul.mubr.bf16.vlgmr.msra.gmra.mxu0 %v926_v21 }
 0x32b   : > { %v1122_v40 = vpop.f32.mrf.mxu0 }
 0x32c   : > { %v1123_v41 = vadd.f32 %v1122_v40, %v957_v38  ;;  %v1226_v40 = vpop.permute.xlu1 %1225 }
 0x32d   : > { %v1124_v42 = vpop.f32.mrf.mxu0 }
 0x32e   : > { %v1135_v43 = vand.u32 2147483647, %v1123_v41  ;;  %v1125_v44 = vadd.f32 %v1124_v42, %v961_v39  ;;  %v1131_v2 = vmax.f32 %v1123_v41, 0.0 }
 0x32f   : > { %v1126_v45 = vpop.f32.mrf.mxu0 }
 0x330   : > { %v1139_v46 = vsub.f32 0.0, %v1135_v43  ;;  %v1136_v48 = vand.u32 2147483647, %v1125_v44  ;;  %v1127_v49 = vadd.f32 %v1126_v45, %v957_v38  ;;  %v1132_v6 = vmax.f32 %v1125_v44, 0.0  ;;  %v1228_v41 = vpop.permute.xlu1 %1227 }
 0x331   : > { %v1128_v47 = vpop.f32.mrf.mxu0 }
 0x332   : > { %v1143_v50 = vmul.f32 1.442695, %v1139_v46  ;;  %v1140_v51 = vsub.f32 0.0, %v1136_v48  ;;  %v1137_v52 = vand.u32 2147483647, %v1127_v49  ;;  %v1129_v34 = vadd.f32 %v1128_v47, %v961_v39  ;;  %v1224_v47 = vpop.permute.xlu0 %1223 }
 0x333   : > { %v1133_v11 = vmax.f32 %v1127_v49, 0.0 }
 0x334   : > { %1798 = vpow2.f32 %v1143_v50  ;;  %v1145_v54 = vmul.f32 1.442695, %v1140_v51  ;;  %v1141_v55 = vsub.f32 0.0, %v1137_v52  ;;  %v1138_v32 = vand.u32 2147483647, %v1129_v34  ;;  %v1230_v45 = vpop.permute.xlu1 %1229 }
 0x335   : > { %v1134_v21 = vmax.f32 %v1129_v34, 0.0  ;;  %v1232_v51 = vsel %vm1084_vm3, %v1228_v41, %v1230_v45 }
 0x336   : > { %1800 = vpow2.f32 %v1145_v54  ;;  %v1147_v29 = vmul.f32 1.442695, %v1141_v55  ;;  %v1142_v56 = vsub.f32 0.0, %v1138_v32  ;;  %v1231_v54 = vsel %vm1084_vm3, %v1224_v47, %v1226_v40 }
 0x338   : > { %1802 = vpow2.f32 %v1147_v29  ;;  %v1149_v57 = vmul.f32 1.442695, %v1142_v56 }
 0x33a   : > { %1804 = vpow2.f32 %v1149_v57 }
 0x341   : > { %v1799_v53 = vpop.eup %1798 }
 0x342   : > { %v1151_v58 = vadd.f32 1.0, %v1799_v53  ;;  %v1830_v53 = vld [vmem:[%s2051_s20] sm:$0xff] }
 0x343   : > { %v1801_v59 = vpop.eup %1800 }
 0x344   : > { %1806 = vlog2.f32 %v1151_v58  ;;  %v1152_v60 = vadd.f32 1.0, %v1801_v59 }
 0x345   : > { %v1803_v61 = vpop.eup %1802 }
 0x346   : > { %1808 = vlog2.f32 %v1152_v60  ;;  %v1153_v62 = vadd.f32 1.0, %v1803_v61 }
 0x347   : > { %v1805_v63 = vpop.eup %1804 }
 0x348   : > { %1810 = vlog2.f32 %v1153_v62  ;;  %v1154_v0 = vadd.f32 1.0, %v1805_v63  ;;  %v1831_v62 = vld [vmem:[%s2051_s20 + $0x8] sm:$0xff] }
 0x34a   : > { %1812 = vlog2.f32 %v1154_v0 }
 0x351   : > { %v1807_v1 = vpop.eup %1806 }
 0x352   : > { %v1156_v3 = vmul.f32 0.6931472, %v1807_v1 }
 0x353   : > { %v1809_v4 = vpop.eup %1808 }
 0x354   : > { %v1163_v5 = vadd.f32 %v1156_v3, %v1131_v2  ;;  %v1158_v7 = vmul.f32 0.6931472, %v1809_v4 }
 0x355   : > { %v1811_v8 = vpop.eup %1810 }
 0x356   : > { %v1167_v9 = vsub.f32 0.0, %v1163_v5  ;;  %v1164_v10 = vadd.f32 %v1158_v7, %v1132_v6  ;;  %v1160_v12 = vmul.f32 0.6931472, %v1811_v8 }
 0x357   : > { %v1813_v13 = vpop.eup %1812 }
 0x358   : > { %v1171_v14 = vmul.f32 1.442695, %v1167_v9  ;;  %v1168_v15 = vsub.f32 0.0, %v1164_v10  ;;  %v1165_v20 = vadd.f32 %v1160_v12, %v1133_v11  ;;  %v1162_v22 = vmul.f32 0.6931472, %v1813_v13 }
 0x35a   : > { %1814 = vpow2.f32 %v1171_v14  ;;  %v1173_v23 = vmul.f32 1.442695, %v1168_v15  ;;  %v1169_v24 = vsub.f32 0.0, %v1165_v20  ;;  %v1166_v25 = vadd.f32 %v1162_v22, %v1134_v21 }
 0x35c   : > { %1816 = vpow2.f32 %v1173_v23  ;;  %v1175_v26 = vmul.f32 1.442695, %v1169_v24  ;;  %v1170_v27 = vsub.f32 0.0, %v1166_v25 }
 0x35e   : > { %1818 = vpow2.f32 %v1175_v26  ;;  %v1177_v28 = vmul.f32 1.442695, %v1170_v27 }
 0x360   : > { %1820 = vpow2.f32 %v1177_v28 }
 0x367   : > { %v1815_v30 = vpop.eup %1814 }
 0x368   : > { %v1179_v31 = vadd.f32 1.0, %v1815_v30 }
 0x369   : > { %v1817_v33 = vpop.eup %1816 }
 0x36a   : > { %v1180_v35 = vadd.f32 1.0, %v1817_v33  ;;  %1822 = vrcp.f32 %v1179_v31 }
 0x36b   : > { %v1819_v36 = vpop.eup %1818 }
 0x36c   : > { %v1181_v37 = vadd.f32 1.0, %v1819_v36  ;;  %1824 = vrcp.f32 %v1180_v35 }
 0x36d   : > { %v1821_v38 = vpop.eup %1820 }
 0x36e   : > { %1826 = vrcp.f32 %v1181_v37  ;;  %v1182_v39 = vadd.f32 1.0, %v1821_v38 }
 0x370   : > { %1828 = vrcp.f32 %v1182_v39 }
 0x377   : > { %v1823_v42 = vpop.eup %1822 }
 0x378   : > { %v1191_v50 = vmul.f32 %v1823_v42, %v2246_v16  ;;  %v1598_v16 = vld [vmem:[%s2343_s9] ss:$0 sm:$0xff] }
 0x379   : > { %v1825_v43 = vpop.eup %1824 }
 0x37a   : > { %v1192_v48 = vmul.f32 %v1825_v43, %v2250_v18  ;;  %v1237_v29 = vmul.f32 %v1231_v54, %v1191_v50 }
 0x37b   : > { %v1827_v44 = vpop.eup %1826 }
 0x37c   : > { %v1193_v46 = vmul.f32 %v1827_v44, %v2248_v17  ;;  %v1238_v55 = vmul.f32 %v1226_v40, %v1192_v48 }
 0x37d   : > { %v1829_v49 = vpop.eup %1828 }
 0x37e   : > { %v1194_v52 = vmul.f32 %v1829_v49, %v2252_v19  ;;  %v1239_v34 = vmul.f32 %v1232_v51, %v1193_v46 }
 0x380   : > { %v1240_v32 = vmul.f32 %v1230_v45, %v1194_v52  ;;  %v1241_v56 = vpack.c.bf16 %v1239_v34, %v1237_v29 }
 0x382   : > { %v1242_v17 = vpack.c.bf16 %v1240_v32, %v1238_v55 }
 0x384   : > { %1597 = vmatprep.mubr.msk.bf16.mxu1 %vm1084_vm3, %v1242_v17 }
 0x385   : > { %1375 = vmatmul.mubr.bf16.vlgmr.msra.gmra.mxu1 %v1241_v56 }
 0x445   : > { %v1376_v18 = vpop.f32.mrf.mxu1 }
 0x446   : > { %v1390_v57 = vmul.f32 %v1598_v16, %v1376_v18 }
 0x447   : > { %v1378_v19 = vpop.f32.mrf.mxu1 }
 0x448   : > { %v1392_v58 = vadd.f32 %v1830_v53, %v1390_v57 }
 0x449   : > { %v1379_v59 = vpop.f32.mrf.mxu1 }
 0x44a   : > { %1394 = vst [vmem:[%s451_s26] sm:$0xff] %v1392_v58  ;;  %v1391_v60 = vmul.f32 %v1598_v16, %v1379_v59 }
 0x44b   : > { %v1381_v61 = vpop.f32.mrf.mxu1 }
 0x44c   : > { %v1393_v63 = vadd.f32 %v1831_v62, %v1391_v60 }
 0x44e   : > { %1395 = vst [vmem:[%s451_s26 + $0x8] sm:$0xff] %v1393_v63 }
 0x44f PF: > { %s22_s15 = sadd.s32 1, %s1914_s15   ;;  %s2353_s13 = smov %s1910_s14 }
 0x450   : > { %p19_p4 = scmp.ge.s32.totalorder %s22_s15, 4   ;;  %s2354_s14 = smov %s2356_s17 }
 0x452   :  { %21 = sbr.rel (!%p19_p4) target bundleno = 3 (0x3), region = 102 }
 0x457   :  { %1426 = vsyncpa [#allocation3], 1 }
 0x458   :  { %1428 = vsyncpa [#allocation3 + $0x1], 1 }
 0x459   :  { %1429 = vsyncpa [#allocation5], 1 }

// kernel: forward.19
= control target key start
LH: loop header
LB: loop body
LE: loop exit
PB: predicated region body
PF: predicated region fallthrough
CT: control target
= control target key end

     0   :  { %v4414_v0 = vmov 0.0   ;;  %vm2999_vm0 = vmmov 0   ;;  %s4404_s3 = inlined_call_operand.vmem [shape: bf16[128,128], index: 3, kind: input, shape index: {}]   ;;  %s4405_s2 = inlined_call_operand.vmem [shape: bf16[128,128], index: 2, kind: input, shape index: {}]   ;;  %s4406_s1 = inlined_call_operand.vmem [shape: f32[48,128], index: 1, kind: input, shape index: {}]   ;;  %s4407_s0 = inlined_call_operand.vmem [shape: f32[48,128], index: 0, kind: input, shape index: {}]   ;;  %s4408_s4 = inlined_call_operand.vmem [shape: f32[1,128], index: 4, kind: input, shape index: {}]   ;;  %s4409_s5 = inlined_call_operand.vmem [shape: bf16[128,512], index: 5, kind: input, shape index: {}]   ;;  %s4410_s6 = inlined_call_operand.vmem [shape: f32[1,512], index: 6, kind: input, shape index: {}]   ;;  %s4411_s7 = inlined_call_operand.vmem [shape: bf16[8,64,128], index: 7, kind: input, shape index: {}]   ;;  %s4412_s8 = inlined_call_operand.vmem [shape: f32[8,1,128], index: 8, kind: input, shape index: {}]   ;;  %s4413_s9 = inlined_call_operand.vmem [shape: f32[48,1024], index: 9, kind: output, shape index: {}]  }
   0x1   :  { %2573 = vmatprep.subr.bf16.mxu0 %v4414_v0  ;;  %2601 = vmatprep.subr.bf16.mxu1 %v4414_v0  ;;  %v2794_v1 = vld [vmem:[%s4404_s3 + $0x38] sm:$0xff]   ;;  %v2796_v3 = vld [vmem:[%s4404_s3 + $0x30] sm:$0xff]   ;;  %v2798_v5 = vld [vmem:[%s4404_s3 + $0x28] sm:$0xff]  }
   0x2   :  { %v2795_v2 = vld [vmem:[%s4405_s2 + $0x38] sm:$0xff]   ;;  %2589 = vmatprep.mubr.msk.bf16.mxu0 %vm2999_vm0, %v4414_v0  ;;  %2617 = vmatprep.mubr.msk.bf16.mxu1 %vm2999_vm0, %v4414_v0  ;;  %v2797_v4 = vld [vmem:[%s4405_s2 + $0x30] sm:$0xff]   ;;  %v2799_v6 = vld [vmem:[%s4405_s2 + $0x28] sm:$0xff]  }
   0x3   :  { %2574 = vmatpush3.bf16.msra.mxu0 %v2794_v1  ;;  %2602 = vmatpush3.bf16.msra.mxu1 %v2795_v2  ;;  %v2800_v7 = vld [vmem:[%s4404_s3 + $0x20] sm:$0xff]   ;;  %v2802_v9 = vld [vmem:[%s4404_s3 + $0x18] sm:$0xff]   ;;  %v2804_v11 = vld [vmem:[%s4404_s3 + $0x10] sm:$0xff]  }
   0x4   :  { %2575 = vmatprep.subr.bf16.mxu0 %v4414_v0  ;;  %2603 = vmatprep.subr.bf16.mxu1 %v4414_v0  ;;  %v2801_v8 = vld [vmem:[%s4405_s2 + $0x20] sm:$0xff]   ;;  %v2803_v10 = vld [vmem:[%s4405_s2 + $0x18] sm:$0xff]   ;;  %v2805_v12 = vld [vmem:[%s4405_s2 + $0x10] sm:$0xff]  }
   0x5   :  { %v2806_v13 = vld [vmem:[%s4404_s3 + $0x8] sm:$0xff]   ;;  %v2808_v15 = vld [vmem:[%s4404_s3] sm:$0xff]   ;;  %v44_v23 = vld [vmem:[%s4406_s1 + $0x10] sm:$0xff] }
   0x6   :  { %v2807_v14 = vld [vmem:[%s4405_s2 + $0x8] sm:$0xff]   ;;  %v42_v16 = vld [vmem:[%s4406_s1] sm:$0xff]  ;;  %v45_v24 = vld [vmem:[%s4406_s1 + $0x18] sm:$0xff] }
   0x7   :  { %2576 = vmatpush3.bf16.msra.mxu0 %v2796_v3  ;;  %2604 = vmatpush3.bf16.msra.mxu1 %v2797_v4  ;;  %v43_v17 = vld [vmem:[%s4406_s1 + $0x8] sm:$0xff]  ;;  %v2809_v18 = vld [vmem:[%s4405_s2] sm:$0xff]   ;;  %v35_v25 = vld [vmem:[%s4407_s0 + $0x10] sm:$0xff]  ;;  %v49_v27 = vpack.c.bf16 %v45_v24, %v44_v23 }
   0x8   :  { %2577 = vmatprep.subr.bf16.mxu0 %v4414_v0  ;;  %2605 = vmatprep.subr.bf16.mxu1 %v4414_v0  ;;  %v33_v19 = vld [vmem:[%s4407_s0] sm:$0xff]  ;;  %v34_v20 = vld [vmem:[%s4407_s0 + $0x8] sm:$0xff]  ;;  %v48_v21 = vpack.c.bf16 %v43_v17, %v42_v16  ;;  %v36_v26 = vld [vmem:[%s4407_s0 + $0x18] sm:$0xff] }
   0x9   :  { %v39_v22 = vpack.c.bf16 %v34_v20, %v33_v19  ;;  %v40_v28 = vpack.c.bf16 %v36_v26, %v35_v25  ;;  %v46_v29 = vld [vmem:[%s4406_s1 + $0x20] sm:$0xff]  ;;  %v47_v30 = vld [vmem:[%s4406_s1 + $0x28] sm:$0xff] }
   0xa   :  { %v37_v31 = vld [vmem:[%s4407_s0 + $0x20] sm:$0xff]  ;;  %v38_v32 = vld [vmem:[%s4407_s0 + $0x28] sm:$0xff]  ;;  %v50_v33 = vpack.c.bf16 %v47_v30, %v46_v29 }
   0xb   :  { %2578 = vmatpush3.bf16.msra.mxu0 %v2798_v5  ;;  %2606 = vmatpush3.bf16.msra.mxu1 %v2799_v6  ;;  %v41_v34 = vpack.c.bf16 %v38_v32, %v37_v31  ;;  %v2335_v37 = vld [vmem:[%s4408_s4] ss:$0 sm:$0xff]  ;;  %v2821_v16 = vld [vmem:[%s4409_s5 + $0xcc] ss:$16 sps:$4 sm:$0xff]   ;;  %s3002_s4 = smov 64  }
   0xc   :  { %2579 = vmatprep.subr.bf16.mxu0 %v4414_v0  ;;  %2607 = vmatprep.subr.bf16.mxu1 %v4414_v0 }
   0xf   :  { %2580 = vmatpush3.bf16.msra.mxu0 %v2800_v7  ;;  %2608 = vmatpush3.bf16.msra.mxu1 %v2801_v8 }
  0x10   :  { %2581 = vmatprep.subr.bf16.mxu0 %v4414_v0  ;;  %2609 = vmatprep.subr.bf16.mxu1 %v4414_v0 }
  0x13   :  { %2582 = vmatpush3.bf16.msra.mxu0 %v2802_v9  ;;  %2610 = vmatpush3.bf16.msra.mxu1 %v2803_v10  ;;  %v2810_v9 = vld [vmem:[%s4409_s5 + $0xe0] ss:$16 sps:$4 sm:$0xff]   ;;  %v2812_v10 = vld [vmem:[%s4409_s5 + $0xe4] ss:$16 sps:$4 sm:$0xff]  }
  0x14   :  { %2583 = vmatprep.subr.bf16.mxu0 %v4414_v0  ;;  %2611 = vmatprep.subr.bf16.mxu1 %v4414_v0 }
  0x17   :  { %2584 = vmatpush3.bf16.msra.mxu0 %v2804_v11  ;;  %2612 = vmatpush3.bf16.msra.mxu1 %v2805_v12  ;;  %v2813_v11 = vld [vmem:[%s4409_s5 + $0xe8] ss:$16 sps:$4 sm:$0xff]   ;;  %v2815_v12 = vld [vmem:[%s4409_s5 + $0xec] ss:$16 sps:$4 sm:$0xff]  }
  0x18   :  { %2585 = vmatprep.subr.bf16.mxu0 %v4414_v0  ;;  %2613 = vmatprep.subr.bf16.mxu1 %v4414_v0 }
  0x1b   :  { %2586 = vmatpush3.bf16.msra.mxu0 %v2806_v13  ;;  %2614 = vmatpush3.bf16.msra.mxu1 %v2807_v14  ;;  %v2816_v13 = vld [vmem:[%s4409_s5 + $0xc0] ss:$16 sps:$4 sm:$0xff]   ;;  %v2818_v14 = vld [vmem:[%s4409_s5 + $0xc4] ss:$16 sps:$4 sm:$0xff]  }
  0x1c   :  { %2587 = vmatprep.subr.bf16.mxu0 %v4414_v0  ;;  %2615 = vmatprep.subr.bf16.mxu1 %v4414_v0 }
  0x1f   :  { %2588 = vmatpush3.bf16.msra.mxu0 %v2808_v15  ;;  %2616 = vmatpush3.bf16.msra.mxu1 %v2809_v18  ;;  %v2819_v15 = vld [vmem:[%s4409_s5 + $0xc8] ss:$16 sps:$4 sm:$0xff]  }
  0x20   :  { %590 = vmatprep.subr.bf16.mxu0 %v2812_v10  ;;  %653 = vmatprep.subr.bf16.mxu1 %v2815_v12 }
  0x22   :  { %2590 = vmatmul.mubr.bf16.vlgmr.msra.gmra.mxu0 %v48_v21  ;;  %2618 = vmatmul.mubr.bf16.vlgmr.msra.gmra.mxu1 %v39_v22 }
  0x23   :  { %2593 = vmatprep.mubr.msk.bf16.mxu0 %vm2999_vm0, %v4414_v0  ;;  %2621 = vmatprep.mubr.msk.bf16.mxu1 %vm2999_vm0, %v4414_v0 }
  0x24   :  { %591 = vmatpush1.bf16.msra.mxu0 %v2810_v9  ;;  %654 = vmatpush1.bf16.msra.mxu1 %v2813_v11 }
  0x25   :  { %592 = vmatprep.subr.bf16.mxu0 %v2818_v14  ;;  %655 = vmatprep.subr.bf16.mxu1 %v2821_v16 }
  0x28   :  { %593 = vmatpush1.bf16.msra.mxu0 %v2816_v13  ;;  %656 = vmatpush1.bf16.msra.mxu1 %v2819_v15 }
  0x2a   :  { %2594 = vmatmul.mubr.bf16.gmra.mxu0 %v49_v27  ;;  %2622 = vmatmul.mubr.bf16.gmra.mxu1 %v40_v28 }
  0x2b   :  { %2597 = vmatprep.mubr.msk.bf16.mxu0 %vm2999_vm0, %v4414_v0  ;;  %2625 = vmatprep.mubr.msk.bf16.mxu1 %vm2999_vm0, %v4414_v0 }
  0x32   :  { %2598 = vmatmul.mubr.bf16.gmra.mxu0 %v50_v33  ;;  %2626 = vmatmul.mubr.bf16.gmra.mxu1 %v41_v34 }
  0xe2   :  { %v165_v35 = vpop.f32.mrf.mxu0  ;;  %v270_v36 = vpop.f32.mrf.mxu1 }
  0xe3   :  { %v271_v38 = vadd.f32 %v270_v36, %v165_v35  ;;  %v2824_v35 = vld [vmem:[%s4409_s5 + $0xa4] ss:$16 sps:$4 sm:$0xff]   ;;  %v2827_v36 = vld [vmem:[%s4409_s5 + $0xac] ss:$16 sps:$4 sm:$0xff]  }
  0xe4   :  { %v2591_v39 = vpop.f32.mrf.mxu0  ;;  %v2619_v40 = vpop.f32.mrf.mxu1  ;;  %594 = vmatprep.subr.bf16.mxu0 %v2824_v35  ;;  %657 = vmatprep.subr.bf16.mxu1 %v2827_v36 }
  0xe5   :  { %v300_v42 = vadd.f32 %v2335_v37, %v271_v38  ;;  %v2825_v38 = vld [vmem:[%s4409_s5 + $0xa8] ss:$16 sps:$4 sm:$0xff]  }
  0xe6   :  { %v168_v41 = vpop.f32.mrf.mxu0  ;;  %v273_v43 = vpop.f32.mrf.mxu1  ;;  %658 = vmatpush1.bf16.msra.mxu1 %v2825_v38 }
  0xe7   :  { %v274_v44 = vadd.f32 %v273_v43, %v168_v41  ;;  %306 = vadd.xlane.f32.xlu0 %v300_v42  ;;  %v2830_v43 = vld [vmem:[%s4409_s5 + $0x84] ss:$16 sps:$4 sm:$0xff]  }
  0xe8   :  { %v2592_v45 = vpop.f32.mrf.mxu0  ;;  %v2620_v46 = vpop.f32.mrf.mxu1 }
  0xe9   :  { %v301_v48 = vadd.f32 %v2335_v37, %v274_v44  ;;  %v2833_v44 = vld [vmem:[%s4409_s5 + $0x8c] ss:$16 sps:$4 sm:$0xff]   ;;  %v2828_v45 = vld [vmem:[%s4409_s5 + $0x80] ss:$16 sps:$4 sm:$0xff]   ;;  %v2831_v46 = vld [vmem:[%s4409_s5 + $0x88] ss:$16 sps:$4 sm:$0xff]  }
  0xea   :  { %v173_v47 = vpop.f32.mrf.mxu0  ;;  %v278_v49 = vpop.f32.mrf.mxu1  ;;  %659 = vmatprep.subr.bf16.mxu1 %v2833_v44 }
  0xeb   :  { %v279_v50 = vadd.f32 %v278_v49, %v173_v47  ;;  %308 = vadd.xlane.f32.xlu0 %v301_v48  ;;  %660 = vmatpush1.bf16.msra.mxu1 %v2831_v46  ;;  %v2836_v49 = vld [vmem:[%s4409_s5 + $0x64] ss:$16 sps:$4 sm:$0xff]  }
  0xec   :  { %v2595_v51 = vpop.f32.mrf.mxu0  ;;  %v2623_v52 = vpop.f32.mrf.mxu1 }
  0xed   :  { %v302_v54 = vadd.f32 %v2335_v37, %v279_v50  ;;  %v2839_v50 = vld [vmem:[%s4409_s5 + $0x6c] ss:$16 sps:$4 sm:$0xff]   ;;  %v2834_v51 = vld [vmem:[%s4409_s5 + $0x60] ss:$16 sps:$4 sm:$0xff]   ;;  %v2837_v52 = vld [vmem:[%s4409_s5 + $0x68] ss:$16 sps:$4 sm:$0xff]  }
  0xee   :  { %v176_v53 = vpop.f32.mrf.mxu0  ;;  %v281_v55 = vpop.f32.mrf.mxu1  ;;  %661 = vmatprep.subr.bf16.mxu1 %v2839_v50 }
  0xef   :  { %v282_v56 = vadd.f32 %v281_v55, %v176_v53  ;;  %310 = vadd.xlane.f32.xlu1 %v302_v54  ;;  %662 = vmatpush1.bf16.msra.mxu1 %v2837_v52  ;;  %v2842_v53 = vld [vmem:[%s4409_s5 + $0x44] ss:$16 sps:$4 sm:$0xff]   ;;  %v2840_v55 = vld [vmem:[%s4409_s5 + $0x40] ss:$16 sps:$4 sm:$0xff]  }
  0xf0   :  { %v2596_v57 = vpop.f32.mrf.mxu0  ;;  %v2624_v58 = vpop.f32.mrf.mxu1 }
  0xf1   :  { %v303_v60 = vadd.f32 %v2335_v37, %v282_v56  ;;  %v2843_v56 = vld [vmem:[%s4409_s5 + $0x48] ss:$16 sps:$4 sm:$0xff]   ;;  %v2848_v57 = vld [vmem:[%s4409_s5 + $0x24] ss:$16 sps:$4 sm:$0xff]   ;;  %v2851_v58 = vld [vmem:[%s4409_s5 + $0x2c] ss:$16 sps:$4 sm:$0xff]  }
  0xf2   :  { %v181_v59 = vpop.f32.mrf.mxu0  ;;  %v286_v61 = vpop.f32.mrf.mxu1 }
  0xf3   :  { %v287_v62 = vadd.f32 %v286_v61, %v181_v59  ;;  %312 = vadd.xlane.f32.xlu1 %v303_v60  ;;  %v2846_v59 = vld [vmem:[%s4409_s5 + $0x20] ss:$16 sps:$4 sm:$0xff]   ;;  %v2854_v61 = vld [vmem:[%s4409_s5 + $0x4] ss:$16 sps:$4 sm:$0xff]  }
  0xf4   :  { %v2599_v63 = vpop.f32.mrf.mxu0  ;;  %v2627_v1 = vpop.f32.mrf.mxu1 }
  0xf5   :  { %v304_v3 = vadd.f32 %v2335_v37, %v287_v62  ;;  %v2857_v62 = vld [vmem:[%s4409_s5 + $0xc] ss:$16 sps:$4 sm:$0xff]   ;;  %v2852_v63 = vld [vmem:[%s4409_s5] ss:$16 sps:$4 sm:$0xff]   ;;  %v2855_v1 = vld [vmem:[%s4409_s5 + $0x8] ss:$16 sps:$4 sm:$0xff]  }
  0xf6   :  { %v184_v2 = vpop.f32.mrf.mxu0  ;;  %v289_v4 = vpop.f32.mrf.mxu1 }
  0xf7   :  { %v290_v5 = vadd.f32 %v289_v4, %v184_v2  ;;  %314 = vadd.xlane.f32.xlu0 %v304_v3  ;;  %v3000_v2 = vmov 0  }
  0xf8   :  { %v2600_v6 = vpop.f32.mrf.mxu0  ;;  %v2628_v7 = vpop.f32.mrf.mxu1  ;;  %622 = vmatprep.mubr.bf16.mxu0 %v3000_v2  ;;  %685 = vmatprep.mubr.bf16.mxu1 %v3000_v2 }
  0xf9   :  { %v305_v8 = vadd.f32 %v2335_v37, %v290_v5  ;;  %v2822_v37 = vld [vmem:[%s4409_s5 + $0xa0] ss:$16 sps:$4 sm:$0xff]  }
  0xfa   :  { %595 = vmatpush1.bf16.msra.mxu0 %v2822_v37 }
  0xfb   :  { %316 = vadd.xlane.f32.xlu1 %v305_v8  ;;  %596 = vmatprep.subr.bf16.mxu0 %v2830_v43 }
  0xfe   :  { %597 = vmatpush1.bf16.msra.mxu0 %v2828_v45 }
  0xff   :  { %598 = vmatprep.subr.bf16.mxu0 %v2836_v49 }
 0x102   :  { %599 = vmatpush1.bf16.msra.mxu0 %v2834_v51 }
 0x103   :  { %600 = vmatprep.subr.bf16.mxu0 %v2842_v53 }
 0x106   :  { %601 = vmatpush1.bf16.msra.mxu0 %v2840_v55 }
 0x107   :  { %602 = vmatprep.subr.bf16.mxu0 %v2848_v57 }
 0x10a   :  { %603 = vmatpush1.bf16.msra.mxu0 %v2846_v59 }
 0x10b   :  { %604 = vmatprep.subr.bf16.mxu0 %v2854_v61 }
 0x10e   :  { %605 = vmatpush1.bf16.msra.mxu0 %v2852_v63 }
 0x10f   :  { %2629 = vmatprep.subr.bf16.mxu0 %v4414_v0 }
 0x170   :  { %v307_v17 = vpop.xlane.xlu0 %306 }
 0x171   :  { %v319_v18 = vmul.f32 0.0078125, %v307_v17 }
 0x173   :  { %v3192_v19 = vsub.f32 %v300_v42, %v319_v18 }
 0x174   :  { %v309_v20 = vpop.xlane.xlu0 %308 }
 0x175   :  { %v320_v21 = vmul.f32 0.0078125, %v309_v20  ;;  %v331_v22 = vmul.f32 %v3192_v19, %v3192_v19 }
 0x177   :  { %v3196_v23 = vsub.f32 %v301_v48, %v320_v21  ;;  %337 = vadd.xlane.f32.xlu0 %v331_v22 }
 0x178   :  { %v311_v24 = vpop.xlane.xlu1 %310 }
 0x179   :  { %v321_v25 = vmul.f32 0.0078125, %v311_v24  ;;  %v332_v26 = vmul.f32 %v3196_v23, %v3196_v23 }
 0x17b   :  { %v3200_v27 = vsub.f32 %v302_v54, %v321_v25  ;;  %339 = vadd.xlane.f32.xlu1 %v332_v26  ;;  %v2845_v54 = vld [vmem:[%s4409_s5 + $0x4c] ss:$16 sps:$4 sm:$0xff]  }
 0x17c   :  { %v313_v28 = vpop.xlane.xlu1 %312  ;;  %663 = vmatprep.subr.bf16.mxu1 %v2845_v54 }
 0x17d   :  { %v322_v29 = vmul.f32 0.0078125, %v313_v28  ;;  %v333_v30 = vmul.f32 %v3200_v27, %v3200_v27  ;;  %664 = vmatpush1.bf16.msra.mxu1 %v2843_v56 }
 0x17e   :  { %665 = vmatprep.subr.bf16.mxu1 %v2851_v58 }
 0x17f   :  { %v3204_v31 = vsub.f32 %v303_v60, %v322_v29  ;;  %341 = vadd.xlane.f32.xlu0 %v333_v30  ;;  %v2849_v60 = vld [vmem:[%s4409_s5 + $0x28] ss:$16 sps:$4 sm:$0xff]  }
 0x180   :  { %v315_v32 = vpop.xlane.xlu0 %314 }
 0x181   :  { %v323_v33 = vmul.f32 0.0078125, %v315_v32  ;;  %v334_v34 = vmul.f32 %v3204_v31, %v3204_v31  ;;  %666 = vmatpush1.bf16.msra.mxu1 %v2849_v60 }
 0x182   :  { %667 = vmatprep.subr.bf16.mxu1 %v2857_v62 }
 0x183   :  { %v3220_v39 = vsub.f32 %v304_v3, %v323_v33  ;;  %343 = vadd.xlane.f32.xlu1 %v334_v34 }
 0x184   :  { %v317_v40 = vpop.xlane.xlu1 %316 }
 0x185   :  { %v324_v41 = vmul.f32 0.0078125, %v317_v40  ;;  %v335_v42 = vmul.f32 %v3220_v39, %v3220_v39  ;;  %668 = vmatpush1.bf16.msra.mxu1 %v2855_v1 }
 0x186   :  { %2649 = vmatprep.subr.bf16.mxu1 %v4414_v0 }
 0x187   :  { %v3236_v47 = vsub.f32 %v305_v8, %v324_v41  ;;  %345 = vadd.xlane.f32.xlu0 %v335_v42  ;;  %v408_v41 = vld [vmem:[%s4410_s6] sm:$0xf] }
 0x189   :  { %v336_v48 = vmul.f32 %v3236_v47, %v3236_v47 }
 0x18b   :  { %347 = vadd.xlane.f32.xlu1 %v336_v48 }
 0x200   :  { %v338_v3 = vpop.xlane.xlu0 %337 }
 0x201   :  { %v349_v4 = vmul.f32 0.0078125, %v338_v3 }
 0x203   :  { %v355_v5 = vadd.f32 1e-05, %v349_v4 }
 0x204   :  { %v340_v6 = vpop.xlane.xlu1 %339 }
 0x205   :  { %v350_v7 = vmul.f32 0.0078125, %v340_v6  ;;  %2890 = vrsqrt.f32 %v355_v5 }
 0x207   :  { %v356_v8 = vadd.f32 1e-05, %v350_v7 }
 0x208   :  { %v342_v9 = vpop.xlane.xlu0 %341 }
 0x209   :  { %2892 = vrsqrt.f32 %v356_v8  ;;  %v351_v10 = vmul.f32 0.0078125, %v342_v9 }
 0x20b   :  { %v357_v11 = vadd.f32 1e-05, %v351_v10 }
 0x20c   :  { %v344_v12 = vpop.xlane.xlu1 %343 }
 0x20d   :  { %v352_v13 = vmul.f32 0.0078125, %v344_v12  ;;  %2894 = vrsqrt.f32 %v357_v11 }
 0x20f   :  { %v358_v14 = vadd.f32 1e-05, %v352_v13 }
 0x210   :  { %v346_v15 = vpop.xlane.xlu0 %345 }
 0x211   :  { %2896 = vrsqrt.f32 %v358_v14  ;;  %v353_v16 = vmul.f32 0.0078125, %v346_v15 }
 0x212   :  { %v2891_v18 = vpop.eup %2890 }
 0x213   :  { %v359_v17 = vadd.f32 1e-05, %v353_v16  ;;  %v367_v25 = vmul.f32 %v2891_v18, %v3192_v19 }
 0x214   :  { %v348_v20 = vpop.xlane.xlu1 %347 }
 0x215   :  { %v354_v21 = vmul.f32 0.0078125, %v348_v20  ;;  %2898 = vrsqrt.f32 %v359_v17 }
 0x216   :  { %v2893_v22 = vpop.eup %2892 }
 0x217   :  { %v360_v24 = vadd.f32 1e-05, %v354_v21  ;;  %v368_v26 = vmul.f32 %v2893_v22, %v3196_v23 }
 0x219   :  { %2900 = vrsqrt.f32 %v360_v24  ;;  %v373_v28 = vpack.c.bf16 %v368_v26, %v367_v25 }
 0x21a   :  { %v2895_v29 = vpop.eup %2894 }
 0x21b   :  { %623 = vmatmul.mubr.bf16.vlgmr.msra.gmra.mxu0 %v373_v28  ;;  %686 = vmatmul.mubr.bf16.vlgmr.msra.gmra.mxu1 %v373_v28  ;;  %v369_v32 = vmul.f32 %v2895_v29, %v3200_v27  ;;  %v410_v27 = vlaneseq }
 0x21c   :  { %632 = vmatprep.mubr.bf16.mxu0 %v3000_v2  ;;  %695 = vmatprep.mubr.bf16.mxu1 %v3000_v2 }
 0x21e   :  { %v2897_v30 = vpop.eup %2896 }
 0x21f   :  { %v370_v33 = vmul.f32 %v2897_v30, %v3204_v31  ;;  %v411_v31 = vshrl.u32 %v410_v27, 7 }
 0x221   :  { %v374_v34 = vpack.c.bf16 %v370_v33, %v369_v32  ;;  %v412_v38 = vsub.s32 0, %v411_v31  ;;  %v420_v40 = vsub.s32 2, %v411_v31  ;;  %v424_v44 = vsub.s32 3, %v411_v31 }
 0x222   :  { %v2899_v35 = vpop.eup %2898 }
 0x223   :  { %633 = vmatmul.mubr.bf16.gmra.mxu0 %v374_v34  ;;  %696 = vmatmul.mubr.bf16.gmra.mxu1 %v374_v34  ;;  %v371_v23 = vmul.f32 %v2899_v35, %v3220_v39  ;;  %v416_v39 = vsub.s32 1, %v411_v31  ;;  %v3303_v42 = vrot.slane %v408_v41, %v412_v38  ;;  %v3305_v43 = vrot.slane %v408_v41, %v420_v40 }
 0x224   :  { %642 = vmatprep.mubr.bf16.mxu0 %v3000_v2  ;;  %705 = vmatprep.mubr.bf16.mxu1 %v3000_v2  ;;  %v3318_v53 = vrot.slane %v408_v41, %v424_v44 }
 0x226   :  { %v2901_v19 = vpop.eup %2900 }
 0x227   :  { %v372_v36 = vmul.f32 %v2901_v19, %v3236_v47  ;;  %v3307_v47 = vrot.slane %v408_v41, %v416_v39 }
 0x229   :  { %v375_v37 = vpack.c.bf16 %v372_v36, %v371_v23 }
 0x22b   :  { %643 = vmatmul.mubr.bf16.gmra.mxu0 %v375_v37  ;;  %706 = vmatmul.mubr.bf16.gmra.mxu1 %v375_v37 }
 0x22c   :  { %2637 = vmatprep.mubr.msk.bf16.mxu0 %vm2999_vm0, %v4414_v0  ;;  %2657 = vmatprep.mubr.msk.bf16.mxu1 %vm2999_vm0, %v4414_v0 }
 0x2db   :  { %v624_v45 = vpop.f32.mrf.mxu0  ;;  %v687_v46 = vpop.f32.mrf.mxu1 }
 0x2dc   :  { %v625_v48 = vadd.f32 %v624_v45, %v3303_v42  ;;  %v3311_v49 = vadd.f32 %v687_v46, %v3305_v43  ;;  %v4416_v46 = vmov 1.0  }
 0x2dd   :  { %v626_v50 = vpop.f32.mrf.mxu0  ;;  %v689_v55 = vpop.f32.mrf.mxu1 }
 0x2de   :  { %v3313_v51 = vmul.f32 0.70710677, %v625_v48  ;;  %v3316_v52 = vmul.f32 0.70710677, %v3311_v49  ;;  %v3321_v54 = vadd.f32 %v626_v50, %v3307_v47  ;;  %v3334_v61 = vadd.f32 %v689_v55, %v3318_v53  ;;  %v2858_v50 = vld [vmem:[%s4411_s7 + $0x18] sm:$0xff]  }
 0x2df   :  { %v628_v59 = vpop.f32.mrf.mxu0  ;;  %v691_v2 = vpop.f32.mrf.mxu1  ;;  %v3400_v31 = vmul.f32 0.5, %v625_v48  ;;  %v3407_v41 = vmul.f32 0.5, %v3311_v49  ;;  %2630 = vmatpush3.bf16.msra.mxu0 %v2858_v50 }
 0x2e0   :  { %v3324_v56 = vand.u32 2147483647, %v3313_v51  ;;  %v3327_v57 = vand.u32 2147483647, %v3316_v52  ;;  %v3330_v58 = vmul.f32 0.70710677, %v3321_v54  ;;  %v3345_v7 = vadd.f32 %v628_v59, %v3303_v42  ;;  %2631 = vmatprep.subr.bf16.mxu0 %v4414_v0 }
 0x2e1   :  { %4423 = vst [vmem:[#allocation2_spill] sm:$0xff] %v3334_v61  ;;  %v630_v3 = vpop.f32.mrf.mxu0  ;;  %v3342_v5 = vmul.f32 0.70710677, %v3334_v61  ;;  %v3348_v8 = vadd.f32 %v691_v2, %v3305_v43  ;;  %v693_v16 = vpop.f32.mrf.mxu1  ;;  %vm764_vm1 = vcmp.lt.f32.partialorder %v3313_v51, 0.0  ;;  %vm766_vm2 = vcmp.lt.f32.partialorder %v3316_v52, 0.0 }
 0x2e2   :  { %v836_v60 = vmul.f32 0.3275911, %v3324_v56  ;;  %v838_v62 = vmul.f32 0.3275911, %v3327_v57  ;;  %v3338_v63 = vand.u32 2147483647, %v3330_v58  ;;  %v3351_v9 = vadd.f32 %v630_v3, %v3307_v47 }
 0x2e3   :  { %v3354_v11 = vand.u32 2147483647, %v3342_v5  ;;  %v3357_v12 = vmul.f32 0.70710677, %v3345_v7  ;;  %v3360_v13 = vmul.f32 0.70710677, %v3348_v8  ;;  %v3377_v22 = vadd.f32 %v693_v16, %v3318_v53  ;;  %v634_v29 = vpop.f32.mrf.mxu0 }
 0x2e4   :  { %v860_v1 = vadd.f32 1.0, %v836_v60  ;;  %v837_v4 = vmul.f32 0.3275911, %v3338_v63  ;;  %v862_v6 = vadd.f32 1.0, %v838_v62  ;;  %v3366_v15 = vmul.f32 0.70710677, %v3351_v9 }
 0x2e5   :  { %v3363_v14 = vand.u32 2147483647, %v3357_v12  ;;  %v839_v17 = vmul.f32 0.3275911, %v3354_v11  ;;  %v3371_v20 = vand.u32 2147483647, %v3360_v13  ;;  %v3385_v33 = vadd.f32 %v634_v29, %v3303_v42 }
 0x2e6   :  { %2902 = vrcp.f32 %v860_v1  ;;  %v861_v10 = vadd.f32 1.0, %v837_v4  ;;  %v3374_v21 = vand.u32 2147483647, %v3366_v15  ;;  %4424 = vst [vmem:[#allocation3_spill] sm:$0xff] %v3377_v22  ;;  %v3382_v32 = vmul.f32 0.70710677, %v3377_v22 }
 0x2e7   :  { %2904 = vrcp.f32 %v862_v6  ;;  %v840_v18 = vmul.f32 0.3275911, %v3363_v14  ;;  %v842_v25 = vmul.f32 0.3275911, %v3371_v20  ;;  %v863_v26 = vadd.f32 1.0, %v839_v17  ;;  %v2859_v1 = vld [vmem:[%s4411_s7 + $0x10] sm:$0xff]  }
 0x2e8   :  { %2906 = vrcp.f32 %v861_v10  ;;  %v841_v28 = vmul.f32 0.3275911, %v3374_v21  ;;  %v3390_v19 = vand.u32 2147483647, %v3382_v32  ;;  %v1148_v37 = vsub.f32 0.0, %v3324_v56  ;;  %2632 = vmatpush3.bf16.msra.mxu0 %v2859_v1 }
 0x2e9   :  { %v864_v24 = vadd.f32 1.0, %v840_v18  ;;  %v866_v30 = vadd.f32 1.0, %v842_v25  ;;  %v3398_v27 = vmul.f32 0.70710677, %v3385_v33  ;;  %v1150_v38 = vsub.f32 0.0, %v3327_v57  ;;  %2633 = vmatprep.subr.bf16.mxu0 %v4414_v0 }
 0x2ea   :  { %v865_v35 = vadd.f32 1.0, %v841_v28  ;;  %v1149_v44 = vsub.f32 0.0, %v3338_v63  ;;  %v843_v45 = vmul.f32 0.3275911, %v3390_v19  ;;  %v3413_v48 = vsel %vm764_vm1, -1.0, %v4416_v46 }
 0x2eb   :  { %2908 = vrcp.f32 %v864_v24  ;;  %v1172_v52 = vmul.f32 %v1148_v37, %v3324_v56  ;;  %v3420_v49 = vsel %vm766_vm2, -1.0, %v4416_v46  ;;  %v3423_v55 = vand.u32 2147483647, %v3398_v27 }
 0x2ec   :  { %2910 = vrcp.f32 %v863_v26  ;;  %v1174_v59 = vmul.f32 %v1150_v38, %v3327_v57  ;;  %vm765_vm3 = vcmp.lt.f32.partialorder %v3330_v58, 0.0  ;;  %v1151_v62 = vsub.f32 0.0, %v3354_v11 }
 0x2ed   :  { %2912 = vrcp.f32 %v866_v30  ;;  %v3433_v56 = vmul.f32 0.5, %v3321_v54  ;;  %v1173_v2 = vmul.f32 %v1149_v44, %v3338_v63  ;;  %vm767_vm4 = vcmp.lt.f32.partialorder %v3342_v5, 0.0 }
 0x2ee   :  { %2914 = vrcp.f32 %v865_v35  ;;  %v867_v3 = vadd.f32 1.0, %v843_v45  ;;  %v1196_v6 = vmul.f32 1.442695, %v1172_v52  ;;  %v3442_v10 = vsel %vm765_vm3, -1.0, %v4416_v46 }
 0x2ef   :  { %v844_v16 = vmul.f32 0.3275911, %v3423_v55  ;;  %v1200_v54 = vmul.f32 1.442695, %v1174_v59  ;;  %v3446_v63 = vsel %vm767_vm4, -1.0, %v4416_v46  ;;  %v1175_v5 = vmul.f32 %v1151_v62, %v3354_v11  ;;  %v2860_v11 = vld [vmem:[%s4411_s7 + $0x8] sm:$0xff]  }
 0x2f0   :  { %v3451_v24 = vmul.f32 1.442695, %v1173_v2  ;;  %2916 = vrcp.f32 %v867_v3  ;;  %v3459_v29 = vmul.f32 0.5, %v3345_v7  ;;  %vm768_vm5 = vcmp.lt.f32.partialorder %v3357_v12, 0.0  ;;  %v697_v7 = vpop.f32.mrf.mxu1  ;;  %2634 = vmatpush3.bf16.msra.mxu0 %v2860_v11  ;;  %v636_v12 = vpop.f32.mrf.mxu0 }
 0x2f1   :  { %v3466_v35 = vmul.f32 0.5, %v3348_v8  ;;  %v3471_v44 = vmul.f32 0.5, %v3351_v9  ;;  %vm770_vm6 = vcmp.lt.f32.partialorder %v3360_v13, 0.0  ;;  %2635 = vmatprep.subr.bf16.mxu0 %v4414_v0  ;;  %v2861_v8 = vld [vmem:[%s4411_s7] sm:$0xff]   ;;  %v1152_v9 = vsub.f32 0.0, %v3363_v14 }
 0x2f2   :  { %vm769_vm7 = vcmp.lt.f32.partialorder %v3366_v15, 0.0  ;;  %vm771_vm8 = vcmp.lt.f32.partialorder %v3382_v32, 0.0  ;;  %vm772_vm9 = vcmp.lt.f32.partialorder %v3398_v27, 0.0  ;;  %vm1406_vm4 = vcmask 523264  }
 0x2f3   :  { %v3387_v34 = vpop.eup %2902 }
 0x2f4   :  { %v3392_v23 = vpop.eup %2904  ;;  %v932_v36 = vmul.f32 1.0614054, %v3387_v34  ;;  %2636 = vmatpush3.bf16.msra.mxu0 %v2861_v8 }
 0x2f5   :  { %v3404_v40 = vpop.eup %2906  ;;  %v934_v39 = vmul.f32 1.0614054, %v3392_v23  ;;  %2669 = vmatprep.subr.bf16.mxu0 %v4414_v0 }
 0x2f6   :  { %v956_v51 = vadd.f32 -1.4531521, %v932_v36  ;;  %v933_v60 = vmul.f32 1.0614054, %v3404_v40  ;;  %v868_v36 = vadd.f32 1.0, %v844_v16  ;;  %v1154_v16 = vsub.f32 0.0, %v3371_v20 }
 0x2f7   :  { %v958_v58 = vadd.f32 -1.4531521, %v934_v39  ;;  %v1202_v39 = vmul.f32 1.442695, %v1175_v5 }
 0x2f8   :  { %v3438_v57 = vpop.eup %2908  ;;  %v980_v4 = vmul.f32 %v3387_v34, %v956_v51  ;;  %v957_v17 = vadd.f32 -1.4531521, %v933_v60  ;;  %2918 = vrcp.f32 %v868_v36  ;;  %v3484_v60 = vadd.f32 %v697_v7, %v3305_v43 }
 0x2f9   :  { %v3449_v18 = vpop.eup %2910  ;;  %v936_v25 = vmul.f32 1.0614054, %v3438_v57  ;;  %v982_v28 = vmul.f32 %v3392_v23, %v958_v58  ;;  %2920 = vpow2.f32 %v1196_v6  ;;  %v1178_v8 = vmul.f32 %v1154_v16, %v3371_v20 }
 0x2fa   :  { %v3455_v26 = vpop.eup %2912  ;;  %v1004_v30 = vadd.f32 1.4214138, %v980_v4  ;;  %v981_v37 = vmul.f32 %v3404_v40, %v957_v17  ;;  %v935_v38 = vmul.f32 1.0614054, %v3449_v18  ;;  %4425 = vst [vmem:[#allocation4_spill] sm:$0xff] %v3484_v60  ;;  %v1153_v17 = vsub.f32 0.0, %v3374_v21 }
 0x2fb   :  { %v3473_v45 = vpop.eup %2914  ;;  %v938_v50 = vmul.f32 1.0614054, %v3455_v26  ;;  %v1006_v51 = vadd.f32 1.4214138, %v982_v28  ;;  %v960_v52 = vadd.f32 -1.4531521, %v936_v25  ;;  %v1176_v25 = vmul.f32 %v1152_v9, %v3363_v14 }
 0x2fc   :  { %v1028_v59 = vmul.f32 %v3387_v34, %v1004_v30  ;;  %v1005_v62 = vadd.f32 1.4214138, %v981_v37  ;;  %v959_v1 = vadd.f32 -1.4531521, %v935_v38  ;;  %v937_v2 = vmul.f32 1.0614054, %v3473_v45 }
 0x2fd   :  { %v962_v3 = vadd.f32 -1.4531521, %v938_v50  ;;  %v1030_v58 = vmul.f32 %v3392_v23, %v1006_v51  ;;  %v984_v4 = vmul.f32 %v3438_v57, %v960_v52  ;;  %v3494_v28 = vmul.f32 0.70710677, %v3484_v60  ;;  %v3510_v6 = vpop.eup %2916 }
 0x2fe   :  { %v1052_v5 = vadd.f32 -0.28449672, %v1028_v59  ;;  %v1029_v11 = vmul.f32 %v3404_v40, %v1005_v62  ;;  %v983_v30 = vmul.f32 %v3449_v18, %v959_v1  ;;  %v961_v36 = vadd.f32 -1.4531521, %v937_v2 }
 0x2ff   :  { %v3501_v37 = vsel %vm768_vm5, -1.0, %v4416_v46  ;;  %v3506_v38 = vsel %vm770_vm6, -1.0, %v4416_v46  ;;  %v986_v14 = vmul.f32 %v3455_v26, %v962_v3  ;;  %v1054_v7 = vadd.f32 -0.28449672, %v1030_v58 }
 0x300   :  { %v1008_v50 = vadd.f32 1.4214138, %v984_v4  ;;  %v1177_v51 = vmul.f32 %v1153_v17, %v3374_v21  ;;  %2922 = vpow2.f32 %v1200_v54  ;;  %v1204_v52 = vmul.f32 1.442695, %v1176_v25 }
 0x301   :  { %v3515_v59 = vand.u32 2147483647, %v3494_v28  ;;  %v1076_v13 = vmul.f32 %v3387_v34, %v1052_v5  ;;  %v1053_v9 = vadd.f32 -0.28449672, %v1029_v11  ;;  %v1007_v62 = vadd.f32 1.4214138, %v983_v30 }
 0x302   :  { %v985_v1 = vmul.f32 %v3473_v45, %v961_v36  ;;  %v1010_v2 = vadd.f32 1.4214138, %v986_v14  ;;  %v939_v3 = vmul.f32 1.0614054, %v3510_v6  ;;  %v3521_v58 = vadd.f32 %v636_v12, %v3307_v47 }
 0x303   :  { %v1078_v20 = vmul.f32 %v3392_v23, %v1054_v7  ;;  %v1032_v21 = vmul.f32 %v3438_v57, %v1008_v50  ;;  %v1208_v54 = vmul.f32 1.442695, %v1178_v8  ;;  %v1206_v4 = vmul.f32 1.442695, %v1177_v51 }
 0x304   :  { %2924 = vpow2.f32 %v3451_v24  ;;  %v846_v16 = vmul.f32 0.3275911, %v3515_v59  ;;  %v1100_v5 = vadd.f32 0.2548296, %v1076_v13  ;;  %v1031_v25 = vmul.f32 %v3449_v18, %v1007_v62 }
 0x305   :  { %v3527_v17 = vpop.eup %2918  ;;  %2926 = vpow2.f32 %v1202_v39  ;;  %v1009_v11 = vadd.f32 1.4214138, %v985_v1  ;;  %v1077_v30 = vmul.f32 %v3404_v40, %v1053_v9  ;;  %v1034_v36 = vmul.f32 %v3455_v26, %v1010_v2 }
 0x306   :  { %v963_v14 = vadd.f32 -1.4531521, %v939_v3  ;;  %v3533_v7 = vmul.f32 0.70710677, %v3521_v58  ;;  %v1102_v50 = vadd.f32 0.2548296, %v1078_v20  ;;  %v1124_v9 = vmul.f32 %v3387_v34, %v1100_v5  ;;  %v2921_v1 = vpop.eup %2920 }
 0x307   :  { %v1056_v8 = vadd.f32 -0.28449672, %v1032_v21  ;;  %v3538_v24 = vsel %vm769_vm7, -1.0, %v4416_v46  ;;  %v1155_v39 = vsub.f32 0.0, %v3390_v19  ;;  %v940_v51 = vmul.f32 1.0614054, %v3527_v17  ;;  %v638_v21 = vpop.f32.mrf.mxu0 }
 0x308   :  { %v870_v12 = vadd.f32 1.0, %v846_v16  ;;  %v3544_v13 = vand.u32 2147483647, %v3533_v7  ;;  %v1055_v62 = vadd.f32 -0.28449672, %v1031_v25  ;;  %2928 = vpow2.f32 %v1204_v52 }
 0x309   :  { %v1101_v2 = vadd.f32 0.2548296, %v1077_v30  ;;  %v1058_v3 = vadd.f32 -0.28449672, %v1034_v36  ;;  %v1033_v15 = vmul.f32 %v3473_v45, %v1009_v11  ;;  %v987_v20 = vmul.f32 %v3510_v6, %v963_v14 }
 0x30a   :  { %v1126_v0 = vmul.f32 %v3392_v23, %v1102_v50  ;;  %2930 = vpow2.f32 %v1208_v54  ;;  %v845_v16 = vmul.f32 0.3275911, %v3544_v13  ;;  %v1080_v46 = vmul.f32 %v3438_v57, %v1056_v8  ;;  %v699_v50 = vpop.f32.mrf.mxu1 }
 0x30b   :  { %v1179_v61 = vmul.f32 %v1155_v39, %v3390_v19  ;;  %v964_v34 = vadd.f32 -1.4531521, %v940_v51  ;;  %2932 = vrcp.f32 %v870_v12  ;;  %v1244_v5 = vmul.f32 %v2921_v1, %v1124_v9 }
 0x30c   :  { %v4426_v25 = vmov 1.0   ;;  %v3559_v30 = vmul.f32 0.5, %v3385_v33  ;;  %v3562_v23 = vadd.f32 %v638_v21, %v3303_v42  ;;  %v1079_v54 = vmul.f32 %v3449_v18, %v1055_v62 }
 0x30d   :  { %v2923_v52 = vpop.eup %2922  ;;  %v3556_v11 = vsel %vm771_vm8, -1.0, %v4426_v25  ;;  %v1082_v36 = vmul.f32 %v3455_v26, %v1058_v3  ;;  %v1057_v19 = vadd.f32 -0.28449672, %v1033_v15  ;;  %v1011_v14 = vadd.f32 1.4214138, %v987_v20 }
 0x30e   :  { %v1246_v8 = vmul.f32 %v2923_v52, %v1126_v0  ;;  %v1125_v39 = vmul.f32 %v3404_v40, %v1101_v2  ;;  %2934 = vpow2.f32 %v1206_v4  ;;  %v869_v32 = vadd.f32 1.0, %v845_v16 }
 0x30f   :  { %v1104_v51 = vadd.f32 0.2548296, %v1080_v46  ;;  %v1210_v12 = vmul.f32 1.442695, %v1179_v61  ;;  %v988_v33 = vmul.f32 %v3527_v17, %v964_v34  ;;  %v1156_v9 = vsub.f32 0.0, %v3423_v55 }
 0x310   :  { %v1268_v21 = vsub.f32 1.0, %v1244_v5  ;;  %v3571_v62 = vadd.f32 %v699_v50, %v3318_v53  ;;  %v3574_v3 = vmul.f32 0.70710677, %v3562_v23  ;;  %v1103_v40 = vadd.f32 0.2548296, %v1079_v54  ;;  %v640_v5 = vpop.f32.mrf.mxu0 }
 0x311   :  { %v2925_v1 = vpop.eup %2924  ;;  %v1106_v4 = vadd.f32 0.2548296, %v1082_v36  ;;  %v1081_v46 = vmul.f32 %v3473_v45, %v1057_v19  ;;  %v1035_v61 = vmul.f32 %v3510_v6, %v1011_v14  ;;  %v1270_v2 = vsub.f32 1.0, %v1246_v8 }
 0x312   :  { %v2927_v0 = vpop.eup %2926  ;;  %v1245_v15 = vmul.f32 %v2925_v1, %v1125_v39  ;;  %2936 = vrcp.f32 %v869_v32  ;;  %v3579_v20 = vand.u32 2147483647, %v3574_v3  ;;  %v1128_v16 = vmul.f32 %v3438_v57, %v1104_v51 }
 0x313   :  { %v1012_v34 = vadd.f32 1.4214138, %v988_v33  ;;  %v1180_v52 = vmul.f32 %v1156_v9, %v3423_v55  ;;  %vm774_vm10 = vcmp.lt.f32.partialorder %v3494_v28, 0.0  ;;  %v1292_v54 = vmul.f32 %v1268_v21, %v3413_v48 }
 0x314   :  { %v3586_v36 = vmul.f32 0.70710677, %v3571_v62  ;;  %v848_v19 = vmul.f32 0.3275911, %v3579_v20  ;;  %v1127_v50 = vmul.f32 %v3449_v18, %v1103_v40  ;;  %v1130_v8 = vmul.f32 %v3455_v26, %v1106_v4 }
 0x315   :  { %v2929_v14 = vpop.eup %2928  ;;  %v1105_v39 = vadd.f32 0.2548296, %v1081_v46  ;;  %v1059_v57 = vadd.f32 -0.28449672, %v1035_v61  ;;  %v1294_v32 = vmul.f32 %v1270_v2, %v3420_v49  ;;  %v1269_v55 = vsub.f32 1.0, %v1245_v15 }
 0x316   :  { %v872_v51 = vadd.f32 1.0, %v848_v19  ;;  %v3593_v33 = vadd.f32 %v640_v5, %v3307_v47  ;;  %v1248_v9 = vmul.f32 %v2929_v14, %v1128_v16  ;;  %2938 = vpow2.f32 %v1210_v12  ;;  %v701_v16 = vpop.f32.mrf.mxu1 }
 0x317   :  { %v2931_v48 = vpop.eup %2930  ;;  %v3598_v1 = vsel %vm772_vm9, -1.0, %v4426_v25  ;;  %v1212_v18 = vmul.f32 1.442695, %v1180_v52  ;;  %v1036_v26 = vmul.f32 %v3527_v17, %v1012_v34  ;;  %v3606_v49 = vsel %vm774_vm10, -1.0, %v4426_v25 }
 0x318   :  { %v3600_v21 = vpop.eup %2932  ;;  %v3609_v40 = vand.u32 2147483647, %v3586_v36  ;;  %2940 = vrcp.f32 %v872_v51  ;;  %v1316_v12 = vadd.f32 1.0, %v1292_v54  ;;  %v1247_v4 = vmul.f32 %v2927_v0, %v1127_v50  ;;  %v644_v54 = vpop.f32.mrf.mxu0 }
 0x319   :  { %v1250_v46 = vmul.f32 %v2931_v48, %v1130_v8  ;;  %v1129_v27 = vmul.f32 %v3473_v45, %v1105_v39  ;;  %v1318_v61 = vadd.f32 1.0, %v1294_v32  ;;  %v1293_v2 = vmul.f32 %v1269_v55, %v3442_v10  ;;  %v703_v51 = vpop.f32.mrf.mxu1 }
 0x31a   :  { %v1083_v15 = vmul.f32 %v3510_v6, %v1059_v57  ;;  %v3615_v34 = vmul.f32 0.70710677, %v3593_v33  ;;  %v1272_v52 = vsub.f32 1.0, %v1248_v9  ;;  %v942_v5 = vmul.f32 1.0614054, %v3600_v21 }
 0x31b   :  { %v2935_v28 = vpop.eup %2934  ;;  %v1158_v19 = vsub.f32 0.0, %v3515_v59  ;;  %v1060_v0 = vadd.f32 -0.28449672, %v1036_v26  ;;  %2942 = vpow2.f32 %v1212_v18  ;;  %v847_v45 = vmul.f32 0.3275911, %v3609_v40 }
 0x31c   :  { %v3621_v14 = vand.u32 2147483647, %v3615_v34  ;;  %v3624_v10 = vmul.f32 %v1316_v12, %v3400_v31  ;;  %v1271_v50 = vsub.f32 1.0, %v1247_v4  ;;  %v1274_v8 = vsub.f32 1.0, %v1250_v46 }
 0x31d   :  { %v1249_v39 = vmul.f32 %v2935_v28, %v1129_v27  ;;  %v1317_v57 = vadd.f32 1.0, %v1293_v2  ;;  %v1107_v32 = vadd.f32 0.2548296, %v1083_v15  ;;  %v3628_v48 = vadd.f32 %v644_v54, %v3303_v42 }
 0x31e   :  { %v849_v55 = vmul.f32 0.3275911, %v3621_v14  ;;  %v3633_v18 = vmul.f32 %v1318_v61, %v3407_v41  ;;  %v1296_v26 = vmul.f32 %v1272_v52, %v3501_v37  ;;  %v966_v31 = vadd.f32 -1.4531521, %v942_v5 }
 0x31f   :  { %v3630_v9 = vpop.eup %2936  ;;  %v1182_v12 = vmul.f32 %v1158_v19, %v3515_v59  ;;  %v1084_v4 = vmul.f32 %v3527_v17, %v1060_v0  ;;  %v871_v46 = vadd.f32 1.0, %v847_v45  ;;  %v3639_v27 = vadd.f32 %v701_v16, %v3305_v43  ;;  %v707_v45 = vpop.f32.mrf.mxu1 }
 0x320   :  { %v873_v2 = vadd.f32 1.0, %v849_v55  ;;  %v1298_v15 = vmul.f32 %v1274_v8, %v3506_v38  ;;  %v1273_v28 = vsub.f32 1.0, %v1249_v39  ;;  %vm773_vm11 = vcmp.lt.f32.partialorder %v3533_v7, 0.0 }
 0x321   :  { %v3644_v41 = vadd.f32 %v703_v51, %v3318_v53  ;;  %v3647_v37 = vmul.f32 %v1271_v50, %v3446_v63  ;;  %v941_v59 = vmul.f32 1.0614054, %v3630_v9  ;;  %v3651_v61 = vmul.f32 0.70710677, %v3628_v48 }
 0x322   :  { %2944 = vrcp.f32 %v873_v2  ;;  %v1320_v16 = vadd.f32 1.0, %v1296_v26  ;;  %v1131_v52 = vmul.f32 %v3510_v6, %v1107_v32  ;;  %v990_v38 = vmul.f32 %v3600_v21, %v966_v31 }
 0x323   :  { %4427 = vst [vmem:[#allocation5_spill] sm:$0xff] %v3647_v37  ;;  %v3656_v5 = vmul.f32 0.5, %v3521_v58  ;;  %v2939_v19 = vpop.eup %2938  ;;  %v1108_v54 = vadd.f32 0.2548296, %v1084_v4  ;;  %v1216_v0 = vmul.f32 1.442695, %v1182_v12  ;;  %2946 = vrcp.f32 %v871_v46 }
 0x324   :  { %v3659_v63 = vmul.f32 0.70710677, %v3639_v27  ;;  %v1322_v8 = vadd.f32 1.0, %v1298_v15  ;;  %v1297_v39 = vmul.f32 %v1273_v28, %v3538_v24  ;;  %v3667_v6 = vsel %vm773_vm11, -1.0, %v4426_v25 }
 0x325   :  { %v3661_v50 = vpop.eup %2940  ;;  %v3670_v58 = vmul.f32 0.70710677, %v3644_v41  ;;  %v3673_v32 = vmul.f32 %v1317_v57, %v3433_v56  ;;  %v965_v55 = vadd.f32 -1.4531521, %v941_v59  ;;  %v3677_v26 = vand.u32 2147483647, %v3651_v61 }
 0x326   :  { %v944_v51 = vmul.f32 1.0614054, %v3661_v50  ;;  %v1251_v31 = vmul.f32 %v2939_v19, %v1131_v52  ;;  %v1014_v12 = vadd.f32 1.4214138, %v990_v38  ;;  %v1157_v24 = vsub.f32 0.0, %v3544_v13 }
 0x327   :  { %v3681_v7 = vadd.f32 %v707_v45, %v3305_v43  ;;  %v3684_v4 = vmul.f32 %v1320_v16, %v3459_v29  ;;  %v1132_v46 = vmul.f32 %v3527_v17, %v1108_v54  ;;  %v3688_v57 = vand.u32 2147483647, %v3659_v63 }
 0x328   :  { %v968_v56 = vadd.f32 -1.4531521, %v944_v51  ;;  %v2943_v2 = vpop.eup %2942  ;;  %v1321_v15 = vadd.f32 1.0, %v1297_v39  ;;  %2948 = vpow2.f32 %v1216_v0  ;;  %v3691_v28 = vmul.f32 0.5, %v3571_v62  ;;  %v646_v0 = vpop.f32.mrf.mxu0 }
 0x329   :  { %v3694_v59 = vand.u32 2147483647, %v3670_v58  ;;  %v989_v52 = vmul.f32 %v3630_v9, %v965_v55  ;;  %v852_v16 = vmul.f32 0.3275911, %v3677_v26  ;;  %v3700_v17 = vmul.f32 0.70710677, %v3681_v7 }
 0x32a   :  { %4428 = vst [vmem:[#allocation6_spill] sm:$0xff] %v3691_v28  ;;  %v992_v29 = vmul.f32 %v3661_v50, %v968_v56  ;;  %v1275_v38 = vsub.f32 1.0, %v1251_v31  ;;  %v1038_v19 = vmul.f32 %v3600_v21, %v1014_v12  ;;  %v1181_v54 = vmul.f32 %v1157_v24, %v3544_v13 }
 0x32b   :  { %v1160_v62 = vsub.f32 0.0, %v3579_v20  ;;  %v1252_v45 = vmul.f32 %v2943_v2, %v1132_v46  ;;  %v850_v39 = vmul.f32 0.3275911, %v3688_v57  ;;  %v1161_v55 = vsub.f32 0.0, %v3621_v14 }
 0x32c   :  { %v3708_v51 = vand.u32 2147483647, %v3700_v17  ;;  %v3711_v56 = vmul.f32 %v1322_v8, %v3466_v35  ;;  %v3714_v31 = vmul.f32 %v1321_v15, %v3471_v44  ;;  %v1016_v12 = vadd.f32 1.4214138, %v992_v29 }
 0x32d   :  { %v851_v13 = vmul.f32 0.3275911, %v3694_v59  ;;  %v1013_v24 = vadd.f32 1.4214138, %v989_v52  ;;  %vm775_vm12 = vcmp.lt.f32.partialorder %v3586_v36, 0.0  ;;  %v876_v46 = vadd.f32 1.0, %v852_v16 }
 0x32e   :  { %4429 = vst [vmem:[#allocation7_spill] sm:$0xff] %v3714_v31  ;;  %v3719_v2 = vadd.f32 %v646_v0, %v3307_v47  ;;  %v3724_v37 = vmul.f32 %v1275_v38, %v3556_v11  ;;  %v1062_v35 = vadd.f32 -0.28449672, %v1038_v19  ;;  %v1214_v8 = vmul.f32 1.442695, %v1181_v54 }
 0x32f   :  { %v3721_v22 = vpop.eup %2944  ;;  %v1184_v44 = vmul.f32 %v1160_v62, %v3579_v20  ;;  %v1276_v15 = vsub.f32 1.0, %v1252_v45  ;;  %v1159_v29 = vsub.f32 0.0, %v3609_v40  ;;  %v854_v28 = vmul.f32 0.3275911, %v3708_v51 }
 0x330   :  { %4430 = vst [vmem:[#allocation8_spill] sm:$0xff] %v3724_v37  ;;  %v945_v52 = vmul.f32 1.0614054, %v3721_v22  ;;  %v3730_v16 = vpop.eup %2946  ;;  %v1040_v0 = vmul.f32 %v3661_v50, %v1016_v12  ;;  %v874_v60 = vadd.f32 1.0, %v850_v39  ;;  %v1185_v31 = vmul.f32 %v1161_v55, %v3621_v14 }
 0x331   :  { %v875_v11 = vadd.f32 1.0, %v851_v13  ;;  %v1037_v38 = vmul.f32 %v3630_v9, %v1013_v24  ;;  %2950 = vrcp.f32 %v876_v46  ;;  %v3736_v20 = vmul.f32 0.70710677, %v3719_v2 }
 0x332   :  { %v969_v19 = vadd.f32 -1.4531521, %v945_v52  ;;  %v1086_v54 = vmul.f32 %v3600_v21, %v1062_v35  ;;  %2952 = vpow2.f32 %v1214_v8  ;;  %v3742_v62 = vsel %vm775_vm12, -1.0, %v4426_v25 }
 0x333   :  { %v1220_v45 = vmul.f32 1.442695, %v1184_v44  ;;  %v943_v39 = vmul.f32 1.0614054, %v3730_v16  ;;  %v1183_v14 = vmul.f32 %v1159_v29, %v3609_v40  ;;  %v878_v12 = vadd.f32 1.0, %v854_v28  ;;  %v709_v44 = vpop.f32.mrf.mxu1 }
 0x334   :  { %v993_v55 = vmul.f32 %v3721_v22, %v969_v19  ;;  %v1300_v13 = vmul.f32 %v1276_v15, %v3598_v1  ;;  %v1064_v24 = vadd.f32 -0.28449672, %v1040_v0  ;;  %2954 = vrcp.f32 %v874_v60 }
 0x335   :  { %v1222_v46 = vmul.f32 1.442695, %v1185_v31  ;;  %v2949_v35 = vpop.eup %2948  ;;  %v1061_v8 = vadd.f32 -0.28449672, %v1037_v38  ;;  %2956 = vrcp.f32 %v875_v11  ;;  %v3749_v36 = vand.u32 2147483647, %v3736_v20 }
 0x336   :  { %v1017_v52 = vadd.f32 1.4214138, %v993_v55  ;;  %v1110_v37 = vadd.f32 0.2548296, %v1086_v54  ;;  %vm776_vm13 = vcmp.lt.f32.partialorder %v3574_v3, 0.0  ;;  %2958 = vpow2.f32 %v1220_v45  ;;  %v648_v3 = vpop.f32.mrf.mxu0 }
 0x337   :  { %v1162_v40 = vsub.f32 0.0, %v3688_v57  ;;  %v967_v28 = vadd.f32 -1.4531521, %v943_v39  ;;  %2960 = vrcp.f32 %v878_v12  ;;  %v853_v60 = vmul.f32 0.3275911, %v3749_v36 }
 0x338   :  { %v1041_v1 = vmul.f32 %v3721_v22, %v1017_v52  ;;  %v1218_v31 = vmul.f32 1.442695, %v1183_v14  ;;  %v1088_v15 = vmul.f32 %v3661_v50, %v1064_v24  ;;  %2962 = vpow2.f32 %v1222_v46 }
 0x339   :  { %v3757_v29 = vadd.f32 %v709_v44, %v3318_v53  ;;  %v1324_v0 = vadd.f32 1.0, %v1300_v13  ;;  %v1085_v11 = vmul.f32 %v3630_v9, %v1061_v8  ;;  %v877_v19 = vadd.f32 1.0, %v853_v60 }
 0x33a   :  { %v1065_v38 = vadd.f32 -0.28449672, %v1041_v1  ;;  %v1134_v54 = vmul.f32 %v3600_v21, %v1110_v37  ;;  %v3762_v45 = vmul.f32 0.5, %v3562_v23  ;;  %v3767_v39 = vsel %vm776_vm13, -1.0, %v4426_v25 }
 0x33b   :  { %4431 = vst [vmem:[#allocation9_spill] sm:$0xff] %v3757_v29  ;;  %v3770_v14 = vmul.f32 0.5, %v3639_v27  ;;  %v991_v55 = vmul.f32 %v3730_v16, %v967_v28  ;;  %v1186_v12 = vmul.f32 %v1162_v40, %v3688_v57  ;;  %2964 = vrcp.f32 %v877_v19 }
 0x33c   :  { %v1089_v13 = vmul.f32 %v3721_v22, %v1065_v38  ;;  %v1112_v24 = vadd.f32 0.2548296, %v1088_v15  ;;  %vm778_vm14 = vcmp.lt.f32.partialorder %v3659_v63, 0.0  ;;  %v1163_v23 = vsub.f32 0.0, %v3694_v59 }
 0x33d   :  { %4432 = vst [vmem:[#allocation10_spill] sm:$0xff] %v3770_v14  ;;  %v3778_v21 = vmul.f32 0.70710677, %v3757_v29  ;;  %v3781_v37 = vmul.f32 %v1324_v0, %v3559_v30  ;;  %v1109_v27 = vadd.f32 0.2548296, %v1085_v11  ;;  %2966 = vpow2.f32 %v1218_v31 }
 0x33e   :  { %v3784_v46 = vmul.f32 0.5, %v3593_v33  ;;  %v3786_v57 = vpop.eup %2950  ;;  %v1254_v8 = vmul.f32 %v2949_v35, %v1134_v54  ;;  %vm777_vm15 = vcmp.lt.f32.partialorder %v3615_v34, 0.0  ;;  %v1113_v63 = vadd.f32 0.2548296, %v1089_v13 }
 0x33f   :  { %4433 = vst [vmem:[#allocation11_spill] sm:$0xff] %v3778_v21  ;;  %v1164_v52 = vsub.f32 0.0, %v3677_v26  ;;  %v2953_v44 = vpop.eup %2952  ;;  %v1015_v40 = vadd.f32 1.4214138, %v991_v55  ;;  %v3791_v28 = vsel %vm778_vm14, -1.0, %v4426_v25  ;;  %v3794_v1 = vadd.f32 %v648_v3, %v3303_v42  ;;  %v2875_v3 = vld [vmem:[%s4411_s7 + $0x30] sm:$0xff]  }
 0x340   :  { %v1224_v30 = vmul.f32 1.442695, %v1186_v12  ;;  %v1136_v33 = vmul.f32 %v3661_v50, %v1112_v24  ;;  %vm779_vm1 = vcmp.lt.f32.partialorder %v3670_v58, 0.0  ;;  %v1187_v35 = vmul.f32 %v1163_v23, %v3694_v59 }
 0x341   :  { %v3800_v34 = vand.u32 2147483647, %v3778_v21  ;;  %v3802_v60 = vpop.eup %2954  ;;  %v1133_v31 = vmul.f32 %v3630_v9, %v1109_v27  ;;  %v3806_v15 = vsel %vm777_vm15, -1.0, %v4426_v25  ;;  %v3809_v0 = vmul.f32 0.5, %v3644_v41  ;;  %v2874_v9 = vld [vmem:[%s4411_s7 + $0x38] sm:$0xff]  }
 0x342   :  { %v948_v42 = vmul.f32 1.0614054, %v3786_v57  ;;  %v3812_v50 = vpop.eup %2956  ;;  %v1278_v11 = vsub.f32 1.0, %v1254_v8  ;;  %v1137_v59 = vmul.f32 %v3721_v22, %v1113_v63  ;;  %v1188_v38 = vmul.f32 %v1164_v52, %v3677_v26  ;;  %2650 = vmatpush3.bf16.msra.mxu1 %v2874_v9  ;;  %v650_v9 = vpop.f32.mrf.mxu0 }
 0x343   :  { %v855_v19 = vmul.f32 0.3275911, %v3800_v34  ;;  %v2959_v54 = vpop.eup %2958  ;;  %v1039_v55 = vmul.f32 %v3730_v16, %v1015_v40  ;;  %2968 = vpow2.f32 %v1224_v30  ;;  %v3824_v41 = vsel %vm779_vm1, -1.0, %v4426_v25  ;;  %v711_v40 = vpop.f32.mrf.mxu1 }
 0x344   :  { %v3827_v12 = vmul.f32 0.70710677, %v3794_v1  ;;  %v3829_v22 = vpop.eup %2960  ;;  %v1256_v26 = vmul.f32 %v2959_v54, %v1136_v33  ;;  %v946_v13 = vmul.f32 1.0614054, %v3802_v60  ;;  %v1226_v24 = vmul.f32 1.442695, %v1187_v35 }
 0x345   :  { %v879_v23 = vadd.f32 1.0, %v855_v19  ;;  %v2963_v27 = vpop.eup %2962  ;;  %v1253_v8 = vmul.f32 %v2953_v44, %v1133_v31  ;;  %v947_v58 = vmul.f32 1.0614054, %v3812_v50  ;;  %v3837_v63 = vmul.f32 0.5, %v3628_v48 }
 0x346   :  { %v972_v52 = vadd.f32 -1.4531521, %v948_v42  ;;  %v4434_v30 = vmov 0.0   ;;  %v1302_v33 = vmul.f32 %v1278_v11, %v3606_v49  ;;  %v1257_v35 = vmul.f32 %v2963_v27, %v1137_v59  ;;  %v2876_v49 = vld [vmem:[%s4411_s7 + $0x28] sm:$0xff]  }
 0x347   :  { %2651 = vmatprep.subr.bf16.mxu1 %v4434_v30  ;;  %vm780_vm2 = vcmp.lt.f32.partialorder %v3651_v61, 0.0  ;;  %v1228_v19 = vmul.f32 1.442695, %v1188_v38  ;;  %v1063_v54 = vadd.f32 -0.28449672, %v1039_v55  ;;  %2970 = vrcp.f32 %v879_v23 }
 0x348   :  { %v950_v29 = vmul.f32 1.0614054, %v3829_v22  ;;  %v3844_v44 = vand.u32 2147483647, %v3827_v12  ;;  %v3846_v48 = vpop.eup %2964  ;;  %v1280_v31 = vsub.f32 1.0, %v1256_v26  ;;  %2972 = vpow2.f32 %v1226_v24  ;;  %2652 = vmatpush3.bf16.msra.mxu1 %v2875_v3 }
 0x349   :  { %v970_v42 = vadd.f32 -1.4531521, %v946_v13  ;;  %v3849_v14 = vadd.f32 %v711_v40, %v3305_v43  ;;  %v1277_v11 = vsub.f32 1.0, %v1253_v8  ;;  %v971_v59 = vadd.f32 -1.4531521, %v947_v58  ;;  %2653 = vmatprep.subr.bf16.mxu1 %v4434_v30  ;;  %v2877_v40 = vld [vmem:[%s4411_s7 + $0x20] sm:$0xff]  }
 0x34a   :  { %v996_v38 = vmul.f32 %v3786_v57, %v972_v52  ;;  %v3856_v55 = vadd.f32 %v650_v9, %v3307_v47  ;;  %v3859_v26 = vpop.eup %2966  ;;  %v1281_v13 = vsub.f32 1.0, %v1257_v35  ;;  %v3864_v43 = vsel %vm780_vm2, -1.0, %v4426_v25 }
 0x34b   :  { %2974 = vpow2.f32 %v1228_v19  ;;  %v856_v24 = vmul.f32 0.3275911, %v3844_v44  ;;  %v1087_v23 = vmul.f32 %v3730_v16, %v1063_v54  ;;  %v974_v3 = vadd.f32 -1.4531521, %v950_v29 }
 0x34c   :  { %v949_v27 = vmul.f32 1.0614054, %v3846_v48  ;;  %v3870_v47 = vmul.f32 0.70710677, %v3849_v14  ;;  %v1304_v8 = vmul.f32 %v1280_v31, %v3767_v39  ;;  %v994_v58 = vmul.f32 %v3802_v60, %v970_v42  ;;  %2654 = vmatpush3.bf16.msra.mxu1 %v2876_v49 }
 0x34d   :  { %v1166_v52 = vsub.f32 0.0, %v3708_v51  ;;  %v880_v61 = vadd.f32 1.0, %v856_v24  ;;  %v1301_v35 = vmul.f32 %v1277_v11, %v3667_v6  ;;  %v995_v29 = vmul.f32 %v3812_v50, %v971_v59  ;;  %2655 = vmatprep.subr.bf16.mxu1 %v4434_v30  ;;  %v713_v11 = vpop.f32.mrf.mxu1 }
 0x34e   :  { %v1020_v19 = vadd.f32 1.4214138, %v996_v38  ;;  %v3881_v9 = vmul.f32 0.70710677, %v3856_v55  ;;  %v3884_v39 = vadd.f32 1.0, %v1302_v33  ;;  %v1305_v54 = vmul.f32 %v1281_v13, %v3806_v15 }
 0x34f   :  { %2976 = vrcp.f32 %v880_v61  ;;  %v3888_v31 = vand.u32 2147483647, %v3870_v47  ;;  %v1111_v42 = vadd.f32 0.2548296, %v1087_v23  ;;  %vm782_vm3 = vcmp.lt.f32.partialorder %v3700_v17, 0.0 }
 0x350   :  { %4435 = vst [vmem:[#allocation12_spill] sm:$0xff] %v3884_v39  ;;  %v998_v6 = vmul.f32 %v3829_v22, %v974_v3  ;;  %v973_v49 = vadd.f32 -1.4531521, %v949_v27  ;;  %v3892_v59 = vpop.eup %2968  ;;  %v1328_v38 = vadd.f32 1.0, %v1304_v8  ;;  %v1018_v24 = vadd.f32 1.4214138, %v994_v58  ;;  %2656 = vmatpush3.bf16.msra.mxu1 %v2877_v40 }
 0x351   :  { %v1190_v33 = vmul.f32 %v1166_v52, %v3708_v51  ;;  %v858_v39 = vmul.f32 0.3275911, %v3888_v31  ;;  %v1325_v15 = vadd.f32 1.0, %v1301_v35  ;;  %v1019_v13 = vadd.f32 1.4214138, %v995_v29  ;;  %2689 = vmatprep.subr.bf16.mxu1 %v4434_v30 }
 0x352   :  { %v1044_v61 = vmul.f32 %v3786_v57, %v1020_v19  ;;  %v3898_v23 = vand.u32 2147483647, %v3881_v9  ;;  %v1329_v3 = vadd.f32 1.0, %v1305_v54  ;;  %v3902_v21 = vadd.f32 %v713_v11, %v3318_v53  ;;  %v2862_v53 = vld [vmem:[%s4411_s7 + $0x58] sm:$0xff]  }
 0x353   :  { %v882_v27 = vadd.f32 1.0, %v858_v39  ;;  %v1364_v51 = vpack.c.bf16 %v3684_v4, %v3624_v10  ;;  %v1135_v8 = vmul.f32 %v3730_v16, %v1111_v42  ;;  %v1022_v58 = vadd.f32 1.4214138, %v998_v6 }
 0x354   :  { %v997_v52 = vmul.f32 %v3846_v48, %v973_v49  ;;  %v857_v40 = vmul.f32 0.3275911, %v3898_v23  ;;  %v3909_v35 = vpop.eup %2970  ;;  %v1352_v29 = vmul.f32 %v1328_v38, %v3762_v45  ;;  %v1042_v19 = vmul.f32 %v3802_v60, %v1018_v24 }
 0x355   :  { %v1168_v39 = vsub.f32 0.0, %v3844_v44  ;;  %2978 = vrcp.f32 %v882_v27  ;;  %1499 = vrot.lane.b32.xlu0 %v1364_v51, %s3002_s4  ;;  %v3918_v10 = vpop.eup %2972  ;;  %v1349_v4 = vmul.f32 %v1325_v15, %v3656_v5  ;;  %v1068_v16 = vadd.f32 -0.28449672, %v1044_v61  ;;  %2638 = vmatmul.mubr.msk.bf16.vlgmr.msra.gmra.mxu0 %vm1406_vm4, %v1364_v51  ;;  %v2863_v61 = vld [vmem:[%s4411_s7 + $0x50] sm:$0xff]  }
 0x356   :  { %v1165_v54 = vsub.f32 0.0, %v3749_v36  ;;  %v881_v45 = vadd.f32 1.0, %v857_v40  ;;  %v1353_v42 = vmul.f32 %v1329_v3, %v3784_v46  ;;  %v1043_v6 = vmul.f32 %v3812_v50, %v1019_v13  ;;  %2641 = vmatprep.mubr.msk.bf16.mxu0 %vm2999_vm0, %v4434_v30  ;;  %2670 = vmatpush3.bf16.msra.mxu0 %v2862_v53 }
 0x357   :  { %v3925_v49 = vmul.f32 0.70710677, %v3902_v21  ;;  %v1046_v38 = vmul.f32 %v3829_v22, %v1022_v58  ;;  %v1021_v24 = vadd.f32 1.4214138, %v997_v52  ;;  %v951_v27 = vmul.f32 1.0614054, %v3909_v35  ;;  %2671 = vmatprep.subr.bf16.mxu0 %v4434_v30 }
 0x358   :  { %v3927_v11 = vpop.eup %2974  ;;  %2980 = vrcp.f32 %v881_v45  ;;  %v1066_v5 = vadd.f32 -0.28449672, %v1042_v19  ;;  %v1192_v15 = vmul.f32 %v1168_v39, %v3844_v44  ;;  %v1365_v13 = vpack.c.bf16 %v1352_v29, %v3781_v37 }
 0x359   :  { %v3934_v46 = vand.u32 2147483647, %v3925_v49  ;;  %v1092_v3 = vmul.f32 %v3786_v57, %v1068_v16  ;;  %v3946_v51 = vsel %vm782_vm3, -1.0, %v4426_v25  ;;  %v1232_v44 = vmul.f32 1.442695, %v1190_v33 }
 0x35a   :  { %v1189_v58 = vmul.f32 %v1165_v54, %v3749_v36  ;;  %v3951_v52 = vmul.f32 %v3859_v26, %v1135_v8  ;;  %v1170_v37 = vsub.f32 0.0, %v3888_v31  ;;  %1501 = vrot.lane.b32.xlu1 %v1365_v13, %s3002_s4  ;;  %v3956_v29 = vpack.c.bf16 %v1353_v42, %v1349_v4  ;;  %2672 = vmatpush3.bf16.msra.mxu0 %v2863_v61  ;;  %v2864_v42 = vld [vmem:[%s4411_s7 + $0x48] sm:$0xff]  }
 0x35b   :  { %v859_v40 = vmul.f32 0.3275911, %v3934_v46  ;;  %v1067_v17 = vadd.f32 -0.28449672, %v1043_v6  ;;  %v1070_v39 = vadd.f32 -0.28449672, %v1046_v38  ;;  %v1045_v33 = vmul.f32 %v3846_v48, %v1021_v24  ;;  %2673 = vmatprep.subr.bf16.mxu0 %v4434_v30 }
 0x35c   :  { %v3958_v19 = vpop.eup %2976  ;;  %v975_v36 = vadd.f32 -1.4531521, %v951_v27  ;;  %v1090_v53 = vmul.f32 %v3802_v60, %v1066_v5  ;;  %v1236_v8 = vmul.f32 1.442695, %v1192_v15  ;;  %1739 = vrot.lane.b32.xlu0 %v3956_v29, %s3002_s4  ;;  %v1116_v54 = vadd.f32 0.2548296, %v1092_v3 }
 0x35d   :  { %v952_v26 = vmul.f32 1.0614054, %v3958_v19  ;;  %v883_v16 = vadd.f32 1.0, %v859_v40  ;;  %2982 = vpow2.f32 %v1232_v44  ;;  %v1230_v4 = vmul.f32 1.442695, %v1189_v58  ;;  %2642 = vmatmul.mubr.msk.bf16.gmra.mxu0 %vm1406_vm4, %v1365_v13  ;;  %v2865_v58 = vld [vmem:[%s4411_s7 + $0x40] sm:$0xff]  }
 0x35e   :  { %v1169_v45 = vsub.f32 0.0, %v3898_v23  ;;  %v1194_v38 = vmul.f32 %v1170_v37, %v3888_v31  ;;  %v3973_v24 = vpack.c.bf16 %v3711_v56, %v3633_v18  ;;  %v1094_v27 = vmul.f32 %v3829_v22, %v1070_v39  ;;  %2645 = vmatprep.mubr.msk.bf16.mxu0 %vm2999_vm0, %v4434_v30  ;;  %2674 = vmatpush3.bf16.msra.mxu0 %v2864_v42 }
 0x35f   :  { %v976_v6 = vadd.f32 -1.4531521, %v952_v26  ;;  %2984 = vrcp.f32 %v883_v16  ;;  %vm781_vm5 = vcmp.lt.f32.partialorder %v3736_v20, 0.0  ;;  %v1069_v5 = vadd.f32 -0.28449672, %v1045_v33  ;;  %2675 = vmatprep.subr.bf16.mxu0 %v4434_v30 }
 0x360   :  { %v999_v15 = vmul.f32 %v3909_v35, %v975_v36  ;;  %v1279_v61 = vsub.f32 1.0, %v3951_v52  ;;  %v1114_v3 = vadd.f32 0.2548296, %v1090_v53  ;;  %2986 = vpow2.f32 %v1236_v8  ;;  %1975 = vrot.lane.b32.xlu0 %v3973_v24, %s3002_s4 }
 0x361   :  { %v1000_v44 = vmul.f32 %v3958_v19, %v976_v6  ;;  %v1091_v56 = vmul.f32 %v3812_v50, %v1067_v17  ;;  %2988 = vpow2.f32 %v1230_v4  ;;  %v1167_v31 = vsub.f32 0.0, %v3800_v34 }
 0x362   :  { %v3985_v18 = vpop.eup %2978  ;;  %v1193_v13 = vmul.f32 %v1169_v45, %v3898_v23  ;;  %v1140_v52 = vmul.f32 %v3786_v57, %v1116_v54  ;;  %v1240_v39 = vmul.f32 1.442695, %v1194_v38  ;;  %v1118_v33 = vadd.f32 0.2548296, %v1094_v27  ;;  %2676 = vmatpush3.bf16.msra.mxu0 %v2865_v58 }
 0x363   :  { %v1024_v37 = vadd.f32 1.4214138, %v1000_v44  ;;  %v954_v40 = vmul.f32 1.0614054, %v3985_v18  ;;  %v3999_v17 = vsel %vm781_vm5, -1.0, %v4426_v25  ;;  %v1093_v23 = vmul.f32 %v3846_v48, %v1069_v5  ;;  %2709 = vmatprep.subr.bf16.mxu0 %v4434_v30 }
 0x364   :  { %v1023_v36 = vadd.f32 1.4214138, %v999_v15  ;;  %v1138_v26 = vmul.f32 %v3802_v60, %v1114_v3  ;;  %v1171_v16 = vsub.f32 0.0, %v3934_v46  ;;  %v1115_v54 = vadd.f32 0.2548296, %v1091_v56 }
 0x365   :  { %v4002_v53 = vpop.eup %2980  ;;  %v1048_v57 = vmul.f32 %v3958_v19, %v1024_v37  ;;  %v978_v8 = vadd.f32 -1.4531521, %v954_v40  ;;  %v1191_v4 = vmul.f32 %v1167_v31, %v3800_v34  ;;  %v1238_v20 = vmul.f32 1.442695, %v1193_v13 }
 0x366   :  { %v953_v45 = vmul.f32 1.0614054, %v4002_v53  ;;  %v1260_v42 = vmul.f32 %v3927_v11, %v1140_v52  ;;  %2990 = vpow2.f32 %v1240_v39  ;;  %v1142_v60 = vmul.f32 %v3829_v22, %v1118_v33 }
 0x367   :  { %v1072_v6 = vadd.f32 -0.28449672, %v1048_v57  ;;  %v1002_v38 = vmul.f32 %v3985_v18, %v978_v8  ;;  %v1117_v27 = vadd.f32 0.2548296, %v1093_v23  ;;  %v1047_v5 = vmul.f32 %v3909_v35, %v1023_v36 }
 0x368   :  { %v977_v15 = vadd.f32 -1.4531521, %v953_v45  ;;  %v4015_v34 = vmul.f32 %v1279_v61, %v3742_v62  ;;  %v1195_v11 = vmul.f32 %v1171_v16, %v3934_v46  ;;  %v1139_v56 = vmul.f32 %v3812_v50, %v1115_v54 }
 0x369   :  { %v1096_v3 = vmul.f32 %v3958_v19, %v1072_v6  ;;  %v1026_v44 = vadd.f32 1.4214138, %v1002_v38  ;;  %v1234_v31 = vmul.f32 1.442695, %v1191_v4  ;;  %2992 = vpow2.f32 %v1238_v20 }
 0x36a   :  { %v1001_v13 = vmul.f32 %v4002_v53, %v977_v15  ;;  %v2983_v58 = vpop.eup %2982  ;;  %v4022_v22 = vmul.f32 %v3892_v59, %v1138_v26  ;;  %v1284_v52 = vsub.f32 1.0, %v1260_v42  ;;  %v1141_v39 = vmul.f32 %v3846_v48, %v1117_v27 }
 0x36b   :  { %v1120_v37 = vadd.f32 0.2548296, %v1096_v3  ;;  %v1050_v62 = vmul.f32 %v3985_v18, %v1026_v44  ;;  %v1262_v40 = vmul.f32 %v2983_v58, %v1142_v60  ;;  %v1071_v46 = vadd.f32 -0.28449672, %v1047_v5 }
 0x36c   :  { %v4025_v61 = vpop.eup %2984  ;;  %v1025_v33 = vadd.f32 1.4214138, %v1001_v13  ;;  %v1242_v57 = vmul.f32 1.442695, %v1195_v11  ;;  %v1259_v59 = vmul.f32 %v3918_v10, %v1139_v56  ;;  %2994 = vpow2.f32 %v1234_v31 }
 0x36d   :  { %v1144_v50 = vmul.f32 %v3958_v19, %v1120_v37  ;;  %v1074_v23 = vadd.f32 -0.28449672, %v1050_v62  ;;  %v955_v36 = vmul.f32 1.0614054, %v4025_v61  ;;  %v2987_v8 = vpop.eup %2986  ;;  %vm784_vm6 = vcmp.lt.f32.partialorder %v3827_v12, 0.0 }
 0x36e   :  { %v1049_v26 = vmul.f32 %v4002_v53, %v1025_v33  ;;  %v2989_v16 = vpop.eup %2988  ;;  %v1308_v54 = vmul.f32 %v1284_v52, %v3864_v43  ;;  %v1286_v19 = vsub.f32 1.0, %v1262_v40  ;;  %v1095_v42 = vmul.f32 %v3909_v35, %v1071_v46 }
 0x36f   :  { %v1264_v48 = vmul.f32 %v2987_v8, %v1144_v50  ;;  %v1098_v4 = vmul.f32 %v3985_v18, %v1074_v23  ;;  %v979_v45 = vadd.f32 -1.4531521, %v955_v36  ;;  %v1261_v20 = vmul.f32 %v2989_v16, %v1141_v39 }
 0x370   :  { %v1073_v6 = vadd.f32 -0.28449672, %v1049_v26  ;;  %2996 = vpow2.f32 %v1242_v57  ;;  %v1283_v27 = vsub.f32 1.0, %v1259_v59  ;;  %v808_v5 = vsel %vm784_vm6, -1.0, %v4426_v25 }
 0x371   :  { %v1288_v38 = vsub.f32 1.0, %v1264_v48  ;;  %v1122_v60 = vadd.f32 0.2548296, %v1098_v4  ;;  %v1003_v10 = vmul.f32 %v4025_v61, %v979_v45  ;;  %vm786_vm7 = vcmp.lt.f32.partialorder %v3870_v47, 0.0 }
 0x372   :  { %v1097_v43 = vmul.f32 %v4002_v53, %v1073_v6  ;;  %v1332_v15 = vadd.f32 1.0, %v1308_v54  ;;  %v1285_v31 = vsub.f32 1.0, %v1261_v20  ;;  %v1119_v13 = vadd.f32 0.2548296, %v1095_v42  ;;  %v4436_v6 = vld [vmem:[#allocation7_spill] sm:$0xff] }
 0x373   :  { %v1312_v3 = vmul.f32 %v1288_v38, %v808_v5  ;;  %v1146_v44 = vmul.f32 %v3985_v18, %v1122_v60  ;;  %v1027_v11 = vadd.f32 1.4214138, %v1003_v10  ;;  %v2991_v56 = vpop.eup %2990  ;;  %v736_v58 = vmul.f32 0.5, %v3794_v1 }
 0x374   :  { %v1121_v52 = vadd.f32 0.2548296, %v1097_v43  ;;  %v1310_v37 = vmul.f32 %v1286_v19, %v3946_v51  ;;  %v1282_v39 = vsub.f32 1.0, %v4022_v22  ;;  %v1307_v46 = vmul.f32 %v1283_v27, %v3824_v41 }
 0x375   :  { %v1336_v62 = vadd.f32 1.0, %v1312_v3  ;;  %v1266_v12 = vmul.f32 %v2991_v56, %v1146_v44  ;;  %v1051_v40 = vmul.f32 %v4025_v61, %v1027_v11  ;;  %v810_v18 = vsel %vm786_vm7, -1.0, %v4426_v25  ;;  %v4437_v44 = vld [vmem:[#allocation11_spill] sm:$0xff]  ;;  %v4438_v56 = vld [vmem:[#allocation4_spill] sm:$0xff] }
 0x376   :  { %v1145_v33 = vmul.f32 %v4002_v53, %v1121_v52  ;;  %v2993_v50 = vpop.eup %2992  ;;  %v1356_v1 = vmul.f32 %v1332_v15, %v3837_v63  ;;  %v1309_v57 = vmul.f32 %v1285_v31, %v3999_v17  ;;  %v1143_v8 = vmul.f32 %v3909_v35, %v1119_v13  ;;  %v4441_v52 = vld [vmem:[#allocation10_spill] sm:$0xff] }
 0x377   :  { %v1360_v23 = vmul.f32 %v1336_v62, %v736_v58  ;;  %v1290_v36 = vsub.f32 1.0, %v1266_v12  ;;  %v1075_v51 = vadd.f32 -0.28449672, %v1051_v40  ;;  %vm785_vm8 = vcmp.lt.f32.partialorder %v3881_v9, 0.0 }
 0x378   :  { %v1265_v22 = vmul.f32 %v2993_v50, %v1145_v33  ;;  %v1334_v41 = vadd.f32 1.0, %v1310_v37  ;;  %v1306_v53 = vmul.f32 %v1282_v39, %v3791_v28  ;;  %v1331_v16 = vadd.f32 1.0, %v1307_v46  ;;  %v4443_v50 = vld [vmem:[#allocation3_spill] sm:$0xff] }
 0x379   :  { %v1314_v59 = vmul.f32 %v1290_v36, %v810_v18  ;;  %v1099_v47 = vmul.f32 %v4025_v61, %v1075_v51  ;;  %v1366_v26 = vpack.c.bf16 %v1360_v23, %v1356_v1  ;;  %v734_v63 = vmul.f32 0.5, %v3681_v7  ;;  %v2995_v48 = vpop.eup %2994  ;;  %v4442_v18 = vld [vmem:[#allocation5_spill] sm:$0xff]  ;;  %v4444_v23 = vld [vmem:[#allocation12_spill] sm:$0xff] }
 0x37a   :  { %v1289_v54 = vsub.f32 1.0, %v1265_v22  ;;  %v738_v4 = vmul.f32 0.5, %v3849_v14  ;;  %v809_v35 = vsel %vm785_vm8, -1.0, %v4426_v25  ;;  %v1327_v9 = vadd.f32 1.0, %v4015_v34 }
 0x37b   :  { %v1338_v17 = vadd.f32 1.0, %v1314_v59  ;;  %v1123_v45 = vadd.f32 0.2548296, %v1099_v47  ;;  %1503 = vrot.lane.b32.xlu1 %v1366_v26, %s3002_s4  ;;  %2646 = vmatmul.mubr.msk.bf16.gmra.mxu0 %vm1406_vm4, %v1366_v26  ;;  %v1333_v19 = vadd.f32 1.0, %v1309_v57  ;;  %v1263_v20 = vmul.f32 %v2995_v48, %v1143_v8  ;;  %v4445_v57 = vld [vmem:[#allocation2_spill] sm:$0xff] }
 0x37c   :  { %v1313_v28 = vmul.f32 %v1289_v54, %v809_v35  ;;  %2677 = vmatprep.mubr.msk.bf16.mxu0 %vm2999_vm0, %v4434_v30  ;;  %v1358_v7 = vmul.f32 %v1334_v41, %v734_v63  ;;  %v1601_v38 = vpack.c.bf16 %v4436_v6, %v3673_v32  ;;  %v1330_v10 = vadd.f32 1.0, %v1306_v53  ;;  %v4446_v63 = vld [vmem:[#allocation9_spill] sm:$0xff] }
 0x37d   :  { %v1362_v42 = vmul.f32 %v1338_v17, %v738_v4  ;;  %v1147_v14 = vmul.f32 %v4025_v61, %v1123_v45  ;;  %v2997_v60 = vpop.eup %2996  ;;  %v733_v27 = vmul.f32 0.5, %v3719_v2  ;;  %v737_v5 = vmul.f32 0.5, %v3856_v55  ;;  %v4439_v2 = vld [vmem:[#allocation6_spill] sm:$0xff]  ;;  %v2871_v45 = vld [vmem:[%s4411_s7 + $0xd0] sm:$0xff]  }
 0x37e   :  { %v1337_v34 = vadd.f32 1.0, %v1313_v28  ;;  %v1355_v43 = vmul.f32 %v1331_v16, %v3809_v0  ;;  %vm787_vm9 = vcmp.lt.f32.partialorder %v3925_v49, 0.0  ;;  %vm783_vm10 = vcmp.lt.f32.partialorder %v4437_v44, 0.0  ;;  %v2866_v0 = vld [vmem:[%s4411_s7 + $0x98] sm:$0xff]   ;;  %v4440_v49 = vld [vmem:[#allocation8_spill] sm:$0xff]  ;;  %v2868_v16 = vld [vmem:[%s4411_s7 + $0x88] sm:$0xff]  }
 0x37f   :  { %v1267_v15 = vmul.f32 %v2997_v60, %v1147_v14  ;;  %v4073_v3 = vpack.c.bf16 %v1362_v42, %v1358_v7  ;;  %1737 = vrot.lane.b32.xlu1 %v1601_v38, %s3002_s4  ;;  %v1357_v61 = vmul.f32 %v1333_v19, %v733_v27  ;;  %v1287_v32 = vsub.f32 1.0, %v1263_v20  ;;  %v2878_v19 = vld [vmem:[%s4411_s7 + $0x78] sm:$0xff]   ;;  %v2879_v28 = vld [vmem:[%s4411_s7 + $0x70] sm:$0xff]   ;;  %v2880_v42 = vld [vmem:[%s4411_s7 + $0x68] sm:$0xff]  }
 0x380   :  { %v1361_v11 = vmul.f32 %v1337_v34, %v737_v5  ;;  %v726_v31 = vmul.f32 0.5, %v4438_v56  ;;  %v1351_v13 = vmul.f32 %v1327_v9, %v4439_v2  ;;  %v1323_v58 = vadd.f32 1.0, %v4440_v49  ;;  %v2872_v9 = vld [vmem:[%s4411_s7 + $0xc8] sm:$0xff]   ;;  %v2881_v14 = vld [vmem:[%s4411_s7 + $0x60] sm:$0xff]  }
 0x381   :  { %v1291_v55 = vsub.f32 1.0, %v1267_v15  ;;  %1979 = vrot.lane.b32.xlu0 %v4073_v3, %s3002_s4  ;;  %v1354_v37 = vmul.f32 %v1330_v10, %v4441_v52  ;;  %v811_v62 = vsel %vm787_vm9, -1.0, %v4426_v25  ;;  %v807_v40 = vsel %vm783_vm10, -1.0, %v4426_v25  ;;  %v2867_v25 = vld [vmem:[%s4411_s7 + $0x90] sm:$0xff]   ;;  %v2884_v27 = vld [vmem:[%s4411_s7 + $0xa8] sm:$0xff]   ;;  %v2885_v34 = vld [vmem:[%s4411_s7 + $0xa0] sm:$0xff]  }
 0x382   :  { %v1603_v12 = vpack.c.bf16 %v1361_v11, %v1357_v61  ;;  %v2078_v46 = vpack.c.bf16 %v1355_v43, %v1351_v13  ;;  %v1319_v33 = vadd.f32 1.0, %v4442_v18  ;;  %v723_v1 = vmul.f32 0.5, %v4443_v50  ;;  %v2883_v10 = vld [vmem:[%s4411_s7 + $0xb0] sm:$0xff]   ;;  %v2886_v15 = vld [vmem:[%s4411_s7 + $0xf8] sm:$0xff]   ;;  %v2888_v44 = vld [vmem:[%s4411_s7 + $0xe8] sm:$0xff]  }
 0x383   :  { %v1315_v39 = vmul.f32 %v1291_v55, %v811_v62  ;;  %2678 = vmatmul.mubr.msk.bf16.vlgmr.msra.gmra.mxu0 %vm1406_vm4, %v1601_v38  ;;  %v1350_v36 = vmul.f32 %v4444_v23, %v726_v31  ;;  %v1311_v51 = vmul.f32 %v1287_v32, %v807_v40  ;;  %v719_v8 = vmul.f32 0.5, %v4445_v57  ;;  %v2882_v38 = vld [vmem:[%s4411_s7 + $0xb8] sm:$0xff]   ;;  %v2887_v61 = vld [vmem:[%s4411_s7 + $0xf0] sm:$0xff]   ;;  %v2368_v11 = vld [vmem:[%s4412_s8] ss:$0 sm:$0xff] }
 0x384   :  { %1741 = vrot.lane.b32.xlu1 %v1603_v12, %s3002_s4  ;;  %2681 = vmatprep.mubr.msk.bf16.mxu0 %vm2999_vm0, %v4434_v30  ;;  %v1347_v22 = vmul.f32 %v1323_v58, %v723_v1  ;;  %v739_v53 = vmul.f32 0.5, %v3902_v21  ;;  %v735_v54 = vmul.f32 0.5, %v4446_v63  ;;  %v2869_v21 = vld [vmem:[%s4411_s7 + $0x80] sm:$0xff]  }
 0x385   :  { %2215 = vrot.lane.b32.xlu0 %v2078_v46, %s3002_s4  ;;  %2710 = vmatpush3.bf16.msra.mxu0 %v2866_v0  ;;  %v1339_v41 = vadd.f32 1.0, %v1315_v39  ;;  %v1840_v59 = vpack.c.bf16 %v1354_v37, %v1350_v36  ;;  %v1343_v47 = vmul.f32 %v1319_v33, %v719_v8  ;;  %v1335_v26 = vadd.f32 1.0, %v1311_v51  ;;  %v2889_v56 = vld [vmem:[%s4411_s7 + $0xe0] sm:$0xff]  }
 0x386   :  { %2711 = vmatprep.subr.bf16.mxu0 %v4434_v30  ;;  %v2402_v57 = vld [vmem:[%s4412_s8 + $0x2] ss:$0 sm:$0xff] }
 0x387   :  { %v1363_v48 = vmul.f32 %v1339_v41, %v739_v53  ;;  %v2077_v4 = vpack.c.bf16 %v1347_v22, %v1343_v47  ;;  %v1359_v17 = vmul.f32 %v1335_v26, %v735_v54 }
 0x388   :  { %1977 = vrot.lane.b32.xlu1 %v1840_v59, %s3002_s4 }
 0x389   :  { %2712 = vmatpush3.bf16.msra.mxu0 %v2867_v25  ;;  %v2079_v35 = vpack.c.bf16 %v1363_v48, %v1359_v17 }
 0x38a   :  { %2713 = vmatprep.subr.bf16.mxu0 %v4434_v30 }
 0x38b   :  { %2682 = vmatmul.mubr.msk.bf16.gmra.mxu0 %vm1406_vm4, %v3956_v29  ;;  %v2870_v29 = vld [vmem:[%s4411_s7 + $0xd8] sm:$0xff]  }
 0x38c   :  { %2213 = vrot.lane.b32.xlu1 %v2077_v4, %s3002_s4  ;;  %2685 = vmatprep.mubr.msk.bf16.mxu0 %vm2999_vm0, %v4434_v30 }
 0x38d   :  { %2714 = vmatpush3.bf16.msra.mxu0 %v2868_v16 }
 0x38e   :  { %2715 = vmatprep.subr.bf16.mxu0 %v4434_v30 }
 0x390   :  { %2217 = vrot.lane.b32.xlu1 %v2079_v35, %s3002_s4 }
 0x391   :  { %2716 = vmatpush3.bf16.msra.mxu0 %v2869_v21 }
 0x392   :  { %2749 = vmatprep.subr.bf16.mxu0 %v4434_v30 }
 0x393   :  { %2686 = vmatmul.mubr.msk.bf16.gmra.mxu0 %vm1406_vm4, %v1603_v12 }
 0x394   :  { %2717 = vmatprep.mubr.msk.bf16.mxu0 %vm2999_vm0, %v4434_v30 }
 0x39b   :  { %2718 = vmatmul.mubr.msk.bf16.vlgmr.msra.gmra.mxu0 %vm1406_vm4, %v3973_v24  ;;  %v2873_v24 = vld [vmem:[%s4411_s7 + $0xc0] sm:$0xff]  }
 0x39c   :  { %2721 = vmatprep.mubr.msk.bf16.mxu0 %vm2999_vm0, %v4434_v30  ;;  %2750 = vmatpush3.bf16.msra.mxu0 %v2870_v29 }
 0x39d   :  { %2751 = vmatprep.subr.bf16.mxu0 %v4434_v30 }
 0x3a0   :  { %2752 = vmatpush3.bf16.msra.mxu0 %v2871_v45 }
 0x3a1   :  { %2753 = vmatprep.subr.bf16.mxu0 %v4434_v30 }
 0x3a3   :  { %2722 = vmatmul.mubr.msk.bf16.gmra.mxu0 %vm1406_vm4, %v1840_v59 }
 0x3a4   :  { %2725 = vmatprep.mubr.msk.bf16.mxu0 %vm2999_vm0, %v4434_v30  ;;  %2754 = vmatpush3.bf16.msra.mxu0 %v2872_v9  ;;  %v2436_v9 = vld [vmem:[%s4412_s8 + $0x4] ss:$0 sm:$0xff] }
 0x3a5   :  { %2755 = vmatprep.subr.bf16.mxu0 %v4434_v30 }
 0x3a8   :  { %2756 = vmatpush3.bf16.msra.mxu0 %v2873_v24 }
 0x3ab   :  { %2726 = vmatmul.mubr.msk.bf16.gmra.mxu0 %vm1406_vm4, %v4073_v3 }
 0x3ac   :  { %2757 = vmatprep.mubr.msk.bf16.mxu0 %vm2999_vm0, %v4434_v30 }
 0x3b3   :  { %2758 = vmatmul.mubr.msk.bf16.vlgmr.msra.gmra.mxu0 %vm1406_vm4, %v2077_v4 }
 0x3b4   :  { %2761 = vmatprep.mubr.msk.bf16.mxu0 %vm2999_vm0, %v4434_v30 }
 0x3bb   :  { %2762 = vmatmul.mubr.msk.bf16.gmra.mxu0 %vm1406_vm4, %v2078_v46 }
 0x3bc   :  { %2765 = vmatprep.mubr.msk.bf16.mxu0 %vm2999_vm0, %v4434_v30 }
 0x3c3   :  { %2766 = vmatmul.mubr.msk.bf16.gmra.mxu0 %vm1406_vm4, %v2079_v35 }
 0x3c7   :  { %v1500_v20 = vpop.permute.xlu0 %1499 }
 0x3c8   :  { %2658 = vmatmul.mubr.msk.bf16.vlgmr.msra.gmra.mxu1 %vm1406_vm4, %v1500_v20 }
 0x3c9   :  { %2690 = vmatpush3.bf16.msra.mxu1 %v2878_v19  ;;  %2661 = vmatprep.mubr.msk.bf16.mxu1 %vm2999_vm0, %v4434_v30 }
 0x3ca   :  { %2691 = vmatprep.subr.bf16.mxu1 %v4434_v30 }
 0x3cc   :  { %v1502_v7 = vpop.permute.xlu1 %1501 }
 0x3cd   :  { %2692 = vmatpush3.bf16.msra.mxu1 %v2879_v28 }
 0x3ce   :  { %2693 = vmatprep.subr.bf16.mxu1 %v4434_v30  ;;  %v1740_v5 = vpop.permute.xlu0 %1739 }
 0x3d0   :  { %2662 = vmatmul.mubr.msk.bf16.gmra.mxu1 %vm1406_vm4, %v1502_v7 }
 0x3d1   :  { %2694 = vmatpush3.bf16.msra.mxu1 %v2880_v42  ;;  %2665 = vmatprep.mubr.msk.bf16.mxu1 %vm2999_vm0, %v4434_v30 }
 0x3d2   :  { %2695 = vmatprep.subr.bf16.mxu1 %v4434_v30  ;;  %v1976_v3 = vpop.permute.xlu0 %1975 }
 0x3d5   :  { %2696 = vmatpush3.bf16.msra.mxu1 %v2881_v14 }
 0x3d6   :  { %2729 = vmatprep.subr.bf16.mxu1 %v4434_v30 }
 0x3ed   :  { %v1504_v6 = vpop.permute.xlu1 %1503 }
 0x3ee   :  { %2666 = vmatmul.mubr.msk.bf16.gmra.mxu1 %vm1406_vm4, %v1504_v6 }
 0x3ef   :  { %2697 = vmatprep.mubr.msk.bf16.mxu1 %vm2999_vm0, %v4434_v30 }
 0x3f1   :  { %v1738_v60 = vpop.permute.xlu1 %1737 }
 0x3f3   :  { %v1980_v0 = vpop.permute.xlu0 %1979 }
 0x3f6   :  { %2698 = vmatmul.mubr.msk.bf16.vlgmr.msra.gmra.mxu1 %vm1406_vm4, %v1738_v60  ;;  %v1742_v43 = vpop.permute.xlu1 %1741 }
 0x3f7   :  { %2730 = vmatpush3.bf16.msra.mxu1 %v2882_v38  ;;  %2701 = vmatprep.mubr.msk.bf16.mxu1 %vm2999_vm0, %v4434_v30  ;;  %v2216_v18 = vpop.permute.xlu0 %2215 }
 0x3f8   :  { %2731 = vmatprep.subr.bf16.mxu1 %v4434_v30 }
 0x3fa   :  { %v1978_v32 = vpop.permute.xlu1 %1977 }
 0x3fb   :  { %2732 = vmatpush3.bf16.msra.mxu1 %v2883_v10 }
 0x3fc   :  { %2733 = vmatprep.subr.bf16.mxu1 %v4434_v30 }
 0x3fe   :  { %2702 = vmatmul.mubr.msk.bf16.gmra.mxu1 %vm1406_vm4, %v1740_v5  ;;  %v2214_v40 = vpop.permute.xlu1 %2213 }
 0x3ff   :  { %2734 = vmatpush3.bf16.msra.mxu1 %v2884_v27  ;;  %2705 = vmatprep.mubr.msk.bf16.mxu1 %vm2999_vm0, %v4434_v30 }
 0x400   :  { %2735 = vmatprep.subr.bf16.mxu1 %v4434_v30 }
 0x402   :  { %v2218_v33 = vpop.permute.xlu1 %2217 }
 0x403   :  { %2736 = vmatpush3.bf16.msra.mxu1 %v2885_v34 }
 0x404   :  { %2769 = vmatprep.subr.bf16.mxu1 %v4434_v30 }
 0x406   :  { %2706 = vmatmul.mubr.msk.bf16.gmra.mxu1 %vm1406_vm4, %v1742_v43 }
 0x407   :  { %2737 = vmatprep.mubr.msk.bf16.mxu1 %vm2999_vm0, %v4434_v30 }
 0x40e   :  { %2738 = vmatmul.mubr.msk.bf16.vlgmr.msra.gmra.mxu1 %vm1406_vm4, %v1976_v3 }
 0x40f   :  { %2770 = vmatpush3.bf16.msra.mxu1 %v2886_v15  ;;  %2741 = vmatprep.mubr.msk.bf16.mxu1 %vm2999_vm0, %v4434_v30 }
 0x410   :  { %2771 = vmatprep.subr.bf16.mxu1 %v4434_v30 }
 0x413   :  { %2772 = vmatpush3.bf16.msra.mxu1 %v2887_v61 }
 0x414   :  { %2773 = vmatprep.subr.bf16.mxu1 %v4434_v30 }
 0x415   :  { %v1450_v31 = vpop.f32.mrf.mxu0 }
 0x416   :  { %2742 = vmatmul.mubr.msk.bf16.gmra.mxu1 %vm1406_vm4, %v1978_v32  ;;  %v1451_v2 = vadd.f32 %v2368_v11, %v1450_v31 }
 0x417   :  { %2774 = vmatpush3.bf16.msra.mxu1 %v2888_v44  ;;  %2745 = vmatprep.mubr.msk.bf16.mxu1 %vm2999_vm0, %v4434_v30  ;;  %v2639_v13 = vpop.f32.mrf.mxu0  ;;  %v2470_v44 = vld [vmem:[%s4412_s8 + $0x6] ss:$0 sm:$0xff] }
 0x418   :  { %2775 = vmatprep.subr.bf16.mxu1 %v4434_v30  ;;  %1473 = vst [vmem:[%s4413_s9] sm:$0xff] %v1451_v2 }
 0x419   :  { %v1453_v55 = vpop.f32.mrf.mxu0 }
 0x41a   :  { %v1454_v49 = vadd.f32 %v2368_v11, %v1453_v55 }
 0x41b   :  { %2776 = vmatpush3.bf16.msra.mxu1 %v2889_v56  ;;  %v2640_v58 = vpop.f32.mrf.mxu0 }
 0x41c   :  { %1474 = vst [vmem:[%s4413_s9 + $0x40] sm:$0xff] %v1454_v49 }
 0x41d   :  { %v1458_v52 = vpop.f32.mrf.mxu0 }
 0x41e   :  { %2746 = vmatmul.mubr.msk.bf16.gmra.mxu1 %vm1406_vm4, %v1980_v0  ;;  %v1459_v37 = vadd.f32 %v2368_v11, %v1458_v52 }
 0x41f   :  { %2777 = vmatprep.mubr.msk.bf16.mxu1 %vm2999_vm0, %v4434_v30  ;;  %v2643_v62 = vpop.f32.mrf.mxu0 }
 0x420   :  { %1475 = vst [vmem:[%s4413_s9 + $0x80] sm:$0xff] %v1459_v37 }
 0x421   :  { %v1461_v12 = vpop.f32.mrf.mxu0 }
 0x422   :  { %v1462_v39 = vadd.f32 %v2368_v11, %v1461_v12 }
 0x423   :  { %v2644_v46 = vpop.f32.mrf.mxu0 }
 0x424   :  { %1476 = vst [vmem:[%s4413_s9 + $0xc0] sm:$0xff] %v1462_v39  ;;  %v2385_v39 = vld [vmem:[%s4412_s8 + $0x1] ss:$0 sm:$0xff] }
 0x426   :  { %2778 = vmatmul.mubr.msk.bf16.vlgmr.msra.gmra.mxu1 %vm1406_vm4, %v2214_v40 }
 0x427   :  { %2781 = vmatprep.mubr.msk.bf16.mxu1 %vm2999_vm0, %v4434_v30 }
 0x42e   :  { %2782 = vmatmul.mubr.msk.bf16.gmra.mxu1 %vm1406_vm4, %v2216_v18 }
 0x42f   :  { %2785 = vmatprep.mubr.msk.bf16.mxu1 %vm2999_vm0, %v4434_v30 }
 0x436   :  { %2786 = vmatmul.mubr.msk.bf16.gmra.mxu1 %vm1406_vm4, %v2218_v33 }
 0x43b   :  { %v1466_v50 = vpop.f32.mrf.mxu0 }
 0x43c   :  { %v1467_v1 = vadd.f32 %v2368_v11, %v1466_v50 }
 0x43d   :  { %v2647_v23 = vpop.f32.mrf.mxu0 }
 0x43e   :  { %1477 = vst [vmem:[%s4413_s9 + $0x100] sm:$0xff] %v1467_v1 }
 0x43f   :  { %v1469_v36 = vpop.f32.mrf.mxu0 }
 0x440   :  { %v1470_v51 = vadd.f32 %v2368_v11, %v1469_v36 }
 0x441   :  { %v2648_v25 = vpop.f32.mrf.mxu0 }
 0x442   :  { %1478 = vst [vmem:[%s4413_s9 + $0x140] sm:$0xff] %v1470_v51 }
 0x443   :  { %v1688_v30 = vpop.f32.mrf.mxu0 }
 0x444   :  { %v1689_v8 = vadd.f32 %v2402_v57, %v1688_v30 }
 0x445   :  { %v2679_v22 = vpop.f32.mrf.mxu0 }
 0x446   :  { %1711 = vst [vmem:[%s4413_s9 + $0x10] sm:$0xff] %v1689_v8 }
 0x447   :  { %v1691_v41 = vpop.f32.mrf.mxu0 }
 0x448   :  { %v1692_v59 = vadd.f32 %v2402_v57, %v1691_v41 }
 0x449   :  { %v2680_v47 = vpop.f32.mrf.mxu0 }
 0x44a   :  { %1712 = vst [vmem:[%s4413_s9 + $0x50] sm:$0xff] %v1692_v59 }
 0x44b   :  { %v1696_v26 = vpop.f32.mrf.mxu0 }
 0x44c   :  { %v1697_v53 = vadd.f32 %v2402_v57, %v1696_v26 }
 0x44d   :  { %v2683_v16 = vpop.f32.mrf.mxu0 }
 0x44e   :  { %1713 = vst [vmem:[%s4413_s9 + $0x90] sm:$0xff] %v1697_v53 }
 0x44f   :  { %v1699_v63 = vpop.f32.mrf.mxu0 }
 0x450   :  { %v1700_v54 = vadd.f32 %v2402_v57, %v1699_v63 }
 0x451   :  { %v2684_v48 = vpop.f32.mrf.mxu0 }
 0x452   :  { %1714 = vst [vmem:[%s4413_s9 + $0xd0] sm:$0xff] %v1700_v54  ;;  %v2419_v48 = vld [vmem:[%s4412_s8 + $0x3] ss:$0 sm:$0xff] }
 0x453   :  { %v1704_v4 = vpop.f32.mrf.mxu0 }
 0x454   :  { %v1705_v17 = vadd.f32 %v2402_v57, %v1704_v4 }
 0x455   :  { %v2687_v21 = vpop.f32.mrf.mxu0 }
 0x456   :  { %1715 = vst [vmem:[%s4413_s9 + $0x110] sm:$0xff] %v1705_v17 }
 0x457   :  { %v1707_v35 = vpop.f32.mrf.mxu0 }
 0x458   :  { %v1708_v29 = vadd.f32 %v2402_v57, %v1707_v35 }
 0x459   :  { %v2688_v45 = vpop.f32.mrf.mxu0 }
 0x45a   :  { %1716 = vst [vmem:[%s4413_s9 + $0x150] sm:$0xff] %v1708_v29 }
 0x45b   :  { %v1926_v24 = vpop.f32.mrf.mxu0 }
 0x45c   :  { %v1927_v19 = vadd.f32 %v2436_v9, %v1926_v24 }
 0x45d   :  { %v2719_v20 = vpop.f32.mrf.mxu0 }
 0x45e   :  { %1949 = vst [vmem:[%s4413_s9 + $0x20] sm:$0xff] %v1927_v19 }
 0x45f   :  { %v1929_v28 = vpop.f32.mrf.mxu0 }
 0x460   :  { %v1930_v7 = vadd.f32 %v2436_v9, %v1929_v28 }
 0x461   :  { %v2720_v42 = vpop.f32.mrf.mxu0 }
 0x462   :  { %1950 = vst [vmem:[%s4413_s9 + $0x60] sm:$0xff] %v1930_v7 }
 0x463   :  { %v1934_v14 = vpop.f32.mrf.mxu0 }
 0x464   :  { %v1935_v6 = vadd.f32 %v2436_v9, %v1934_v14 }
 0x465   :  { %v2723_v38 = vpop.f32.mrf.mxu0 }
 0x466   :  { %1951 = vst [vmem:[%s4413_s9 + $0xa0] sm:$0xff] %v1935_v6 }
 0x467   :  { %v1937_v60 = vpop.f32.mrf.mxu0 }
 0x468   :  { %v1938_v10 = vadd.f32 %v2436_v9, %v1937_v60 }
 0x469   :  { %v2724_v27 = vpop.f32.mrf.mxu0 }
 0x46a   :  { %1952 = vst [vmem:[%s4413_s9 + $0xe0] sm:$0xff] %v1938_v10  ;;  %v2453_v27 = vld [vmem:[%s4412_s8 + $0x5] ss:$0 sm:$0xff] }
 0x46b   :  { %v1942_v5 = vpop.f32.mrf.mxu0 }
 0x46c   :  { %v1943_v34 = vadd.f32 %v2436_v9, %v1942_v5 }
 0x46d   :  { %v2727_v43 = vpop.f32.mrf.mxu0 }
 0x46e   :  { %1953 = vst [vmem:[%s4413_s9 + $0x120] sm:$0xff] %v1943_v34 }
 0x46f   :  { %v1945_v15 = vpop.f32.mrf.mxu0 }
 0x470   :  { %v1946_v3 = vadd.f32 %v2436_v9, %v1945_v15 }
 0x471   :  { %v2728_v61 = vpop.f32.mrf.mxu0 }
 0x472   :  { %1954 = vst [vmem:[%s4413_s9 + $0x160] sm:$0xff] %v1946_v3 }
 0x473   :  { %v2164_v32 = vpop.f32.mrf.mxu0 }
 0x474   :  { %v2165_v11 = vadd.f32 %v2470_v44, %v2164_v32 }
 0x475   :  { %v2759_v56 = vpop.f32.mrf.mxu0 }
 0x476   :  { %2187 = vst [vmem:[%s4413_s9 + $0x30] sm:$0xff] %v2165_v11 }
 0x477   :  { %v2167_v31 = vpop.f32.mrf.mxu0 }
 0x478   :  { %v2168_v2 = vadd.f32 %v2470_v44, %v2167_v31 }
 0x479   :  { %v2760_v13 = vpop.f32.mrf.mxu0 }
 0x47a   :  { %2188 = vst [vmem:[%s4413_s9 + $0x70] sm:$0xff] %v2168_v2 }
 0x47b   :  { %v2172_v55 = vpop.f32.mrf.mxu0 }
 0x47c   :  { %v2173_v0 = vadd.f32 %v2470_v44, %v2172_v55 }
 0x47d   :  { %v2763_v49 = vpop.f32.mrf.mxu0 }
 0x47e   :  { %2189 = vst [vmem:[%s4413_s9 + $0xb0] sm:$0xff] %v2173_v0 }
 0x47f   :  { %v2175_v58 = vpop.f32.mrf.mxu0 }
 0x480   :  { %v2176_v52 = vadd.f32 %v2470_v44, %v2175_v58 }
 0x481   :  { %v2764_v37 = vpop.f32.mrf.mxu0 }
 0x482   :  { %2190 = vst [vmem:[%s4413_s9 + $0xf0] sm:$0xff] %v2176_v52  ;;  %v2487_v37 = vld [vmem:[%s4412_s8 + $0x7] ss:$0 sm:$0xff] }
 0x483   :  { %v2180_v62 = vpop.f32.mrf.mxu0 }
 0x484   :  { %v2181_v12 = vadd.f32 %v2470_v44, %v2180_v62 }
 0x485   :  { %v2767_v40 = vpop.f32.mrf.mxu0 }
 0x486   :  { %2191 = vst [vmem:[%s4413_s9 + $0x130] sm:$0xff] %v2181_v12 }
 0x487   :  { %v2183_v46 = vpop.f32.mrf.mxu0 }
 0x488   :  { %v2184_v18 = vadd.f32 %v2470_v44, %v2183_v46  ;;  %v1572_v33 = vpop.f32.mrf.mxu1 }
 0x489   :  { %v2768_v50 = vpop.f32.mrf.mxu0  ;;  %v1573_v1 = vadd.f32 %v2385_v39, %v1572_v33 }
 0x48a   :  { %2192 = vst [vmem:[%s4413_s9 + $0x170] sm:$0xff] %v2184_v18  ;;  %v2659_v23 = vpop.f32.mrf.mxu1 }
 0x48b   :  { %1595 = vst [vmem:[%s4413_s9 + $0x8] sm:$0xff] %v1573_v1 }
 0x48c   :  { %v1575_v36 = vpop.f32.mrf.mxu1 }
 0x48d   :  { %v1576_v51 = vadd.f32 %v2385_v39, %v1575_v36 }
 0x48e   :  { %v2660_v25 = vpop.f32.mrf.mxu1 }
 0x48f   :  { %1596 = vst [vmem:[%s4413_s9 + $0x48] sm:$0xff] %v1576_v51 }
 0x490   :  { %v1580_v57 = vpop.f32.mrf.mxu1 }
 0x491   :  { %v1581_v30 = vadd.f32 %v2385_v39, %v1580_v57 }
 0x492   :  { %v2663_v8 = vpop.f32.mrf.mxu1 }
 0x493   :  { %1597 = vst [vmem:[%s4413_s9 + $0x88] sm:$0xff] %v1581_v30 }
 0x494   :  { %v1583_v22 = vpop.f32.mrf.mxu1 }
 0x495   :  { %v1584_v41 = vadd.f32 %v2385_v39, %v1583_v22 }
 0x496   :  { %v2664_v59 = vpop.f32.mrf.mxu1 }
 0x497   :  { %1598 = vst [vmem:[%s4413_s9 + $0xc8] sm:$0xff] %v1584_v41 }
 0x4ae   :  { %v1588_v47 = vpop.f32.mrf.mxu1 }
 0x4af   :  { %v1589_v26 = vadd.f32 %v2385_v39, %v1588_v47 }
 0x4b0   :  { %v2667_v53 = vpop.f32.mrf.mxu1 }
 0x4b1   :  { %1599 = vst [vmem:[%s4413_s9 + $0x108] sm:$0xff] %v1589_v26 }
 0x4b2   :  { %v1591_v16 = vpop.f32.mrf.mxu1 }
 0x4b3   :  { %v1592_v63 = vadd.f32 %v2385_v39, %v1591_v16 }
 0x4b4   :  { %v2668_v54 = vpop.f32.mrf.mxu1 }
 0x4b5   :  { %1600 = vst [vmem:[%s4413_s9 + $0x148] sm:$0xff] %v1592_v63 }
 0x4b6   :  { %v1810_v4 = vpop.f32.mrf.mxu1 }
 0x4b7   :  { %v1811_v17 = vadd.f32 %v2419_v48, %v1810_v4 }
 0x4b8   :  { %v2699_v21 = vpop.f32.mrf.mxu1 }
 0x4b9   :  { %1833 = vst [vmem:[%s4413_s9 + $0x18] sm:$0xff] %v1811_v17 }
 0x4ba   :  { %v1813_v35 = vpop.f32.mrf.mxu1 }
 0x4bb   :  { %v1814_v29 = vadd.f32 %v2419_v48, %v1813_v35 }
 0x4bc   :  { %v2700_v45 = vpop.f32.mrf.mxu1 }
 0x4bd   :  { %1834 = vst [vmem:[%s4413_s9 + $0x58] sm:$0xff] %v1814_v29 }
 0x4be   :  { %v1818_v9 = vpop.f32.mrf.mxu1 }
 0x4bf   :  { %v1819_v24 = vadd.f32 %v2419_v48, %v1818_v9 }
 0x4c0   :  { %v2703_v19 = vpop.f32.mrf.mxu1 }
 0x4c1   :  { %1835 = vst [vmem:[%s4413_s9 + $0x98] sm:$0xff] %v1819_v24 }
 0x4c2   :  { %v1821_v20 = vpop.f32.mrf.mxu1 }
 0x4c3   :  { %v1822_v28 = vadd.f32 %v2419_v48, %v1821_v20 }
 0x4c4   :  { %v2704_v7 = vpop.f32.mrf.mxu1 }
 0x4c5   :  { %1836 = vst [vmem:[%s4413_s9 + $0xd8] sm:$0xff] %v1822_v28 }
 0x4c6   :  { %v1826_v42 = vpop.f32.mrf.mxu1 }
 0x4c7   :  { %v1827_v14 = vadd.f32 %v2419_v48, %v1826_v42 }
 0x4c8   :  { %v2707_v6 = vpop.f32.mrf.mxu1 }
 0x4c9   :  { %1837 = vst [vmem:[%s4413_s9 + $0x118] sm:$0xff] %v1827_v14 }
 0x4ca   :  { %v1829_v38 = vpop.f32.mrf.mxu1 }
 0x4cb   :  { %v1830_v60 = vadd.f32 %v2419_v48, %v1829_v38 }
 0x4cc   :  { %v2708_v10 = vpop.f32.mrf.mxu1 }
 0x4cd   :  { %1838 = vst [vmem:[%s4413_s9 + $0x158] sm:$0xff] %v1830_v60 }
 0x4ce   :  { %v2048_v5 = vpop.f32.mrf.mxu1 }
 0x4cf   :  { %v2049_v34 = vadd.f32 %v2453_v27, %v2048_v5 }
 0x4d0   :  { %v2739_v43 = vpop.f32.mrf.mxu1 }
 0x4d1   :  { %2071 = vst [vmem:[%s4413_s9 + $0x28] sm:$0xff] %v2049_v34 }
 0x4d2   :  { %v2051_v15 = vpop.f32.mrf.mxu1 }
 0x4d3   :  { %v2052_v3 = vadd.f32 %v2453_v27, %v2051_v15 }
 0x4d4   :  { %v2740_v61 = vpop.f32.mrf.mxu1 }
 0x4d5   :  { %2072 = vst [vmem:[%s4413_s9 + $0x68] sm:$0xff] %v2052_v3 }
 0x4d6   :  { %v2056_v44 = vpop.f32.mrf.mxu1 }
 0x4d7   :  { %v2057_v32 = vadd.f32 %v2453_v27, %v2056_v44 }
 0x4d8   :  { %v2743_v11 = vpop.f32.mrf.mxu1 }
 0x4d9   :  { %2073 = vst [vmem:[%s4413_s9 + $0xa8] sm:$0xff] %v2057_v32 }
 0x4da   :  { %v2059_v56 = vpop.f32.mrf.mxu1 }
 0x4db   :  { %v2060_v31 = vadd.f32 %v2453_v27, %v2059_v56 }
 0x4dc   :  { %v2744_v2 = vpop.f32.mrf.mxu1 }
 0x4dd   :  { %2074 = vst [vmem:[%s4413_s9 + $0xe8] sm:$0xff] %v2060_v31 }
 0x4de   :  { %v2064_v13 = vpop.f32.mrf.mxu1 }
 0x4df   :  { %v2065_v55 = vadd.f32 %v2453_v27, %v2064_v13 }
 0x4e0   :  { %v2747_v0 = vpop.f32.mrf.mxu1 }
 0x4e1   :  { %2075 = vst [vmem:[%s4413_s9 + $0x128] sm:$0xff] %v2065_v55 }
 0x4e2   :  { %v2067_v49 = vpop.f32.mrf.mxu1 }
 0x4e3   :  { %v2068_v58 = vadd.f32 %v2453_v27, %v2067_v49 }
 0x4e4   :  { %v2748_v52 = vpop.f32.mrf.mxu1 }
 0x4e5   :  { %2076 = vst [vmem:[%s4413_s9 + $0x168] sm:$0xff] %v2068_v58 }
 0x4e6   :  { %v2286_v62 = vpop.f32.mrf.mxu1 }
 0x4e7   :  { %v2287_v12 = vadd.f32 %v2487_v37, %v2286_v62 }
 0x4e8   :  { %v2779_v40 = vpop.f32.mrf.mxu1 }
 0x4e9   :  { %2309 = vst [vmem:[%s4413_s9 + $0x38] sm:$0xff] %v2287_v12 }
 0x4ea   :  { %v2289_v39 = vpop.f32.mrf.mxu1 }
 0x4eb   :  { %v2290_v46 = vadd.f32 %v2487_v37, %v2289_v39 }
 0x4ec   :  { %v2780_v18 = vpop.f32.mrf.mxu1 }
 0x4ed   :  { %2310 = vst [vmem:[%s4413_s9 + $0x78] sm:$0xff] %v2290_v46 }
 0x4ee   :  { %v2294_v33 = vpop.f32.mrf.mxu1 }
 0x4ef   :  { %v2295_v50 = vadd.f32 %v2487_v37, %v2294_v33 }
 0x4f0   :  { %v2783_v1 = vpop.f32.mrf.mxu1 }
 0x4f1   :  { %2311 = vst [vmem:[%s4413_s9 + $0xb8] sm:$0xff] %v2295_v50 }
 0x4f2   :  { %v2297_v23 = vpop.f32.mrf.mxu1 }
 0x4f3   :  { %v2298_v36 = vadd.f32 %v2487_v37, %v2297_v23 }
 0x4f4   :  { %v2784_v51 = vpop.f32.mrf.mxu1 }
 0x4f5   :  { %2312 = vst [vmem:[%s4413_s9 + $0xf8] sm:$0xff] %v2298_v36 }
 0x4f6   :  { %v2302_v25 = vpop.f32.mrf.mxu1 }
 0x4f7   :  { %v2303_v57 = vadd.f32 %v2487_v37, %v2302_v25 }
 0x4f8   :  { %v2787_v30 = vpop.f32.mrf.mxu1 }
 0x4f9   :  { %2313 = vst [vmem:[%s4413_s9 + $0x138] sm:$0xff] %v2303_v57 }
 0x4fa   :  { %v2305_v8 = vpop.f32.mrf.mxu1 }
 0x4fb   :  { %v2306_v22 = vadd.f32 %v2487_v37, %v2305_v8 }
 0x4fc   :  { %v2788_v41 = vpop.f32.mrf.mxu1 }
 0x4fd   :  { %2314 = vst [vmem:[%s4413_s9 + $0x178] sm:$0xff] %v2306_v22 }

</bundles_post_ra>
